<compile_context>
chip_gen: v7x
topology: tpu7x:2x2x1
jax: 0.10.0
libtpu: 0.0.40
codegen_flags: <defaults>
</compile_context>

<pallas_src>
from functools import partial

import jax
import jax.numpy as jnp
from jax.experimental import pallas as pl
from jax.experimental.pallas import tpu as pltpu


# ----------------------------------------------------------------------------
# Fake quantization (matches QuantizedModelWrapper.quantize_model_weights)
# ----------------------------------------------------------------------------
def quantize_weight(w, bits=8):
    """Returns (dequantized weights, integer codes q in [0, 2^bits-1] as f32, scale, min)."""
    max_q = 2 ** bits - 1
    mn = w.min()
    mx = w.max()
    scale = (mx - mn) / max_q
    scale = jnp.where(scale == 0, jnp.ones_like(scale), scale)  # guard constant tensors
    q = jnp.round((w - mn) / scale)
    deq = (q * scale + mn).astype(w.dtype)
    return deq, q, scale, mn


# ----------------------------------------------------------------------------
# One-time weight folding (done at "model load", not per forward)
# ----------------------------------------------------------------------------
def prepare_params(conv_w_q, conv_b, fc_q, fc_scale, fc_min, fc_b, H, W, num_classes):
    """Fold conv kw-loop + W padding into one banded (3*W*Cin, W*Cout) matrix, fold the
    PyTorch (C,H,W)-flatten permutation into per-h int8 fc weight slabs, pad fc out to 128."""
    Cout, Cin, KH, KW = conv_w_q.shape
    dtype = conv_w_q.dtype

    # Conv weights OIHW -> HWIO
    w_hwio = jnp.transpose(conv_w_q, (2, 3, 1, 0))                    # (KH, KW, Cin, Cout)

    # Banded matrix B[kh] of shape (W*Cin, W*Cout):
    #   B[kh][c*Cin+ci, w*Cout+co] = W[kh, c-w+1, ci, co]  (zero outside the 3-wide band)
    # Out-of-range columns are simply absent -> 'same' padding in W is free.
    c_idx = jnp.arange(W)[None, :, None]
    w_idx = jnp.arange(W)[None, None, :]
    kw_idx = jnp.arange(KW)[:, None, None]
    onehot = (c_idx == (w_idx + kw_idx - (KW // 2))).astype(dtype)    # (KW, W, W)
    wconv = jnp.einsum('kcw,hkio->hciwo', onehot, w_hwio)             # (KH, W, Cin, W, Cout)
    wconv = wconv.reshape(KH * W * Cin, W * Cout)                     # (192, 128): K = kh*64+wc

    bconv = jnp.tile(conv_b, (W,)).reshape(1, W * Cout)               # (1, 128): [w*Cout+co]=b[co]

    # fc weight codes: PyTorch flatten order is (C,H,W); kernel uses per-h (w,c) lanes.
    MPAD = ((num_classes + 127) // 128) * 128
    q3 = fc_q.reshape(num_classes, Cout, H, W)                        # [m, c, h, w], f32 integer codes
    q3 = jnp.transpose(q3, (2, 3, 1, 0)).reshape(H, W * Cout, num_classes)   # [h, w*Cout+co, m]
    wfc_q = jnp.full((H, W * Cout, MPAD), -128, dtype=jnp.int8)
    wfc_q = wfc_q.at[:, :, :num_classes].set((q3 - 128.0).astype(jnp.int8))  # store q-128 as int8

    qparams = jnp.stack([fc_scale, fc_min]).astype(jnp.float32)       # (2,) -> SMEM

    bfc_pad = jnp.zeros((1, MPAD), fc_b.dtype).at[0, :num_classes].set(fc_b)
    return wconv, bconv, wfc_q, qparams, bfc_pad


# ----------------------------------------------------------------------------
# Fused Pallas kernel: conv3x3 + bias + ReLU + flatten + fc (int8 fc weights)
# ----------------------------------------------------------------------------
def fused_forward_kernel(x_ref, wconv_ref, bconv_ref, wfcq_ref, qp_ref, bfc_ref,
                         o_ref, lhs_ref, *, H, NP, WCin, WCout):
    """
    x_ref:     (H*NP, W*Cin)           rows = (h, n) with batch padded to NP=8 (zeros), lanes = w*Cin+ci
    wconv_ref: (3*W*Cin, W*Cout)       banded conv weights, K ordered kh*WCin + wc
    bconv_ref: (1, W*Cout)             conv bias tiled per (w, cout) lane
    wfcq_ref:  (H, W*Cout, MPAD) int8  fc weight codes (q-128), flatten-permuted, lanes padded
    qp_ref:    (2,) f32 SMEM           [scale, min] of the fc weight fake-quantization
    bfc_ref:   (1, MPAD)
    o_ref:     (NP, MPAD)
    lhs_ref:   (H*NP, 3*W*Cin)         VMEM scratch: kh-shifted conv LHS
    """
    HN = H * NP

    # Build the fused-K conv LHS with three row-tile-aligned shifted writes.
    # Only the two halo row-blocks are zeroed; batch-pad sublanes are already zero in x.
    lhs_ref[0:NP, 0:WCin] = jnp.zeros((NP, WCin), jnp.float32)            # h = -1 halo (kh=0)
    lhs_ref[NP:HN, 0:WCin] = x_ref[0:HN - NP, :]
    lhs_ref[:, WCin:2 * WCin] = x_ref[...]
    lhs_ref[0:HN - NP, 2 * WCin:3 * WCin] = x_ref[NP:HN, :]
    lhs_ref[HN - NP:HN, 2 * WCin:3 * WCin] = jnp.zeros((NP, WCin), jnp.float32)  # h = H halo (kh=2)

    # Conv as a single K=192 matmul -> lane-dense activation (H*NP, W*Cout) = (128, 128).
    act = jnp.dot(lhs_ref[...], wconv_ref[...], preferred_element_type=jnp.float32)
    act = jnp.maximum(act + bconv_ref[...], 0.0)

    # FC: unrolled accumulation over h of (NP, WCout) @ (WCout, MPAD) slabs.
    # Each LHS slab is an aligned 8-sublane slice (no relayout); each weight slab is
    # dequantized in-register: (q + 128) * scale + min, bit-exact vs the fake-quantized f32.
    scale = qp_ref[0]
    mn = qp_ref[1]
    acc = jnp.zeros((NP, o_ref.shape[1]), dtype=jnp.float32)
    for hh in range(H):  # static unroll, 16 MXU pushes of full K=128
        lhs_slab = act[hh * NP:(hh + 1) * NP, :]
        w_slab = (wfcq_ref[hh].astype(jnp.float32) + 128.0) * scale + mn
        acc = acc + jnp.dot(lhs_slab, w_slab, preferred_element_type=jnp.float32)

    o_ref[...] = (acc + bfc_ref[...]).astype(o_ref.dtype)


# ----------------------------------------------------------------------------
# Forward wrapper
# ----------------------------------------------------------------------------
def quantized_model_forward(x_nchw, folded_params, num_classes):
    """x_nchw: (N, Cin, H, W) like PyTorch. Returns (N, num_classes)."""
    wconv, bconv, wfc_q, qparams, bfc = folded_params
    N, Cin, H, W = x_nchw.shape
    WCin = W * Cin
    WCout = wconv.shape[-1]
    MPAD = wfc_q.shape[-1]
    NP = 8  # batch padded to one sublane tile

    # NCHW -> (H, n, W*Cin) with batch zero-padded to 8 sublanes, flattened to (H*8, W*Cin).
    # TODO(synk): in a serving pipeline this layout op and the output slice below would be
    # folded into the producing/consuming ops; here they are one small fused XLA op each.
    x_hn = jnp.transpose(x_nchw, (2, 0, 3, 1)).reshape(H, N, WCin)
    x_lay = jnp.zeros((H, NP, WCin), x_nchw.dtype).at[:, :N, :].set(x_hn)
    x_lay = x_lay.reshape(H * NP, WCin)

    out_pad = pl.pallas_call(
        partial(fused_forward_kernel, H=H, NP=NP, WCin=WCin, WCout=WCout),
        out_shape=jax.ShapeDtypeStruct((NP, MPAD), jnp.float32),
        grid=(1,),
        in_specs=[
            pl.BlockSpec((H * NP, WCin), lambda i: (0, 0)),
            pl.BlockSpec(wconv.shape, lambda i: (0, 0)),
            pl.BlockSpec((1, WCout), lambda i: (0, 0)),
            pl.BlockSpec(wfc_q.shape, lambda i: (0, 0, 0)),
            pl.BlockSpec(memory_space=pltpu.MemorySpace.SMEM),
            pl.BlockSpec((1, MPAD), lambda i: (0, 0)),
        ],
        out_specs=pl.BlockSpec((NP, MPAD), lambda i: (0, 0)),
        scratch_shapes=[pltpu.VMEM((H * NP, 3 * WCin), jnp.float32)],
        compiler_params=pltpu.CompilerParams(
            dimension_semantics=("arbitrary",)),
    )(x_lay, wconv, bconv, wfc_q, qparams, bfc)

    return out_pad[:N, :num_classes]


# ----------------------------------------------------------------------------
# Main
# ----------------------------------------------------------------------------
if __name__ == "__main__":
    N, Cin, H, W = 2, 4, 16, 16
    Cout, num_classes = 8, 10

    key = jax.random.PRNGKey(0)
    k_x, k_cw, k_cb, k_fw, k_fb = jax.random.split(key, 5)

    x = jax.random.normal(k_x, (N, Cin, H, W), dtype=jnp.float32)

    # PyTorch-shaped parameters: Conv2d OIHW, Linear (out, in)
    conv_w = jax.random.normal(k_cw, (Cout, Cin, 3, 3), dtype=jnp.float32) * 0.1
    conv_b = jax.random.normal(k_cb, (Cout,), dtype=jnp.float32) * 0.1
    fc_w = jax.random.normal(k_fw, (num_classes, Cout * H * W), dtype=jnp.float32) * 0.05
    fc_b = jax.random.normal(k_fb, (num_classes,), dtype=jnp.float32) * 0.05

    # QuantizedModelWrapper: fake-quantize *weight* tensors only (biases untouched)
    conv_w_q, _, _, _ = quantize_weight(conv_w, bits=8)
    fc_w_q, fc_q, fc_scale, fc_min = quantize_weight(fc_w, bits=8)

    # One-time weight folding (banded K=192 conv matrix, int8 flatten-permuted fc slabs)
    folded = prepare_params(conv_w_q, conv_b, fc_q, fc_scale, fc_min, fc_b, H, W, num_classes)

    forward = jax.jit(quantized_model_forward, static_argnums=(2,))
    out = forward(x, folded, num_classes)
    out = jax.block_until_ready(out)

    # Pure-JAX reference for validation (same fake-quantized weights)
    x_nhwc = jnp.transpose(x, (0, 2, 3, 1))
    w_hwio = jnp.transpose(conv_w_q, (2, 3, 1, 0))
    ref_conv = jax.lax.conv_general_dilated(
        x_nhwc, w_hwio, window_strides=(1, 1), padding="SAME",
        dimension_numbers=("NHWC", "HWIO", "NHWC")) + conv_b
    ref_conv = jnp.maximum(ref_conv, 0.0)
    ref_flat = jnp.transpose(ref_conv, (0, 3, 1, 2)).reshape(N, -1)
    ref_out = ref_flat @ fc_w_q.T + fc_b

    assert out.shape == (N, num_classes)
    assert jnp.allclose(out, ref_out, atol=1e-4, rtol=1e-4), "mismatch vs reference"

    # TODO(synk): get_size_reduction()/get_memory_sizes() are host-side metadata helpers,
    # not kernels; they have no Pallas equivalent and are intentionally omitted.
    print("KERNEL_OK")
</pallas_src>

<mosaic_0001>
module attributes {stable_mosaic.version = 11 : i64} {
  func.func @fused_forward_kernel(%arg0: i32, %arg1: memref<128x64xf32, #tpu.memory_space<vmem>>, %arg2: memref<192x128xf32, #tpu.memory_space<vmem>>, %arg3: memref<1x128xf32, #tpu.memory_space<vmem>>, %arg4: memref<16x128x128xi8, #tpu.memory_space<vmem>>, %arg5: memref<2xf32, #tpu.memory_space<smem>>, %arg6: memref<1x128xf32, #tpu.memory_space<vmem>>, %arg7: memref<8x128xf32, #tpu.memory_space<vmem>>, %arg8: memref<128x192xf32, #tpu.memory_space<vmem>>) attributes {dimension_semantics = [#tpu.dimension_semantics<arbitrary>], iteration_bounds = array<i64: 1>, scalar_prefetch = 0 : i64, scratch_operands = 1 : i64, tpu.core_type = #tpu.core_type<tc>, window_params = [{pipeline_mode = #tpu.pipeline_mode<synchronous>, transform_indices = @transform_0, window_bounds = array<i64: 128, 64>}, {pipeline_mode = #tpu.pipeline_mode<synchronous>, transform_indices = @transform_1, window_bounds = array<i64: 192, 128>}, {pipeline_mode = #tpu.pipeline_mode<synchronous>, transform_indices = @transform_2, window_bounds = array<i64: 1, 128>}, {pipeline_mode = #tpu.pipeline_mode<synchronous>, transform_indices = @transform_3, window_bounds = array<i64: 16, 128, 128>}, {transform_indices = @transform_4, window_bounds = array<i64: 2>}, {pipeline_mode = #tpu.pipeline_mode<synchronous>, transform_indices = @transform_5, window_bounds = array<i64: 1, 128>}, {pipeline_mode = #tpu.pipeline_mode<synchronous>, transform_indices = @transform_6, window_bounds = array<i64: 8, 128>}]} {
    %cst = arith.constant 0.000000e+00 : f32
    %0 = vector.broadcast %cst : f32 to vector<8x64xf32>
    %c0 = arith.constant 0 : index
    %c0_0 = arith.constant 0 : index
    %1 = vector.load %arg8[%c0, %c0_0] : memref<128x192xf32, #tpu.memory_space<vmem>>, vector<8x64xf32>
    tpu.vector_store %arg8[%c0, %c0_0], %0 {strides = array<i32>} : memref<128x192xf32, #tpu.memory_space<vmem>>, vector<8x64xf32>,
    %c0_1 = arith.constant 0 : index
    %c0_2 = arith.constant 0 : index
    %2 = vector.load %arg1[%c0_1, %c0_2] : memref<128x64xf32, #tpu.memory_space<vmem>>, vector<120x64xf32>
    %c8 = arith.constant 8 : index
    %c0_3 = arith.constant 0 : index
    %3 = vector.load %arg8[%c8, %c0_3] : memref<128x192xf32, #tpu.memory_space<vmem>>, vector<120x64xf32>
    tpu.vector_store %arg8[%c8, %c0_3], %2 {strides = array<i32>} : memref<128x192xf32, #tpu.memory_space<vmem>>, vector<120x64xf32>,
    %c0_4 = arith.constant 0 : index
    %c0_5 = arith.constant 0 : index
    %4 = vector.load %arg1[%c0_4, %c0_5] : memref<128x64xf32, #tpu.memory_space<vmem>>, vector<128x64xf32>
    %c0_6 = arith.constant 0 : index
    %c64 = arith.constant 64 : index
    %5 = vector.load %arg8[%c0_6, %c64] : memref<128x192xf32, #tpu.memory_space<vmem>>, vector<128x64xf32>
    tpu.vector_store %arg8[%c0_6, %c64], %4 {strides = array<i32>} : memref<128x192xf32, #tpu.memory_space<vmem>>, vector<128x64xf32>,
    %c8_7 = arith.constant 8 : index
    %c0_8 = arith.constant 0 : index
    %6 = vector.load %arg1[%c8_7, %c0_8] : memref<128x64xf32, #tpu.memory_space<vmem>>, vector<120x64xf32>
    %c0_9 = arith.constant 0 : index
    %c128 = arith.constant 128 : index
    %7 = vector.load %arg8[%c0_9, %c128] : memref<128x192xf32, #tpu.memory_space<vmem>>, vector<120x64xf32>
    tpu.vector_store %arg8[%c0_9, %c128], %6 {strides = array<i32>} : memref<128x192xf32, #tpu.memory_space<vmem>>, vector<120x64xf32>,
    %cst_10 = arith.constant 0.000000e+00 : f32
    %8 = vector.broadcast %cst_10 : f32 to vector<8x64xf32>
    %c120 = arith.constant 120 : index
    %c128_11 = arith.constant 128 : index
    %9 = vector.load %arg8[%c120, %c128_11] : memref<128x192xf32, #tpu.memory_space<vmem>>, vector<8x64xf32>
    tpu.vector_store %arg8[%c120, %c128_11], %8 {strides = array<i32>} : memref<128x192xf32, #tpu.memory_space<vmem>>, vector<8x64xf32>,
    %c0_12 = arith.constant 0 : index
    %c0_13 = arith.constant 0 : index
    %10 = vector.load %arg8[%c0_12, %c0_13] : memref<128x192xf32, #tpu.memory_space<vmem>>, vector<128x192xf32>
    %c0_14 = arith.constant 0 : index
    %c0_15 = arith.constant 0 : index
    %11 = vector.load %arg2[%c0_14, %c0_15] : memref<192x128xf32, #tpu.memory_space<vmem>>, vector<192x128xf32>
    %cst_16 = arith.constant dense<0.000000e+00> : vector<128x128xf32>
    %12 = tpu.matmul %10, %11, %cst_16 {dimension_numbers = #tpu.dot_dimension_numbers<[1], [0], [0], [1], [0, 0, 1, 1], [], []>} : vector<128x192xf32>, vector<192x128xf32>, vector<128x128xf32> -> vector<128x128xf32>
    %c0_17 = arith.constant 0 : index
    %c0_18 = arith.constant 0 : index
    %13 = vector.load %arg3[%c0_17, %c0_18] : memref<1x128xf32, #tpu.memory_space<vmem>>, vector<1x128xf32>
    %14 = vector.broadcast %13 : vector<1x128xf32> to vector<128x128xf32>
    %15 = arith.addf %12, %14 : vector<128x128xf32>
    %cst_19 = arith.constant 0.000000e+00 : f32
    %16 = vector.broadcast %cst_19 : f32 to vector<128x128xf32>
    %17 = arith.maximumf %15, %16 : vector<128x128xf32>
    %c0_20 = arith.constant 0 : index
    %18 = memref.load %arg5[%c0_20] : memref<2xf32, #tpu.memory_space<smem>>
    %c1 = arith.constant 1 : index
    %19 = memref.load %arg5[%c1] : memref<2xf32, #tpu.memory_space<smem>>
    %cst_21 = arith.constant 0.000000e+00 : f32
    %20 = vector.broadcast %cst_21 : f32 to vector<8x128xf32>
    %21 = vector.extract_strided_slice %17 {offsets = [0, 0], sizes = [8, 128], strides = [1, 1]} : vector<128x128xf32> to vector<8x128xf32>
    %c0_22 = arith.constant 0 : index
    %c0_23 = arith.constant 0 : index
    %c0_24 = arith.constant 0 : index
    %22 = vector.load %arg4[%c0_22, %c0_23, %c0_24] : memref<16x128x128xi8, #tpu.memory_space<vmem>>, vector<1x128x128xi8>
    %23 = vector.shape_cast %22 : vector<1x128x128xi8> to vector<128x128xi8>
    %24 = arith.sitofp %23 : vector<128x128xi8> to vector<128x128xf32>
    %cst_25 = arith.constant 1.280000e+02 : f32
    %25 = vector.broadcast %cst_25 : f32 to vector<128x128xf32>
    %26 = arith.addf %24, %25 : vector<128x128xf32>
    %27 = vector.broadcast %18 : f32 to vector<128x128xf32>
    %28 = arith.mulf %26, %27 : vector<128x128xf32>
    %29 = vector.broadcast %19 : f32 to vector<128x128xf32>
    %30 = arith.addf %28, %29 : vector<128x128xf32>
    %cst_26 = arith.constant dense<0.000000e+00> : vector<8x128xf32>
    %31 = tpu.matmul %21, %30, %cst_26 {dimension_numbers = #tpu.dot_dimension_numbers<[1], [0], [0], [1], [0, 0, 1, 1], [], []>} : vector<8x128xf32>, vector<128x128xf32>, vector<8x128xf32> -> vector<8x128xf32>
    %32 = arith.addf %20, %31 : vector<8x128xf32>
    %33 = vector.extract_strided_slice %17 {offsets = [8, 0], sizes = [8, 128], strides = [1, 1]} : vector<128x128xf32> to vector<8x128xf32>
    %c1_27 = arith.constant 1 : index
    %c0_28 = arith.constant 0 : index
    %c0_29 = arith.constant 0 : index
    %34 = vector.load %arg4[%c1_27, %c0_28, %c0_29] : memref<16x128x128xi8, #tpu.memory_space<vmem>>, vector<1x128x128xi8>
    %35 = vector.shape_cast %34 : vector<1x128x128xi8> to vector<128x128xi8>
    %36 = arith.sitofp %35 : vector<128x128xi8> to vector<128x128xf32>
    %cst_30 = arith.constant 1.280000e+02 : f32
    %37 = vector.broadcast %cst_30 : f32 to vector<128x128xf32>
    %38 = arith.addf %36, %37 : vector<128x128xf32>
    %39 = vector.broadcast %18 : f32 to vector<128x128xf32>
    %40 = arith.mulf %38, %39 : vector<128x128xf32>
    %41 = vector.broadcast %19 : f32 to vector<128x128xf32>
    %42 = arith.addf %40, %41 : vector<128x128xf32>
    %cst_31 = arith.constant dense<0.000000e+00> : vector<8x128xf32>
    %43 = tpu.matmul %33, %42, %cst_31 {dimension_numbers = #tpu.dot_dimension_numbers<[1], [0], [0], [1], [0, 0, 1, 1], [], []>} : vector<8x128xf32>, vector<128x128xf32>, vector<8x128xf32> -> vector<8x128xf32>
    %44 = arith.addf %32, %43 : vector<8x128xf32>
    %45 = vector.extract_strided_slice %17 {offsets = [16, 0], sizes = [8, 128], strides = [1, 1]} : vector<128x128xf32> to vector<8x128xf32>
    %c2 = arith.constant 2 : index
    %c0_32 = arith.constant 0 : index
    %c0_33 = arith.constant 0 : index
    %46 = vector.load %arg4[%c2, %c0_32, %c0_33] : memref<16x128x128xi8, #tpu.memory_space<vmem>>, vector<1x128x128xi8>
    %47 = vector.shape_cast %46 : vector<1x128x128xi8> to vector<128x128xi8>
    %48 = arith.sitofp %47 : vector<128x128xi8> to vector<128x128xf32>
    %cst_34 = arith.constant 1.280000e+02 : f32
    %49 = vector.broadcast %cst_34 : f32 to vector<128x128xf32>
    %50 = arith.addf %48, %49 : vector<128x128xf32>
    %51 = vector.broadcast %18 : f32 to vector<128x128xf32>
    %52 = arith.mulf %50, %51 : vector<128x128xf32>
    %53 = vector.broadcast %19 : f32 to vector<128x128xf32>
    %54 = arith.addf %52, %53 : vector<128x128xf32>
    %cst_35 = arith.constant dense<0.000000e+00> : vector<8x128xf32>
    %55 = tpu.matmul %45, %54, %cst_35 {dimension_numbers = #tpu.dot_dimension_numbers<[1], [0], [0], [1], [0, 0, 1, 1], [], []>} : vector<8x128xf32>, vector<128x128xf32>, vector<8x128xf32> -> vector<8x128xf32>
    %56 = arith.addf %44, %55 : vector<8x128xf32>
    %57 = vector.extract_strided_slice %17 {offsets = [24, 0], sizes = [8, 128], strides = [1, 1]} : vector<128x128xf32> to vector<8x128xf32>
    %c3 = arith.constant 3 : index
    %c0_36 = arith.constant 0 : index
    %c0_37 = arith.constant 0 : index
    %58 = vector.load %arg4[%c3, %c0_36, %c0_37] : memref<16x128x128xi8, #tpu.memory_space<vmem>>, vector<1x128x128xi8>
    %59 = vector.shape_cast %58 : vector<1x128x128xi8> to vector<128x128xi8>
    %60 = arith.sitofp %59 : vector<128x128xi8> to vector<128x128xf32>
    %cst_38 = arith.constant 1.280000e+02 : f32
    %61 = vector.broadcast %cst_38 : f32 to vector<128x128xf32>
    %62 = arith.addf %60, %61 : vector<128x128xf32>
    %63 = vector.broadcast %18 : f32 to vector<128x128xf32>
    %64 = arith.mulf %62, %63 : vector<128x128xf32>
    %65 = vector.broadcast %19 : f32 to vector<128x128xf32>
    %66 = arith.addf %64, %65 : vector<128x128xf32>
    %cst_39 = arith.constant dense<0.000000e+00> : vector<8x128xf32>
    %67 = tpu.matmul %57, %66, %cst_39 {dimension_numbers = #tpu.dot_dimension_numbers<[1], [0], [0], [1], [0, 0, 1, 1], [], []>} : vector<8x128xf32>, vector<128x128xf32>, vector<8x128xf32> -> vector<8x128xf32>
    %68 = arith.addf %56, %67 : vector<8x128xf32>
    %69 = vector.extract_strided_slice %17 {offsets = [32, 0], sizes = [8, 128], strides = [1, 1]} : vector<128x128xf32> to vector<8x128xf32>
    %c4 = arith.constant 4 : index
    %c0_40 = arith.constant 0 : index
    %c0_41 = arith.constant 0 : index
    %70 = vector.load %arg4[%c4, %c0_40, %c0_41] : memref<16x128x128xi8, #tpu.memory_space<vmem>>, vector<1x128x128xi8>
    %71 = vector.shape_cast %70 : vector<1x128x128xi8> to vector<128x128xi8>
    %72 = arith.sitofp %71 : vector<128x128xi8> to vector<128x128xf32>
    %cst_42 = arith.constant 1.280000e+02 : f32
    %73 = vector.broadcast %cst_42 : f32 to vector<128x128xf32>
    %74 = arith.addf %72, %73 : vector<128x128xf32>
    %75 = vector.broadcast %18 : f32 to vector<128x128xf32>
    %76 = arith.mulf %74, %75 : vector<128x128xf32>
    %77 = vector.broadcast %19 : f32 to vector<128x128xf32>
    %78 = arith.addf %76, %77 : vector<128x128xf32>
    %cst_43 = arith.constant dense<0.000000e+00> : vector<8x128xf32>
    %79 = tpu.matmul %69, %78, %cst_43 {dimension_numbers = #tpu.dot_dimension_numbers<[1], [0], [0], [1], [0, 0, 1, 1], [], []>} : vector<8x128xf32>, vector<128x128xf32>, vector<8x128xf32> -> vector<8x128xf32>
    %80 = arith.addf %68, %79 : vector<8x128xf32>
    %81 = vector.extract_strided_slice %17 {offsets = [40, 0], sizes = [8, 128], strides = [1, 1]} : vector<128x128xf32> to vector<8x128xf32>
    %c5 = arith.constant 5 : index
    %c0_44 = arith.constant 0 : index
    %c0_45 = arith.constant 0 : index
    %82 = vector.load %arg4[%c5, %c0_44, %c0_45] : memref<16x128x128xi8, #tpu.memory_space<vmem>>, vector<1x128x128xi8>
    %83 = vector.shape_cast %82 : vector<1x128x128xi8> to vector<128x128xi8>
    %84 = arith.sitofp %83 : vector<128x128xi8> to vector<128x128xf32>
    %cst_46 = arith.constant 1.280000e+02 : f32
    %85 = vector.broadcast %cst_46 : f32 to vector<128x128xf32>
    %86 = arith.addf %84, %85 : vector<128x128xf32>
    %87 = vector.broadcast %18 : f32 to vector<128x128xf32>
    %88 = arith.mulf %86, %87 : vector<128x128xf32>
    %89 = vector.broadcast %19 : f32 to vector<128x128xf32>
    %90 = arith.addf %88, %89 : vector<128x128xf32>
    %cst_47 = arith.constant dense<0.000000e+00> : vector<8x128xf32>
    %91 = tpu.matmul %81, %90, %cst_47 {dimension_numbers = #tpu.dot_dimension_numbers<[1], [0], [0], [1], [0, 0, 1, 1], [], []>} : vector<8x128xf32>, vector<128x128xf32>, vector<8x128xf32> -> vector<8x128xf32>
    %92 = arith.addf %80, %91 : vector<8x128xf32>
    %93 = vector.extract_strided_slice %17 {offsets = [48, 0], sizes = [8, 128], strides = [1, 1]} : vector<128x128xf32> to vector<8x128xf32>
    %c6 = arith.constant 6 : index
    %c0_48 = arith.constant 0 : index
    %c0_49 = arith.constant 0 : index
    %94 = vector.load %arg4[%c6, %c0_48, %c0_49] : memref<16x128x128xi8, #tpu.memory_space<vmem>>, vector<1x128x128xi8>
    %95 = vector.shape_cast %94 : vector<1x128x128xi8> to vector<128x128xi8>
    %96 = arith.sitofp %95 : vector<128x128xi8> to vector<128x128xf32>
    %cst_50 = arith.constant 1.280000e+02 : f32
    %97 = vector.broadcast %cst_50 : f32 to vector<128x128xf32>
    %98 = arith.addf %96, %97 : vector<128x128xf32>
    %99 = vector.broadcast %18 : f32 to vector<128x128xf32>
    %100 = arith.mulf %98, %99 : vector<128x128xf32>
    %101 = vector.broadcast %19 : f32 to vector<128x128xf32>
    %102 = arith.addf %100, %101 : vector<128x128xf32>
    %cst_51 = arith.constant dense<0.000000e+00> : vector<8x128xf32>
    %103 = tpu.matmul %93, %102, %cst_51 {dimension_numbers = #tpu.dot_dimension_numbers<[1], [0], [0], [1], [0, 0, 1, 1], [], []>} : vector<8x128xf32>, vector<128x128xf32>, vector<8x128xf32> -> vector<8x128xf32>
    %104 = arith.addf %92, %103 : vector<8x128xf32>
    %105 = vector.extract_strided_slice %17 {offsets = [56, 0], sizes = [8, 128], strides = [1, 1]} : vector<128x128xf32> to vector<8x128xf32>
    %c7 = arith.constant 7 : index
    %c0_52 = arith.constant 0 : index
    %c0_53 = arith.constant 0 : index
    %106 = vector.load %arg4[%c7, %c0_52, %c0_53] : memref<16x128x128xi8, #tpu.memory_space<vmem>>, vector<1x128x128xi8>
    %107 = vector.shape_cast %106 : vector<1x128x128xi8> to vector<128x128xi8>
    %108 = arith.sitofp %107 : vector<128x128xi8> to vector<128x128xf32>
    %cst_54 = arith.constant 1.280000e+02 : f32
    %109 = vector.broadcast %cst_54 : f32 to vector<128x128xf32>
    %110 = arith.addf %108, %109 : vector<128x128xf32>
    %111 = vector.broadcast %18 : f32 to vector<128x128xf32>
    %112 = arith.mulf %110, %111 : vector<128x128xf32>
    %113 = vector.broadcast %19 : f32 to vector<128x128xf32>
    %114 = arith.addf %112, %113 : vector<128x128xf32>
    %cst_55 = arith.constant dense<0.000000e+00> : vector<8x128xf32>
    %115 = tpu.matmul %105, %114, %cst_55 {dimension_numbers = #tpu.dot_dimension_numbers<[1], [0], [0], [1], [0, 0, 1, 1], [], []>} : vector<8x128xf32>, vector<128x128xf32>, vector<8x128xf32> -> vector<8x128xf32>
    %116 = arith.addf %104, %115 : vector<8x128xf32>
    %117 = vector.extract_strided_slice %17 {offsets = [64, 0], sizes = [8, 128], strides = [1, 1]} : vector<128x128xf32> to vector<8x128xf32>
    %c8_56 = arith.constant 8 : index
    %c0_57 = arith.constant 0 : index
    %c0_58 = arith.constant 0 : index
    %118 = vector.load %arg4[%c8_56, %c0_57, %c0_58] : memref<16x128x128xi8, #tpu.memory_space<vmem>>, vector<1x128x128xi8>
    %119 = vector.shape_cast %118 : vector<1x128x128xi8> to vector<128x128xi8>
    %120 = arith.sitofp %119 : vector<128x128xi8> to vector<128x128xf32>
    %cst_59 = arith.constant 1.280000e+02 : f32
    %121 = vector.broadcast %cst_59 : f32 to vector<128x128xf32>
    %122 = arith.addf %120, %121 : vector<128x128xf32>
    %123 = vector.broadcast %18 : f32 to vector<128x128xf32>
    %124 = arith.mulf %122, %123 : vector<128x128xf32>
    %125 = vector.broadcast %19 : f32 to vector<128x128xf32>
    %126 = arith.addf %124, %125 : vector<128x128xf32>
    %cst_60 = arith.constant dense<0.000000e+00> : vector<8x128xf32>
    %127 = tpu.matmul %117, %126, %cst_60 {dimension_numbers = #tpu.dot_dimension_numbers<[1], [0], [0], [1], [0, 0, 1, 1], [], []>} : vector<8x128xf32>, vector<128x128xf32>, vector<8x128xf32> -> vector<8x128xf32>
    %128 = arith.addf %116, %127 : vector<8x128xf32>
    %129 = vector.extract_strided_slice %17 {offsets = [72, 0], sizes = [8, 128], strides = [1, 1]} : vector<128x128xf32> to vector<8x128xf32>
    %c9 = arith.constant 9 : index
    %c0_61 = arith.constant 0 : index
    %c0_62 = arith.constant 0 : index
    %130 = vector.load %arg4[%c9, %c0_61, %c0_62] : memref<16x128x128xi8, #tpu.memory_space<vmem>>, vector<1x128x128xi8>
    %131 = vector.shape_cast %130 : vector<1x128x128xi8> to vector<128x128xi8>
    %132 = arith.sitofp %131 : vector<128x128xi8> to vector<128x128xf32>
    %cst_63 = arith.constant 1.280000e+02 : f32
    %133 = vector.broadcast %cst_63 : f32 to vector<128x128xf32>
    %134 = arith.addf %132, %133 : vector<128x128xf32>
    %135 = vector.broadcast %18 : f32 to vector<128x128xf32>
    %136 = arith.mulf %134, %135 : vector<128x128xf32>
    %137 = vector.broadcast %19 : f32 to vector<128x128xf32>
    %138 = arith.addf %136, %137 : vector<128x128xf32>
    %cst_64 = arith.constant dense<0.000000e+00> : vector<8x128xf32>
    %139 = tpu.matmul %129, %138, %cst_64 {dimension_numbers = #tpu.dot_dimension_numbers<[1], [0], [0], [1], [0, 0, 1, 1], [], []>} : vector<8x128xf32>, vector<128x128xf32>, vector<8x128xf32> -> vector<8x128xf32>
    %140 = arith.addf %128, %139 : vector<8x128xf32>
    %141 = vector.extract_strided_slice %17 {offsets = [80, 0], sizes = [8, 128], strides = [1, 1]} : vector<128x128xf32> to vector<8x128xf32>
    %c10 = arith.constant 10 : index
    %c0_65 = arith.constant 0 : index
    %c0_66 = arith.constant 0 : index
    %142 = vector.load %arg4[%c10, %c0_65, %c0_66] : memref<16x128x128xi8, #tpu.memory_space<vmem>>, vector<1x128x128xi8>
    %143 = vector.shape_cast %142 : vector<1x128x128xi8> to vector<128x128xi8>
    %144 = arith.sitofp %143 : vector<128x128xi8> to vector<128x128xf32>
    %cst_67 = arith.constant 1.280000e+02 : f32
    %145 = vector.broadcast %cst_67 : f32 to vector<128x128xf32>
    %146 = arith.addf %144, %145 : vector<128x128xf32>
    %147 = vector.broadcast %18 : f32 to vector<128x128xf32>
    %148 = arith.mulf %146, %147 : vector<128x128xf32>
    %149 = vector.broadcast %19 : f32 to vector<128x128xf32>
    %150 = arith.addf %148, %149 : vector<128x128xf32>
    %cst_68 = arith.constant dense<0.000000e+00> : vector<8x128xf32>
    %151 = tpu.matmul %141, %150, %cst_68 {dimension_numbers = #tpu.dot_dimension_numbers<[1], [0], [0], [1], [0, 0, 1, 1], [], []>} : vector<8x128xf32>, vector<128x128xf32>, vector<8x128xf32> -> vector<8x128xf32>
    %152 = arith.addf %140, %151 : vector<8x128xf32>
    %153 = vector.extract_strided_slice %17 {offsets = [88, 0], sizes = [8, 128], strides = [1, 1]} : vector<128x128xf32> to vector<8x128xf32>
    %c11 = arith.constant 11 : index
    %c0_69 = arith.constant 0 : index
    %c0_70 = arith.constant 0 : index
    %154 = vector.load %arg4[%c11, %c0_69, %c0_70] : memref<16x128x128xi8, #tpu.memory_space<vmem>>, vector<1x128x128xi8>
    %155 = vector.shape_cast %154 : vector<1x128x128xi8> to vector<128x128xi8>
    %156 = arith.sitofp %155 : vector<128x128xi8> to vector<128x128xf32>
    %cst_71 = arith.constant 1.280000e+02 : f32
    %157 = vector.broadcast %cst_71 : f32 to vector<128x128xf32>
    %158 = arith.addf %156, %157 : vector<128x128xf32>
    %159 = vector.broadcast %18 : f32 to vector<128x128xf32>
    %160 = arith.mulf %158, %159 : vector<128x128xf32>
    %161 = vector.broadcast %19 : f32 to vector<128x128xf32>
    %162 = arith.addf %160, %161 : vector<128x128xf32>
    %cst_72 = arith.constant dense<0.000000e+00> : vector<8x128xf32>
    %163 = tpu.matmul %153, %162, %cst_72 {dimension_numbers = #tpu.dot_dimension_numbers<[1], [0], [0], [1], [0, 0, 1, 1], [], []>} : vector<8x128xf32>, vector<128x128xf32>, vector<8x128xf32> -> vector<8x128xf32>
    %164 = arith.addf %152, %163 : vector<8x128xf32>
    %165 = vector.extract_strided_slice %17 {offsets = [96, 0], sizes = [8, 128], strides = [1, 1]} : vector<128x128xf32> to vector<8x128xf32>
    %c12 = arith.constant 12 : index
    %c0_73 = arith.constant 0 : index
    %c0_74 = arith.constant 0 : index
    %166 = vector.load %arg4[%c12, %c0_73, %c0_74] : memref<16x128x128xi8, #tpu.memory_space<vmem>>, vector<1x128x128xi8>
    %167 = vector.shape_cast %166 : vector<1x128x128xi8> to vector<128x128xi8>
    %168 = arith.sitofp %167 : vector<128x128xi8> to vector<128x128xf32>
    %cst_75 = arith.constant 1.280000e+02 : f32
    %169 = vector.broadcast %cst_75 : f32 to vector<128x128xf32>
    %170 = arith.addf %168, %169 : vector<128x128xf32>
    %171 = vector.broadcast %18 : f32 to vector<128x128xf32>
    %172 = arith.mulf %170, %171 : vector<128x128xf32>
    %173 = vector.broadcast %19 : f32 to vector<128x128xf32>
    %174 = arith.addf %172, %173 : vector<128x128xf32>
    %cst_76 = arith.constant dense<0.000000e+00> : vector<8x128xf32>
    %175 = tpu.matmul %165, %174, %cst_76 {dimension_numbers = #tpu.dot_dimension_numbers<[1], [0], [0], [1], [0, 0, 1, 1], [], []>} : vector<8x128xf32>, vector<128x128xf32>, vector<8x128xf32> -> vector<8x128xf32>
    %176 = arith.addf %164, %175 : vector<8x128xf32>
    %177 = vector.extract_strided_slice %17 {offsets = [104, 0], sizes = [8, 128], strides = [1, 1]} : vector<128x128xf32> to vector<8x128xf32>
    %c13 = arith.constant 13 : index
    %c0_77 = arith.constant 0 : index
    %c0_78 = arith.constant 0 : index
    %178 = vector.load %arg4[%c13, %c0_77, %c0_78] : memref<16x128x128xi8, #tpu.memory_space<vmem>>, vector<1x128x128xi8>
    %179 = vector.shape_cast %178 : vector<1x128x128xi8> to vector<128x128xi8>
    %180 = arith.sitofp %179 : vector<128x128xi8> to vector<128x128xf32>
    %cst_79 = arith.constant 1.280000e+02 : f32
    %181 = vector.broadcast %cst_79 : f32 to vector<128x128xf32>
    %182 = arith.addf %180, %181 : vector<128x128xf32>
    %183 = vector.broadcast %18 : f32 to vector<128x128xf32>
    %184 = arith.mulf %182, %183 : vector<128x128xf32>
    %185 = vector.broadcast %19 : f32 to vector<128x128xf32>
    %186 = arith.addf %184, %185 : vector<128x128xf32>
    %cst_80 = arith.constant dense<0.000000e+00> : vector<8x128xf32>
    %187 = tpu.matmul %177, %186, %cst_80 {dimension_numbers = #tpu.dot_dimension_numbers<[1], [0], [0], [1], [0, 0, 1, 1], [], []>} : vector<8x128xf32>, vector<128x128xf32>, vector<8x128xf32> -> vector<8x128xf32>
    %188 = arith.addf %176, %187 : vector<8x128xf32>
    %189 = vector.extract_strided_slice %17 {offsets = [112, 0], sizes = [8, 128], strides = [1, 1]} : vector<128x128xf32> to vector<8x128xf32>
    %c14 = arith.constant 14 : index
    %c0_81 = arith.constant 0 : index
    %c0_82 = arith.constant 0 : index
    %190 = vector.load %arg4[%c14, %c0_81, %c0_82] : memref<16x128x128xi8, #tpu.memory_space<vmem>>, vector<1x128x128xi8>
    %191 = vector.shape_cast %190 : vector<1x128x128xi8> to vector<128x128xi8>
    %192 = arith.sitofp %191 : vector<128x128xi8> to vector<128x128xf32>
    %cst_83 = arith.constant 1.280000e+02 : f32
    %193 = vector.broadcast %cst_83 : f32 to vector<128x128xf32>
    %194 = arith.addf %192, %193 : vector<128x128xf32>
    %195 = vector.broadcast %18 : f32 to vector<128x128xf32>
    %196 = arith.mulf %194, %195 : vector<128x128xf32>
    %197 = vector.broadcast %19 : f32 to vector<128x128xf32>
    %198 = arith.addf %196, %197 : vector<128x128xf32>
    %cst_84 = arith.constant dense<0.000000e+00> : vector<8x128xf32>
    %199 = tpu.matmul %189, %198, %cst_84 {dimension_numbers = #tpu.dot_dimension_numbers<[1], [0], [0], [1], [0, 0, 1, 1], [], []>} : vector<8x128xf32>, vector<128x128xf32>, vector<8x128xf32> -> vector<8x128xf32>
    %200 = arith.addf %188, %199 : vector<8x128xf32>
    %201 = vector.extract_strided_slice %17 {offsets = [120, 0], sizes = [8, 128], strides = [1, 1]} : vector<128x128xf32> to vector<8x128xf32>
    %c15 = arith.constant 15 : index
    %c0_85 = arith.constant 0 : index
    %c0_86 = arith.constant 0 : index
    %202 = vector.load %arg4[%c15, %c0_85, %c0_86] : memref<16x128x128xi8, #tpu.memory_space<vmem>>, vector<1x128x128xi8>
    %203 = vector.shape_cast %202 : vector<1x128x128xi8> to vector<128x128xi8>
    %204 = arith.sitofp %203 : vector<128x128xi8> to vector<128x128xf32>
    %cst_87 = arith.constant 1.280000e+02 : f32
    %205 = vector.broadcast %cst_87 : f32 to vector<128x128xf32>
    %206 = arith.addf %204, %205 : vector<128x128xf32>
    %207 = vector.broadcast %18 : f32 to vector<128x128xf32>
    %208 = arith.mulf %206, %207 : vector<128x128xf32>
    %209 = vector.broadcast %19 : f32 to vector<128x128xf32>
    %210 = arith.addf %208, %209 : vector<128x128xf32>
    %cst_88 = arith.constant dense<0.000000e+00> : vector<8x128xf32>
    %211 = tpu.matmul %201, %210, %cst_88 {dimension_numbers = #tpu.dot_dimension_numbers<[1], [0], [0], [1], [0, 0, 1, 1], [], []>} : vector<8x128xf32>, vector<128x128xf32>, vector<8x128xf32> -> vector<8x128xf32>
    %212 = arith.addf %200, %211 : vector<8x128xf32>
    %c0_89 = arith.constant 0 : index
    %c0_90 = arith.constant 0 : index
    %213 = vector.load %arg6[%c0_89, %c0_90] : memref<1x128xf32, #tpu.memory_space<vmem>>, vector<1x128xf32>
    %214 = vector.broadcast %213 : vector<1x128xf32> to vector<8x128xf32>
    %215 = arith.addf %212, %214 : vector<8x128xf32>
    %c0_91 = arith.constant 0 : index
    %c0_92 = arith.constant 0 : index
    %216 = vector.load %arg7[%c0_91, %c0_92] : memref<8x128xf32, #tpu.memory_space<vmem>>, vector<8x128xf32>
    tpu.vector_store %arg7[%c0_91, %c0_92], %215 {strides = array<i32>} : memref<8x128xf32, #tpu.memory_space<vmem>>, vector<8x128xf32>,
    return
  }
  func.func @transform_0(%arg0: i32) -> (i32, i32) {
    %c0_i32 = arith.constant 0 : i32
    %c0_i32_0 = arith.constant 0 : i32
    %c0_i32_1 = arith.constant 0 : i32
    return %c0_i32, %c0_i32_0 : i32, i32
  }
  func.func @transform_1(%arg0: i32) -> (i32, i32) {
    %c0_i32 = arith.constant 0 : i32
    %c0_i32_0 = arith.constant 0 : i32
    %c0_i32_1 = arith.constant 0 : i32
    return %c0_i32, %c0_i32_0 : i32, i32
  }
  func.func @transform_2(%arg0: i32) -> (i32, i32) {
    %c0_i32 = arith.constant 0 : i32
    %c0_i32_0 = arith.constant 0 : i32
    %c0_i32_1 = arith.constant 0 : i32
    return %c0_i32, %c0_i32_0 : i32, i32
  }
  func.func @transform_3(%arg0: i32) -> (i32, i32, i32) {
    %c0_i32 = arith.constant 0 : i32
    %c0_i32_0 = arith.constant 0 : i32
    %c0_i32_1 = arith.constant 0 : i32
    %c0_i32_2 = arith.constant 0 : i32
    return %c0_i32, %c0_i32_0, %c0_i32_1 : i32, i32, i32
  }
  func.func @transform_4(%arg0: i32) -> i32 {
    %c0_i32 = arith.constant 0 : i32
    %c0_i32_0 = arith.constant 0 : i32
    return %c0_i32 : i32
  }
  func.func @transform_5(%arg0: i32) -> (i32, i32) {
    %c0_i32 = arith.constant 0 : i32
    %c0_i32_0 = arith.constant 0 : i32
    %c0_i32_1 = arith.constant 0 : i32
    return %c0_i32, %c0_i32_0 : i32, i32
  }
  func.func @transform_6(%arg0: i32) -> (i32, i32) {
    %c0_i32 = arith.constant 0 : i32
    %c0_i32_0 = arith.constant 0 : i32
    %c0_i32_1 = arith.constant 0 : i32
    return %c0_i32, %c0_i32_0 : i32, i32
  }
}

</mosaic_0001>

<bundles_post_ra>
// kernel: quantized_model_forward.1
= control target key start
LH: loop header
LB: loop body
LE: loop exit
PB: predicated region body
PF: predicated region fallthrough
CT: control target
= control target key end

     0   :  { %11 = vsyncpa [#allocation4], 0  ;;  %s6342_s0 = inlined_call_operand.vmem [shape: f32[128,64], index: 0, kind: input, shape index: {}]   ;;  %s6343_s1 = inlined_call_operand.hbm [shape: f32[192,128], index: 1, kind: input, shape index: {}]   ;;  %s6344_s2 = inlined_call_operand.vmem [shape: f32[1,128], index: 2, kind: input, shape index: {}]   ;;  %s6345_s3 = inlined_call_operand.vmem [shape: s8[16,128,128], index: 3, kind: input, shape index: {}]   ;;  %s6346_s4 = inlined_call_operand.vmem [shape: f32[2], index: 4, kind: input, shape index: {}]   ;;  %s6347_s5 = inlined_call_operand.vmem [shape: f32[1,128], index: 5, kind: input, shape index: {}]   ;;  %s6348_s6 = inlined_call_operand.vmem [shape: f32[8,128], index: 6, kind: output, shape index: {}]  }
   0x1   :  { %12 = vsyncpa [#allocation5], 0  ;;  %s4373_s21 = smov [#allocation3]   ;;  %s37_s25 = sshll.u32 %s6346_s4, 4  ;;  %s38_s25 = int_to_ptr.vmem [resolvable:$true] %s37_s25 }
   0x2   :  { %s20_s22 = sshll.u32 %s4373_s21, 4  ;;  %s4335_s28 = scalar_lea.hbm %s6343_s1, 3072  ;;  %s21_s22 = int_to_ptr.vmem [resolvable:$true] %s20_s22 }
   0x3   :  { %p4336_p0 = scmp.ne.s32.totalorder %s6343_s1, %s4335_s28  ;;  %p4339_p1 = scmp.lt.u32.totalorder %s4335_s28, %s6343_s1 }
   0x5   :  { %p4341_p2 = pnand %p4339_p1, %p4336_p0 }
   0x7   :  { %4344 = shalt.err (!%p4341_p2)
}
   0x8   :  { %s4345_s9 = scalar_lea.vmem %s21_s22, 3072  ;;  %p4350_p4 = scmp.lt.s32.totalorder %s21_s22, %s21_s22 }
   0x9   :  { %p4346_p3 = scmp.ne.s32.totalorder %s21_s22, %s4345_s9  ;;  %p4351_p5 = scmp.lt.s32.totalorder %s4345_s9, %s4345_s9 }
   0xb   :  { %p4352_p6 = por %p4351_p5, %p4350_p4 }
   0xd   :  { %p4353_p7 = pnand %p4352_p6, %p4346_p3 }
   0xf   :  { %4356 = shalt.err (!%p4353_p7)
}
  0x10   :  { %s4374_s4 = smov 128   ;;  %s4375_s10 = smov 8  }
  0x11   :  { %26 = dma.hbm_to_vmem [thread:$0]  %s6343_s1, 3072, %s21_s22, [#allocation4], %s4374_s4, %s4374_s4, %s4375_s10  }
  0x12   :  { %s4357_s13 = scalar_lea.vmem %s38_s25, 16  ;;  %p4362_p9 = scmp.lt.s32.totalorder %s38_s25, %s38_s25 }
  0x13   :  { %p4358_p8 = scmp.ne.s32.totalorder %s38_s25, %s4357_s13  ;;  %p4363_p10 = scmp.lt.s32.totalorder %s4357_s13, %s4357_s13 }
  0x15   :  { %p4364_p11 = por %p4363_p10, %p4362_p9 }
  0x17   :  { %p4365_p12 = pnand %p4364_p11, %p4358_p8 }
  0x19   :  { %4368 = shalt.err (!%p4365_p12)
}
  0x1a   :  { %s4376_s14 = smov [#allocation6]  }
  0x1b   :  { %40 = dma.vmem_to_smem %s38_s25, 16, %s4376_s14, [#allocation5]  }
  0x1c   :  { %4369 = dma.done.wait [#allocation4], 3072  }
  0x1d   :  { %4370 = vsyncadd [#allocation4], 4294964224 }
  0x1e   :  { %4371 = dma.done.wait [#allocation5], 16  }
  0x1f   :  { %4372 = vsyncadd [#allocation5], 4294967280 }
  0x20   :  { %49 = sfence }
  0x21   :  { %v82_v0 = vld [vmem:[%s6342_s0] sm:$0xff]  ;;  %v83_v1 = vld [vmem:[%s6342_s0 + $0x8] sm:$0xff]  ;;  %v84_v2 = vld [vmem:[%s6342_s0 + $0x10] sm:$0xff]  ;;  %s4377_s20 = smov 64   ;;  %vm50_vm0 = vcmask 523264   ;;  %v6349_v6 = vmov 0.0|0.0  }
  0x22   :  { %114 = vrot.lane.b32.xlu0 %v82_v0, %s4377_s20  ;;  %118 = vrot.lane.b32.xlu1 %v84_v2, %s4377_s20  ;;  %v85_v3 = vld [vmem:[%s6342_s0 + $0x18] sm:$0xff]  ;;  %v242_v4 = vld [vmem:[#allocation3] sm:$0xff]  ;;  %v243_v5 = vld [vmem:[#allocation3 + $0x8] sm:$0xff]  ;;  %v6351_v10 = vmov 0.0   ;;  %67 = vst.msk [vmem:[#allocation2 + $0x10] sm:$0xff] %vm50_vm0, %v82_v0  ;;  %s3011_s22 = sld [smem:[#allocation6 + $0x1]] }
  0x23   :  { %3905 = vmatprep.subr.bf16.mxu0 %v6349_v6  ;;  %v3906_v7 = vpack.c.bf16 %v243_v5, %v242_v4  ;;  %v244_v8 = vld [vmem:[#allocation3 + $0x10] sm:$0xff]  ;;  %v245_v9 = vld [vmem:[#allocation3 + $0x18] sm:$0xff]  ;;  %51 = vst.msk [vmem:[#allocation2] sm:$0xff] %vm50_vm0, %v6351_v10  ;;  %209 = vst.msk [vmem:[#allocation2 + $0xf8] sm:$0xff] %vm50_vm0, %v6351_v10  ;;  %3941 = vmatprep.subr.bf16.mxu1 %v6349_v6  ;;  %vm162_vm1 = vcmask 1048064   ;;  %vm4380_vm2 = vmmov 0  }
  0x24   :  { %194 = vst.msk [vmem:[#allocation2 + $0x8] sm:$0xff] %vm50_vm0, %v83_v1  ;;  %195 = vst.msk [vmem:[#allocation2 + $0x18] sm:$0xff] %vm50_vm0, %v84_v2  ;;  %v3909_v11 = vpack.c.bf16 %v245_v9, %v244_v8  ;;  %v246_v12 = vld [vmem:[#allocation3 + $0x20] sm:$0xff]  ;;  %v247_v13 = vld [vmem:[#allocation3 + $0x28] sm:$0xff]  ;;  %3377 = vmatprep.mubr.msk.f32.mxu1 %vm4380_vm2, %v6351_v10 }
  0x25   :  { %68 = vst.msk [vmem:[#allocation2 + $0x20] sm:$0xff] %vm50_vm0, %v83_v1  ;;  %69 = vst.msk [vmem:[#allocation2 + $0x30] sm:$0xff] %vm50_vm0, %v84_v2  ;;  %3907 = vmatpush1.bf16.msra.mxu0 %v3906_v7  ;;  %v86_v14 = vld [vmem:[%s6342_s0 + $0x20] sm:$0xff]  ;;  %v87_v15 = vld [vmem:[%s6342_s0 + $0x28] sm:$0xff]  ;;  %v3912_v16 = vpack.c.bf16 %v247_v13, %v246_v12 }
  0x26   :  { %196 = vst.msk [vmem:[#allocation2 + $0x28] sm:$0xff] %vm50_vm0, %v85_v3  ;;  %70 = vst.msk [vmem:[#allocation2 + $0x40] sm:$0xff] %vm50_vm0, %v85_v3  ;;  %116 = vrot.lane.b32.xlu0 %v83_v1, %s4377_s20  ;;  %120 = vrot.lane.b32.xlu1 %v85_v3, %s4377_s20  ;;  %v248_v17 = vld [vmem:[#allocation3 + $0x30] sm:$0xff]  ;;  %v249_v18 = vld [vmem:[#allocation3 + $0x38] sm:$0xff] }
  0x27   :  { %3908 = vmatprep.subr.bf16.mxu0 %v6349_v6  ;;  %197 = vst.msk [vmem:[#allocation2 + $0x38] sm:$0xff] %vm50_vm0, %v86_v14  ;;  %71 = vst.msk [vmem:[#allocation2 + $0x50] sm:$0xff] %vm50_vm0, %v86_v14  ;;  %v88_v20 = vld [vmem:[%s6342_s0 + $0x30] sm:$0xff]  ;;  %v89_v21 = vld [vmem:[%s6342_s0 + $0x38] sm:$0xff]  ;;  %v3915_v24 = vpack.c.bf16 %v249_v18, %v248_v17 }
  0x28   :  { %198 = vst.msk [vmem:[#allocation2 + $0x48] sm:$0xff] %vm50_vm0, %v87_v15  ;;  %72 = vst.msk [vmem:[#allocation2 + $0x60] sm:$0xff] %vm50_vm0, %v87_v15  ;;  %v90_v22 = vld [vmem:[%s6342_s0 + $0x40] sm:$0xff]  ;;  %v91_v23 = vld [vmem:[%s6342_s0 + $0x48] sm:$0xff]  ;;  %v4555_v7 = vstv %s3011_s22 }
  0x29   :  { %3910 = vmatpush1.bf16.msra.mxu0 %v3909_v11  ;;  %199 = vst.msk [vmem:[#allocation2 + $0x58] sm:$0xff] %vm50_vm0, %v88_v20  ;;  %73 = vst.msk [vmem:[#allocation2 + $0x70] sm:$0xff] %vm50_vm0, %v88_v20  ;;  %v92_v25 = vld [vmem:[%s6342_s0 + $0x50] sm:$0xff]  ;;  %v93_v26 = vld [vmem:[%s6342_s0 + $0x58] sm:$0xff] }
  0x2a   :  { %3911 = vmatprep.subr.bf16.mxu0 %v6349_v6  ;;  %122 = vrot.lane.b32.xlu0 %v86_v14, %s4377_s20  ;;  %200 = vst.msk [vmem:[#allocation2 + $0x68] sm:$0xff] %vm50_vm0, %v89_v21  ;;  %201 = vst.msk [vmem:[#allocation2 + $0x78] sm:$0xff] %vm50_vm0, %v90_v22  ;;  %v250_v27 = vld [vmem:[#allocation3 + $0x40] sm:$0xff]  ;;  %v251_v28 = vld [vmem:[#allocation3 + $0x48] sm:$0xff] }
  0x2b   :  { %124 = vrot.lane.b32.xlu1 %v87_v15, %s4377_s20  ;;  %v211_v19 = vld [vmem:[#allocation2 + $0x8] sm:$0xff]  ;;  %74 = vst.msk [vmem:[#allocation2 + $0x80] sm:$0xff] %vm50_vm0, %v89_v21  ;;  %75 = vst.msk [vmem:[#allocation2 + $0x90] sm:$0xff] %vm50_vm0, %v90_v22  ;;  %v3918_v29 = vpack.c.bf16 %v251_v28, %v250_v27  ;;  %v94_v30 = vld [vmem:[%s6342_s0 + $0x60] sm:$0xff] }
  0x2c   :  { %2995 = vmatprep.mubr.msk.f32.mxu0 %vm50_vm0, %v211_v19  ;;  %202 = vst.msk [vmem:[#allocation2 + $0x88] sm:$0xff] %vm50_vm0, %v91_v23  ;;  %76 = vst.msk [vmem:[#allocation2 + $0xa0] sm:$0xff] %vm50_vm0, %v91_v23  ;;  %v95_v31 = vld [vmem:[%s6342_s0 + $0x68] sm:$0xff]  ;;  %v252_v32 = vld [vmem:[#allocation3 + $0x50] sm:$0xff] }
  0x2d   :  { %3913 = vmatpush1.bf16.msra.mxu0 %v3912_v16  ;;  %203 = vst.msk [vmem:[#allocation2 + $0x98] sm:$0xff] %vm50_vm0, %v92_v25  ;;  %77 = vst.msk [vmem:[#allocation2 + $0xb0] sm:$0xff] %vm50_vm0, %v92_v25  ;;  %v253_v33 = vld [vmem:[#allocation3 + $0x58] sm:$0xff]  ;;  %v254_v35 = vld [vmem:[#allocation3 + $0x60] sm:$0xff] }
  0x2e   :  { %3914 = vmatprep.subr.bf16.mxu0 %v6349_v6  ;;  %126 = vrot.lane.b32.xlu0 %v88_v20, %s4377_s20  ;;  %204 = vst.msk [vmem:[#allocation2 + $0xa8] sm:$0xff] %vm50_vm0, %v93_v26  ;;  %78 = vst.msk [vmem:[#allocation2 + $0xc0] sm:$0xff] %vm50_vm0, %v93_v26  ;;  %v3921_v34 = vpack.c.bf16 %v253_v33, %v252_v32  ;;  %v255_v36 = vld [vmem:[#allocation3 + $0x68] sm:$0xff]  ;;  %v96_v37 = vld [vmem:[%s6342_s0 + $0x70] sm:$0xff] }
  0x2f   :  { %128 = vrot.lane.b32.xlu1 %v89_v21, %s4377_s20  ;;  %205 = vst.msk [vmem:[#allocation2 + $0xb8] sm:$0xff] %vm50_vm0, %v94_v30  ;;  %79 = vst.msk [vmem:[#allocation2 + $0xd0] sm:$0xff] %vm50_vm0, %v94_v30  ;;  %v3924_v38 = vpack.c.bf16 %v255_v36, %v254_v35  ;;  %v97_v39 = vld [vmem:[%s6342_s0 + $0x78] sm:$0xff]  ;;  %v256_v40 = vld [vmem:[#allocation3 + $0x70] sm:$0xff]  ;;  %s482_s0 = sld [smem:[#allocation6]] }
  0x30   :  { %206 = vst.msk [vmem:[#allocation2 + $0xc8] sm:$0xff] %vm50_vm0, %v95_v31  ;;  %80 = vst.msk [vmem:[#allocation2 + $0xe0] sm:$0xff] %vm50_vm0, %v95_v31  ;;  %v257_v41 = vld [vmem:[#allocation3 + $0x78] sm:$0xff]  ;;  %v258_v43 = vld [vmem:[#allocation3 + $0x80] sm:$0xff] }
  0x31   :  { %3916 = vmatpush1.bf16.msra.mxu0 %v3915_v24  ;;  %207 = vst.msk [vmem:[#allocation2 + $0xd8] sm:$0xff] %vm50_vm0, %v96_v37  ;;  %81 = vst.msk [vmem:[#allocation2 + $0xf0] sm:$0xff] %vm50_vm0, %v96_v37  ;;  %v3927_v42 = vpack.c.bf16 %v257_v41, %v256_v40  ;;  %v259_v44 = vld [vmem:[#allocation3 + $0x88] sm:$0xff]  ;;  %v260_v45 = vld [vmem:[#allocation3 + $0x90] sm:$0xff] }
  0x32   :  { %3917 = vmatprep.subr.bf16.mxu0 %v6349_v6  ;;  %130 = vrot.lane.b32.xlu0 %v90_v22, %s4377_s20  ;;  %208 = vst.msk [vmem:[#allocation2 + $0xe8] sm:$0xff] %vm50_vm0, %v97_v39  ;;  %v261_v46 = vld [vmem:[#allocation3 + $0x98] sm:$0xff]  ;;  %v3930_v47 = vpack.c.bf16 %v259_v44, %v258_v43  ;;  %v262_v48 = vld [vmem:[#allocation3 + $0xa0] sm:$0xff]  ;;  %v263_v50 = vld [vmem:[#allocation3 + $0xa8] sm:$0xff] }
  0x33   :  { %132 = vrot.lane.b32.xlu1 %v91_v23, %s4377_s20  ;;  %v3012_v49 = vld [vmem:[%s6345_s3 + $0x20] sm:$0xff]  ;;  %v4543_v51 = vld [vmem:[#allocation3 + $0xb0] sm:$0xff]  ;;  %v4545_v52 = vld [vmem:[#allocation3 + $0xb8] sm:$0xff]  ;;  %v3933_v61 = vpack.c.bf16 %v261_v46, %v260_v45  ;;  %v3936_v62 = vpack.c.bf16 %v263_v50, %v262_v48 }
  0x34   :  { %v575_v53 = vunpack.c.0.s8 %v3012_v49  ;;  %v576_v54 = vunpack.c.1.s8 %v3012_v49  ;;  %v577_v55 = vunpack.c.2.s8 %v3012_v49  ;;  %v578_v56 = vunpack.c.3.s8 %v3012_v49  ;;  %v3013_v4 = vld [vmem:[%s6345_s3 + $0x28] sm:$0xff]  ;;  %v3014_v19 = vld [vmem:[%s6345_s3 + $0x30] sm:$0xff] }
  0x35   :  { %3919 = vmatpush1.bf16.msra.mxu0 %v3918_v29  ;;  %v3939_v63 = vpack.c.bf16 %v4545_v52, %v4543_v51  ;;  %v4553_v5 = vstv %s482_s0  ;;  %v579_v8 = vunpack.c.0.s8 %v3013_v4  ;;  %v580_v9 = vunpack.c.1.s8 %v3013_v4 }
  0x36   :  { %3920 = vmatprep.subr.bf16.mxu0 %v6349_v6  ;;  %134 = vrot.lane.b32.xlu0 %v92_v25, %s4377_s20  ;;  %v591_v57 = vcvt.s32.f32 %v575_v53  ;;  %v592_v58 = vcvt.s32.f32 %v576_v54  ;;  %v593_v59 = vcvt.s32.f32 %v577_v55  ;;  %v594_v60 = vcvt.s32.f32 %v578_v56 }
  0x37   :  { %136 = vrot.lane.b32.xlu1 %v93_v26, %s4377_s20  ;;  %v595_v15 = vcvt.s32.f32 %v579_v8  ;;  %v596_v16 = vcvt.s32.f32 %v580_v9  ;;  %v581_v17 = vunpack.c.2.s8 %v3013_v4  ;;  %v582_v18 = vunpack.c.3.s8 %v3013_v4  ;;  %v213_v4 = vld [vmem:[#allocation2 + $0x18] sm:$0xff] }
  0x38   :  { %v607_v0 = vadd.f32 128.0, %v591_v57  ;;  %v608_v1 = vadd.f32 128.0, %v592_v58  ;;  %v609_v2 = vadd.f32 128.0, %v593_v59  ;;  %v610_v3 = vadd.f32 128.0, %v594_v60 }
  0x39   :  { %3922 = vmatpush1.bf16.msra.mxu0 %v3921_v34  ;;  %v611_v24 = vadd.f32 128.0, %v595_v15  ;;  %v612_v25 = vadd.f32 128.0, %v596_v16  ;;  %v597_v26 = vcvt.s32.f32 %v581_v17  ;;  %v598_v27 = vcvt.s32.f32 %v582_v18  ;;  %v217_v17 = vld [vmem:[#allocation2 + $0x38] sm:$0xff] }
  0x3a   :  { %3923 = vmatprep.subr.bf16.mxu0 %v6349_v6  ;;  %138 = vrot.lane.b32.xlu0 %v94_v30, %s4377_s20  ;;  %v623_v11 = vmul.f32 %v607_v0, %v4553_v5  ;;  %v624_v12 = vmul.f32 %v608_v1, %v4553_v5  ;;  %v625_v13 = vmul.f32 %v609_v2, %v4553_v5  ;;  %v583_v30 = vunpack.c.0.s8 %v3014_v19 }
  0x3b   :  { %140 = vrot.lane.b32.xlu1 %v95_v31, %s4377_s20  ;;  %v626_v14 = vmul.f32 %v610_v3, %v4553_v5  ;;  %v584_v31 = vunpack.c.1.s8 %v3014_v19  ;;  %v627_v32 = vmul.f32 %v611_v24, %v4553_v5  ;;  %v628_v33 = vmul.f32 %v612_v25, %v4553_v5  ;;  %v221_v25 = vld [vmem:[#allocation2 + $0x58] sm:$0xff] }
  0x3c   :  { %v639_v20 = vadd.f32 %v623_v11, %v4555_v7  ;;  %v640_v21 = vadd.f32 %v624_v12, %v4555_v7  ;;  %v641_v22 = vadd.f32 %v625_v13, %v4555_v7  ;;  %v613_v34 = vadd.f32 128.0, %v597_v26  ;;  %v215_v12 = vld [vmem:[#allocation2 + $0x28] sm:$0xff] }
  0x3d   :  { %3925 = vmatpush1.bf16.msra.mxu0 %v3924_v38  ;;  %v642_v23 = vadd.f32 %v626_v14, %v4555_v7  ;;  %v614_v35 = vadd.f32 128.0, %v598_v27  ;;  %v599_v36 = vcvt.s32.f32 %v583_v30  ;;  %v585_v38 = vunpack.c.2.s8 %v3014_v19  ;;  %v223_v27 = vld [vmem:[#allocation2 + $0x68] sm:$0xff] }
  0x3e   :  { %3926 = vmatprep.subr.bf16.mxu0 %v6349_v6  ;;  %142 = vrot.lane.b32.xlu0 %v96_v37, %s4377_s20  ;;  %v3942_v28 = vpack.c.bf16 %v640_v21, %v639_v20  ;;  %v600_v37 = vcvt.s32.f32 %v584_v31  ;;  %v643_v40 = vadd.f32 %v627_v32, %v4555_v7  ;;  %v644_v41 = vadd.f32 %v628_v33, %v4555_v7  ;;  %v219_v21 = vld [vmem:[#allocation2 + $0x48] sm:$0xff]  ;;  %v229_v33 = vld [vmem:[#allocation2 + $0x98] sm:$0xff] }
  0x3f   :  { %144 = vrot.lane.b32.xlu1 %v97_v39, %s4377_s20  ;;  %v3945_v29 = vpack.c.bf16 %v642_v23, %v641_v22  ;;  %v586_v39 = vunpack.c.3.s8 %v3014_v19  ;;  %v630_v43 = vmul.f32 %v614_v35, %v4553_v5  ;;  %v615_v44 = vadd.f32 128.0, %v599_v36  ;;  %v227_v31 = vld [vmem:[#allocation2 + $0x88] sm:$0xff] }
  0x40   :  { %3943 = vmatpush3.bf16.msra.mxu1 %v3942_v28  ;;  %v616_v45 = vadd.f32 128.0, %v600_v37  ;;  %v601_v46 = vcvt.s32.f32 %v585_v38  ;;  %v3948_v48 = vpack.c.bf16 %v644_v41, %v643_v40  ;;  %v231_v35 = vld [vmem:[#allocation2 + $0xa8] sm:$0xff]  ;;  %v233_v37 = vld [vmem:[#allocation2 + $0xb8] sm:$0xff] }
  0x41   :  { %3928 = vmatpush1.bf16.msra.mxu0 %v3927_v42  ;;  %3944 = vmatprep.subr.bf16.mxu1 %v6349_v6  ;;  %v629_v42 = vmul.f32 %v613_v34, %v4553_v5  ;;  %v646_v50 = vadd.f32 %v630_v43, %v4555_v7  ;;  %v631_v51 = vmul.f32 %v615_v44, %v4553_v5 }
  0x42   :  { %3929 = vmatprep.subr.bf16.mxu0 %v6349_v6  ;;  %v632_v52 = vmul.f32 %v616_v45, %v4553_v5  ;;  %v617_v53 = vadd.f32 128.0, %v601_v46 }
  0x43   :  { %v645_v49 = vadd.f32 %v629_v42, %v4555_v7  ;;  %v647_v56 = vadd.f32 %v631_v51, %v4555_v7 }
  0x44   :  { %3946 = vmatpush3.bf16.msra.mxu1 %v3945_v29  ;;  %v648_v57 = vadd.f32 %v632_v52, %v4555_v7  ;;  %v633_v58 = vmul.f32 %v617_v53, %v4553_v5  ;;  %v225_v29 = vld [vmem:[#allocation2 + $0x78] sm:$0xff] }
  0x45   :  { %3931 = vmatpush1.bf16.msra.mxu0 %v3930_v47  ;;  %v602_v47 = vcvt.s32.f32 %v586_v39  ;;  %3947 = vmatprep.subr.bf16.mxu1 %v6349_v6  ;;  %v3951_v55 = vpack.c.bf16 %v646_v50, %v645_v49  ;;  %v3015_v39 = vld [vmem:[%s6345_s3 + $0x38] sm:$0xff] }
  0x46   :  { %3932 = vmatprep.subr.bf16.mxu0 %v6349_v6  ;;  %v3954_v60 = vpack.c.bf16 %v648_v57, %v647_v56  ;;  %v587_v40 = vunpack.c.0.s8 %v3015_v39  ;;  %v588_v41 = vunpack.c.1.s8 %v3015_v39  ;;  %v589_v46 = vunpack.c.2.s8 %v3015_v39 }
  0x47   :  { %v618_v54 = vadd.f32 128.0, %v602_v47  ;;  %v590_v47 = vunpack.c.3.s8 %v3015_v39 }
  0x48   :  { %3949 = vmatpush3.bf16.msra.mxu1 %v3948_v48  ;;  %v603_v42 = vcvt.s32.f32 %v587_v40  ;;  %v604_v43 = vcvt.s32.f32 %v588_v41  ;;  %v605_v50 = vcvt.s32.f32 %v589_v46 }
  0x49   :  { %3934 = vmatpush1.bf16.msra.mxu0 %v3933_v61  ;;  %v634_v59 = vmul.f32 %v618_v54, %v4553_v5  ;;  %3950 = vmatprep.subr.bf16.mxu1 %v6349_v6  ;;  %v649_v61 = vadd.f32 %v633_v58, %v4555_v7  ;;  %v606_v51 = vcvt.s32.f32 %v590_v47 }
  0x4a   :  { %3935 = vmatprep.subr.bf16.mxu0 %v6349_v6  ;;  %v619_v44 = vadd.f32 128.0, %v603_v42  ;;  %v620_v45 = vadd.f32 128.0, %v604_v43  ;;  %v621_v54 = vadd.f32 128.0, %v605_v50 }
  0x4c   :  { %3952 = vmatpush3.bf16.msra.mxu1 %v3951_v55  ;;  %v635_v48 = vmul.f32 %v619_v44, %v4553_v5  ;;  %v636_v49 = vmul.f32 %v620_v45, %v4553_v5  ;;  %v622_v55 = vadd.f32 128.0, %v606_v51  ;;  %v637_v57 = vmul.f32 %v621_v54, %v4553_v5 }
  0x4d   :  { %3937 = vmatpush1.bf16.msra.mxu0 %v3936_v62  ;;  %v650_v62 = vadd.f32 %v634_v59, %v4555_v7  ;;  %3953 = vmatprep.subr.bf16.mxu1 %v6349_v6 }
  0x4e   :  { %3938 = vmatprep.subr.bf16.mxu0 %v6349_v6  ;;  %v651_v52 = vadd.f32 %v635_v48, %v4555_v7  ;;  %v652_v53 = vadd.f32 %v636_v49, %v4555_v7  ;;  %v638_v58 = vmul.f32 %v622_v55, %v4553_v5  ;;  %v653_v59 = vadd.f32 %v637_v57, %v4555_v7  ;;  %v485_v48 = vld [vmem:[%s6345_s3 + $0x8] sm:$0xff] }
  0x4f   :  { %v493_v57 = vunpack.c.1.s8 %v485_v48 }
  0x50   :  { %3955 = vmatpush3.bf16.msra.mxu1 %v3954_v60  ;;  %v3960_v56 = vpack.c.bf16 %v652_v53, %v651_v52  ;;  %v654_v60 = vadd.f32 %v638_v58, %v4555_v7 }
  0x51   :  { %3940 = vmatpush1.bf16.msra.mxu0 %v3939_v63  ;;  %v3957_v63 = vpack.c.bf16 %v650_v62, %v649_v61  ;;  %3956 = vmatprep.subr.bf16.mxu1 %v6349_v6 }
  0x52   :  { %4013 = vmatprep.subr.bf16.mxu0 %v6349_v6  ;;  %v3963_v61 = vpack.c.bf16 %v654_v60, %v653_v59 }
  0x54   :  { %3958 = vmatpush3.bf16.msra.mxu1 %v3957_v63 }
  0x55   :  { %3959 = vmatprep.subr.bf16.mxu1 %v6349_v6 }
  0x58   :  { %3961 = vmatpush3.bf16.msra.mxu1 %v3960_v56  ;;  %v492_v56 = vunpack.c.0.s8 %v485_v48 }
  0x59   :  { %3962 = vmatprep.subr.bf16.mxu1 %v6349_v6 }
  0x5c   :  { %3964 = vmatpush3.bf16.msra.mxu1 %v3963_v61 }
  0x5d   :  { %3965 = vmatprep.subr.bf16.mxu1 %v6349_v6 }
  0x94   :  { %v115_v0 = vpop.permute.xlu0 %114  ;;  %v119_v1 = vpop.permute.xlu1 %118 }
  0x95   :  { %163 = vst.msk [vmem:[#allocation2] sm:$0xff] %vm162_vm1, %v115_v0  ;;  %165 = vst.msk [vmem:[#allocation2 + $0x20] sm:$0xff] %vm162_vm1, %v119_v1  ;;  %v3020_v0 = vld [vmem:[%s6345_s3 + $0x60] sm:$0xff] }
  0x96   :  { %v956_v1 = vunpack.c.0.s8 %v3020_v0 }
  0x98   :  { %v117_v2 = vpop.permute.xlu0 %116  ;;  %v121_v3 = vpop.permute.xlu1 %120 }
  0x99   :  { %164 = vst.msk [vmem:[#allocation2 + $0x10] sm:$0xff] %vm162_vm1, %v117_v2  ;;  %166 = vst.msk [vmem:[#allocation2 + $0x30] sm:$0xff] %vm162_vm1, %v121_v3  ;;  %v957_v2 = vunpack.c.1.s8 %v3020_v0  ;;  %v235_v3 = vld [vmem:[#allocation2 + $0xc8] sm:$0xff] }
  0x9c   :  { %v210_v8 = vld [vmem:[#allocation2] sm:$0xff]  ;;  %v123_v9 = vpop.permute.xlu0 %122 }
  0x9d   :  { %386 = vmatmul.mubr.f32.vlgmr.msra.gmra.mrb[0].mxu0 %v210_v8  ;;  %167 = vst.msk [vmem:[#allocation2 + $0x40] sm:$0xff] %vm162_vm1, %v123_v9  ;;  %v125_v11 = vpop.permute.xlu1 %124  ;;  %v214_v16 = vld [vmem:[#allocation2 + $0x20] sm:$0xff]  ;;  %v973_v8 = vcvt.s32.f32 %v957_v2 }
  0x9e   :  { %2996 = vmatprep.mubr.msk.f32.mxu0 %vm50_vm0, %v213_v4  ;;  %168 = vst.msk [vmem:[#allocation2 + $0x50] sm:$0xff] %vm162_vm1, %v125_v11  ;;  %v972_v4 = vcvt.s32.f32 %v956_v1 }
  0xa0   :  { %v212_v13 = vld [vmem:[#allocation2 + $0x10] sm:$0xff]  ;;  %v127_v14 = vpop.permute.xlu0 %126  ;;  %v988_v11 = vadd.f32 128.0, %v972_v4  ;;  %v509_v4 = vcvt.s32.f32 %v493_v57 }
  0xa1   :  { %391 = vmatmul.mubr.f32.gmra.mrb[2].mxu0 %v212_v13  ;;  %169 = vst.msk [vmem:[#allocation2 + $0x60] sm:$0xff] %vm162_vm1, %v127_v14  ;;  %v129_v15 = vpop.permute.xlu1 %128  ;;  %v216_v20 = vld [vmem:[#allocation2 + $0x30] sm:$0xff]  ;;  %v237_v13 = vld [vmem:[#allocation2 + $0xd8] sm:$0xff] }
  0xa2   :  { %2997 = vmatprep.mubr.msk.f32.mxu0 %vm50_vm0, %v215_v12  ;;  %170 = vst.msk [vmem:[#allocation2 + $0x70] sm:$0xff] %vm162_vm1, %v129_v15  ;;  %v989_v12 = vadd.f32 128.0, %v973_v8  ;;  %v1004_v14 = vmul.f32 %v988_v11, %v4553_v5  ;;  %v3022_v11 = vld [vmem:[%s6345_s3 + $0x70] sm:$0xff] }
  0xa4   :  { %v131_v18 = vpop.permute.xlu0 %130  ;;  %v218_v24 = vld [vmem:[#allocation2 + $0x40] sm:$0xff]  ;;  %v1005_v15 = vmul.f32 %v989_v12, %v4553_v5  ;;  %v239_v12 = vld [vmem:[#allocation2 + $0xe8] sm:$0xff] }
  0xa5   :  { %396 = vmatmul.mubr.f32.gmra.mrb[4].mxu0 %v214_v16  ;;  %171 = vst.msk [vmem:[#allocation2 + $0x80] sm:$0xff] %vm162_vm1, %v131_v18  ;;  %v133_v19 = vpop.permute.xlu1 %132  ;;  %v220_v26 = vld [vmem:[#allocation2 + $0x50] sm:$0xff]  ;;  %v959_v18 = vunpack.c.3.s8 %v3020_v0 }
  0xa6   :  { %2998 = vmatprep.mubr.msk.f32.mxu0 %vm50_vm0, %v217_v17  ;;  %172 = vst.msk [vmem:[#allocation2 + $0x90] sm:$0xff] %vm162_vm1, %v133_v19  ;;  %v958_v17 = vunpack.c.2.s8 %v3020_v0  ;;  %v1020_v19 = vadd.f32 %v1004_v14, %v4555_v7  ;;  %v964_v14 = vunpack.c.0.s8 %v3022_v11 }
  0xa8   :  { %v135_v22 = vpop.permute.xlu0 %134  ;;  %v222_v28 = vld [vmem:[#allocation2 + $0x60] sm:$0xff] }
  0xa9   :  { %401 = vmatmul.mubr.f32.gmra.mrb[6].mxu0 %v216_v20  ;;  %173 = vst.msk [vmem:[#allocation2 + $0xa0] sm:$0xff] %vm162_vm1, %v135_v22  ;;  %v137_v23 = vpop.permute.xlu1 %136  ;;  %v224_v30 = vld [vmem:[#allocation2 + $0x70] sm:$0xff]  ;;  %v1021_v20 = vadd.f32 %v1005_v15, %v4555_v7  ;;  %v975_v22 = vcvt.s32.f32 %v959_v18  ;;  %v965_v15 = vunpack.c.1.s8 %v3022_v11 }
  0xaa   :  { %2999 = vmatprep.mubr.msk.f32.mxu0 %vm50_vm0, %v219_v21  ;;  %174 = vst.msk [vmem:[#allocation2 + $0xb0] sm:$0xff] %vm162_vm1, %v137_v23  ;;  %v974_v21 = vcvt.s32.f32 %v958_v17 }
  0xab   :  { %v4014_v23 = vpack.c.bf16 %v1021_v20, %v1020_v19  ;;  %v4677_v20 = vld [vmem:[%s6345_s3 + $0x10] sm:$0xff] }
  0xac   :  { %v226_v32 = vld [vmem:[#allocation2 + $0x80] sm:$0xff]  ;;  %v139_v62 = vpop.permute.xlu0 %138 }
  0xad   :  { %406 = vmatmul.mubr.f32.gmra.mrb[8].mxu0 %v218_v24  ;;  %v228_v34 = vld [vmem:[#allocation2 + $0x90] sm:$0xff]  ;;  %175 = vst.msk [vmem:[#allocation2 + $0xc0] sm:$0xff] %vm162_vm1, %v139_v62  ;;  %v141_v63 = vpop.permute.xlu1 %140  ;;  %v990_v24 = vadd.f32 128.0, %v974_v21 }
  0xae   :  { %3000 = vmatprep.mubr.msk.f32.mxu0 %vm50_vm0, %v221_v25  ;;  %176 = vst.msk [vmem:[#allocation2 + $0xd0] sm:$0xff] %vm162_vm1, %v141_v63  ;;  %v991_v25 = vadd.f32 128.0, %v975_v22  ;;  %4015 = vmatpush3.bf16.msra.mxu0 %v4014_v23  ;;  %v494_v22 = vunpack.c.2.s8 %v485_v48  ;;  %v495_v23 = vunpack.c.3.s8 %v485_v48 }
  0xaf   :  { %4016 = vmatprep.subr.bf16.mxu0 %v6349_v6 }
  0xb0   :  { %v230_v36 = vld [vmem:[#allocation2 + $0xa0] sm:$0xff]  ;;  %v143_v45 = vpop.permute.xlu0 %142 }
  0xb1   :  { %411 = vmatmul.mubr.f32.gmra.mrb[10].mxu0 %v220_v26  ;;  %v232_v38 = vld [vmem:[#allocation2 + $0xb0] sm:$0xff]  ;;  %v1006_v26 = vmul.f32 %v990_v24, %v4553_v5  ;;  %177 = vst.msk [vmem:[#allocation2 + $0xe0] sm:$0xff] %vm162_vm1, %v143_v45  ;;  %v145_v60 = vpop.permute.xlu1 %144  ;;  %v980_v24 = vcvt.s32.f32 %v964_v14  ;;  %v497_v45 = vunpack.c.1.s8 %v4677_v20 }
  0xb2   :  { %3001 = vmatprep.mubr.msk.f32.mxu0 %vm50_vm0, %v223_v27  ;;  %v1007_v27 = vmul.f32 %v991_v25, %v4553_v5  ;;  %178 = vst.msk [vmem:[#allocation2 + $0xf0] sm:$0xff] %vm162_vm1, %v145_v60  ;;  %v981_v25 = vcvt.s32.f32 %v965_v15  ;;  %v3023_v60 = vld [vmem:[%s6345_s3 + $0x78] sm:$0xff] }
  0xb4   :  { %v234_v9 = vld [vmem:[#allocation2 + $0xc0] sm:$0xff] }
  0xb5   :  { %416 = vmatmul.mubr.f32.gmra.mrb[12].mxu0 %v222_v28  ;;  %v236_v16 = vld [vmem:[#allocation2 + $0xd0] sm:$0xff]  ;;  %v1022_v28 = vadd.f32 %v1006_v26, %v4555_v7 }
  0xb6   :  { %3002 = vmatprep.mubr.msk.f32.mxu0 %vm50_vm0, %v225_v29  ;;  %v1023_v29 = vadd.f32 %v1007_v27, %v4555_v7  ;;  %v525_v27 = vadd.f32 128.0, %v509_v4  ;;  %v969_v4 = vunpack.c.1.s8 %v3023_v60 }
  0xb9   :  { %421 = vmatmul.mubr.f32.gmra.mrb[14].mxu0 %v224_v30  ;;  %v3021_v30 = vld [vmem:[%s6345_s3 + $0x68] sm:$0xff] }
  0xba   :  { %3003 = vmatprep.mubr.msk.f32.mxu0 %vm50_vm0, %v227_v31  ;;  %v960_v31 = vunpack.c.0.s8 %v3021_v30  ;;  %v962_v43 = vunpack.c.2.s8 %v3021_v30  ;;  %v963_v44 = vunpack.c.3.s8 %v3021_v30 }
  0xbc   :  { %v978_v53 = vcvt.s32.f32 %v962_v43  ;;  %v979_v54 = vcvt.s32.f32 %v963_v44  ;;  %v966_v43 = vunpack.c.2.s8 %v3022_v11  ;;  %v967_v44 = vunpack.c.3.s8 %v3022_v11 }
  0xbd   :  { %426 = vmatmul.mubr.f32.gmra.mrb[16].mxu0 %v226_v32  ;;  %v961_v32 = vunpack.c.1.s8 %v3021_v30  ;;  %v996_v30 = vadd.f32 128.0, %v980_v24 }
  0xbe   :  { %3004 = vmatprep.mubr.msk.f32.mxu0 %vm50_vm0, %v229_v33  ;;  %v484_v33 = vld [vmem:[%s6345_s3] sm:$0xff]  ;;  %v994_v58 = vadd.f32 128.0, %v978_v53  ;;  %v995_v59 = vadd.f32 128.0, %v979_v54 }
  0xbf   :  { %v490_v51 = vunpack.c.2.s8 %v484_v33  ;;  %v491_v52 = vunpack.c.3.s8 %v484_v33 }
  0xc0   :  { %v1010_v1 = vmul.f32 %v994_v58, %v4553_v5  ;;  %v1011_v2 = vmul.f32 %v995_v59, %v4553_v5 }
  0xc1   :  { %431 = vmatmul.mubr.f32.gmra.mrb[18].mxu0 %v228_v34  ;;  %v4017_v34 = vpack.c.bf16 %v1023_v29, %v1022_v28  ;;  %v506_v63 = vcvt.s32.f32 %v490_v51  ;;  %v507_v0 = vcvt.s32.f32 %v491_v52  ;;  %v241_v28 = vld [vmem:[#allocation2 + $0xf8] sm:$0xff]  ;;  %v496_v29 = vunpack.c.0.s8 %v4677_v20 }
  0xc2   :  { %3005 = vmatprep.mubr.msk.f32.mxu0 %vm50_vm0, %v231_v35  ;;  %v976_v35 = vcvt.s32.f32 %v960_v31  ;;  %v1026_v8 = vadd.f32 %v1010_v1, %v4555_v7  ;;  %v997_v31 = vadd.f32 128.0, %v981_v25  ;;  %v983_v51 = vcvt.s32.f32 %v967_v44 }
  0xc3   :  { %4018 = vmatpush3.bf16.msra.mxu0 %v4017_v34  ;;  %v522_v18 = vadd.f32 128.0, %v506_v63  ;;  %v523_v19 = vadd.f32 128.0, %v507_v0  ;;  %v968_v0 = vunpack.c.0.s8 %v3023_v60  ;;  %v498_v1 = vunpack.c.2.s8 %v4677_v20 }
  0xc4   :  { %4019 = vmatprep.subr.bf16.mxu0 %v6349_v6  ;;  %v992_v39 = vadd.f32 128.0, %v976_v35  ;;  %v999_v59 = vadd.f32 128.0, %v983_v51 }
  0xc5   :  { %436 = vmatmul.mubr.f32.gmra.mrb[20].mxu0 %v230_v36  ;;  %v977_v36 = vcvt.s32.f32 %v961_v32  ;;  %v240_v32 = vld [vmem:[#allocation2 + $0xf0] sm:$0xff]  ;;  %v539_v35 = vmul.f32 %v4553_v5, %v522_v18  ;;  %v514_v24 = vcvt.s32.f32 %v498_v1  ;;  %v3017_v1 = vld [vmem:[%s6345_s3 + $0x48] sm:$0xff] }
  0xc6   :  { %3006 = vmatprep.mubr.msk.f32.mxu0 %vm50_vm0, %v233_v37  ;;  %v488_v37 = vunpack.c.0.s8 %v484_v33  ;;  %v1008_v41 = vmul.f32 %v992_v39, %v4553_v5  ;;  %v1012_v39 = vmul.f32 %v996_v30, %v4553_v5 }
  0xc7   :  { %v993_v40 = vadd.f32 128.0, %v977_v36  ;;  %v540_v36 = vmul.f32 %v4553_v5, %v523_v19 }
  0xc8   :  { %v504_v46 = vcvt.s32.f32 %v488_v37  ;;  %v1024_v49 = vadd.f32 %v1008_v41, %v4555_v7  ;;  %v510_v37 = vcvt.s32.f32 %v494_v22  ;;  %v4736_v22 = vld [vmem:[%s6345_s3 + $0x40] sm:$0xff] }
  0xc9   :  { %441 = vmatmul.mubr.f32.gmra.mrb[22].mxu0 %v232_v38  ;;  %v489_v38 = vunpack.c.1.s8 %v484_v33  ;;  %v1009_v42 = vmul.f32 %v993_v40, %v4553_v5  ;;  %v1013_v40 = vmul.f32 %v997_v31, %v4553_v5  ;;  %v4703_v52 = vadd.f32 %v4555_v7, %v540_v36 }
  0xca   :  { %3007 = vmatprep.mubr.msk.f32.mxu0 %vm50_vm0, %v235_v3  ;;  %v520_v61 = vadd.f32 128.0, %v504_v46  ;;  %v508_v3 = vcvt.s32.f32 %v492_v56  ;;  %v512_v46 = vcvt.s32.f32 %v496_v29  ;;  %v526_v53 = vadd.f32 128.0, %v510_v37 }
  0xcb   :  { %v505_v47 = vcvt.s32.f32 %v489_v38  ;;  %v1025_v50 = vadd.f32 %v1009_v42, %v4555_v7  ;;  %v511_v38 = vcvt.s32.f32 %v495_v23  ;;  %v542_v42 = vmul.f32 %v4553_v5, %v525_v27 }
  0xcc   :  { %v524_v26 = vadd.f32 128.0, %v508_v3  ;;  %v1029_v48 = vadd.f32 %v1013_v40, %v4555_v7  ;;  %v528_v63 = vadd.f32 128.0, %v512_v46  ;;  %v1015_v3 = vmul.f32 %v999_v59, %v4553_v5 }
  0xcd   :  { %446 = vmatmul.mubr.f32.gmra.mrb[24].mxu0 %v234_v9  ;;  %v4020_v55 = vpack.c.bf16 %v1025_v50, %v1024_v49  ;;  %v521_v62 = vadd.f32 128.0, %v505_v47  ;;  %v1027_v9 = vadd.f32 %v1011_v2, %v4555_v7  ;;  %v1028_v47 = vadd.f32 %v1012_v39, %v4555_v7 }
  0xce   :  { %3008 = vmatprep.mubr.msk.f32.mxu0 %vm50_vm0, %v237_v13  ;;  %v537_v13 = vmul.f32 %v4553_v5, %v520_v61  ;;  %v541_v41 = vmul.f32 %v4553_v5, %v524_v26  ;;  %v4700_v49 = vadd.f32 %v4555_v7, %v539_v35  ;;  %v982_v50 = vcvt.s32.f32 %v966_v43 }
  0xcf   :  { %4021 = vmatpush3.bf16.msra.mxu0 %v4020_v55  ;;  %v538_v17 = vmul.f32 %v4553_v5, %v521_v62  ;;  %v4023_v21 = vpack.c.bf16 %v1027_v9, %v1026_v8  ;;  %v527_v54 = vadd.f32 128.0, %v511_v38  ;;  %v4026_v55 = vpack.c.bf16 %v1029_v48, %v1028_v47 }
  0xd0   :  { %4022 = vmatprep.subr.bf16.mxu0 %v6349_v6  ;;  %v4683_v33 = vadd.f32 %v4555_v7, %v537_v13  ;;  %v4706_v56 = vadd.f32 %v4555_v7, %v541_v41  ;;  %v4709_v57 = vadd.f32 %v4555_v7, %v542_v42  ;;  %v998_v58 = vadd.f32 128.0, %v982_v50 }
  0xd1   :  { %451 = vmatmul.mubr.f32.gmra.mrb[26].mxu0 %v236_v16  ;;  %v238_v16 = vld [vmem:[#allocation2 + $0xe0] sm:$0xff]  ;;  %v4686_v34 = vadd.f32 %v4555_v7, %v538_v17  ;;  %v513_v62 = vcvt.s32.f32 %v497_v45  ;;  %v543_v9 = vmul.f32 %v4553_v5, %v526_v53  ;;  %v544_v11 = vmul.f32 %v4553_v5, %v527_v54 }
  0xd2   :  { %3009 = vmatprep.mubr.msk.f32.mxu0 %vm50_vm0, %v239_v12  ;;  %v1014_v2 = vmul.f32 %v998_v58, %v4553_v5  ;;  %v487_v12 = vld [vmem:[%s6345_s3 + $0x18] sm:$0xff]  ;;  %v984_v13 = vcvt.s32.f32 %v968_v0  ;;  %v985_v17 = vcvt.s32.f32 %v969_v4  ;;  %v545_v19 = vmul.f32 %v4553_v5, %v528_v63 }
  0xd3   :  { %4024 = vmatpush3.bf16.msra.mxu0 %v4023_v21  ;;  %v529_v18 = vadd.f32 128.0, %v513_v62  ;;  %v499_v21 = vunpack.c.3.s8 %v4677_v20  ;;  %v500_v25 = vunpack.c.0.s8 %v487_v12  ;;  %v502_v29 = vunpack.c.2.s8 %v487_v12 }
  0xd4   :  { %4025 = vmatprep.subr.bf16.mxu0 %v6349_v6  ;;  %v1030_v15 = vadd.f32 %v1014_v2, %v4555_v7  ;;  %v1000_v23 = vadd.f32 128.0, %v984_v13  ;;  %v1001_v27 = vadd.f32 128.0, %v985_v17  ;;  %v503_v30 = vunpack.c.3.s8 %v487_v12 }
  0xd5   :  { %456 = vmatmul.mubr.f32.gmra.mrb[28].mxu0 %v238_v16  ;;  %v1031_v16 = vadd.f32 %v1015_v3, %v4555_v7  ;;  %v801_v35 = vunpack.c.1.s8 %v4736_v22  ;;  %v970_v36 = vunpack.c.2.s8 %v3023_v60  ;;  %v546_v37 = vmul.f32 %v4553_v5, %v529_v18 }
  0xd6   :  { %3010 = vmatprep.mubr.msk.f32.mxu0 %vm50_vm0, %v241_v28  ;;  %v501_v28 = vunpack.c.1.s8 %v487_v12  ;;  %v1016_v31 = vmul.f32 %v1000_v23, %v4553_v5  ;;  %v1017_v20 = vmul.f32 %v1001_v27, %v4553_v5  ;;  %v515_v38 = vcvt.s32.f32 %v499_v21 }
  0xd7   :  { %4027 = vmatpush3.bf16.msra.mxu0 %v4026_v55  ;;  %v4029_v26 = vpack.c.bf16 %v1031_v16, %v1030_v15  ;;  %v971_v40 = vunpack.c.3.s8 %v3023_v60  ;;  %v530_v41 = vadd.f32 128.0, %v514_v24  ;;  %v516_v42 = vcvt.s32.f32 %v500_v25  ;;  %v4768_v16 = vld [vmem:[%s6345_s3 + $0x50] sm:$0xff] }
  0xd8   :  { %4028 = vmatprep.subr.bf16.mxu0 %v6349_v6  ;;  %v1032_v39 = vadd.f32 %v1016_v31, %v4555_v7  ;;  %v1033_v43 = vadd.f32 %v1017_v20, %v4555_v7  ;;  %v986_v44 = vcvt.s32.f32 %v970_v36  ;;  %v517_v45 = vcvt.s32.f32 %v501_v28 }
  0xd9   :  { %461 = vmatmul.mubr.f32.gmra.mrb[30].mxu0 %v240_v32  ;;  %v800_v32 = vunpack.c.0.s8 %v4736_v22  ;;  %v518_v46 = vcvt.s32.f32 %v502_v29  ;;  %v519_v47 = vcvt.s32.f32 %v503_v30  ;;  %v987_v48 = vcvt.s32.f32 %v971_v40 }
  0xda   :  { %3482 = vmatprep.mubr.msk.f32.mxu0 %vm4380_vm2, %v6351_v10  ;;  %v817_v51 = vcvt.s32.f32 %v801_v35  ;;  %v4032_v53 = vpack.c.bf16 %v1033_v43, %v1032_v39  ;;  %v1002_v54 = vadd.f32 128.0, %v986_v44  ;;  %v4747_v55 = vadd.f32 %v4555_v7, %v543_v9 }
  0xdb   :  { %4030 = vmatpush3.bf16.msra.mxu0 %v4029_v26  ;;  %v816_v50 = vcvt.s32.f32 %v800_v32  ;;  %v4750_v58 = vadd.f32 %v4555_v7, %v544_v11  ;;  %v4753_v59 = vadd.f32 %v4555_v7, %v545_v19  ;;  %v1003_v60 = vadd.f32 128.0, %v987_v48 }
  0xdc   :  { %4031 = vmatprep.subr.bf16.mxu0 %v6349_v6  ;;  %v4756_v62 = vadd.f32 %v4555_v7, %v546_v37  ;;  %v531_v63 = vadd.f32 128.0, %v515_v38  ;;  %v532_v0 = vadd.f32 128.0, %v516_v42  ;;  %v1018_v2 = vmul.f32 %v1002_v54, %v4553_v5 }
  0xdd   :  { %v547_v3 = vmul.f32 %v4553_v5, %v530_v41  ;;  %v533_v4 = vadd.f32 128.0, %v517_v45  ;;  %v534_v9 = vadd.f32 128.0, %v518_v46  ;;  %v1019_v11 = vmul.f32 %v1003_v60, %v4553_v5 }
  0xde   :  { %v535_v12 = vadd.f32 128.0, %v519_v47  ;;  %v832_v13 = vadd.f32 128.0, %v816_v50  ;;  %v833_v15 = vadd.f32 128.0, %v817_v51  ;;  %v1034_v17 = vadd.f32 %v1018_v2, %v4555_v7 }
  0xdf   :  { %4033 = vmatpush3.bf16.msra.mxu0 %v4032_v53  ;;  %v802_v18 = vunpack.c.2.s8 %v4736_v22  ;;  %v803_v19 = vunpack.c.3.s8 %v4736_v22  ;;  %v804_v21 = vunpack.c.0.s8 %v3017_v1  ;;  %v1035_v23 = vadd.f32 %v1019_v11, %v4555_v7 }
  0xe0   :  { %4034 = vmatprep.subr.bf16.mxu0 %v6349_v6  ;;  %v548_v24 = vmul.f32 %v4553_v5, %v531_v63  ;;  %v549_v25 = vmul.f32 %v4553_v5, %v532_v0  ;;  %v805_v26 = vunpack.c.1.s8 %v3017_v1  ;;  %v806_v27 = vunpack.c.2.s8 %v3017_v1 }
  0xe1   :  { %v550_v28 = vmul.f32 %v4553_v5, %v533_v4  ;;  %v807_v29 = vunpack.c.3.s8 %v3017_v1  ;;  %v808_v30 = vunpack.c.0.s8 %v4768_v16  ;;  %v4035_v31 = vpack.c.bf16 %v1035_v23, %v1034_v17 }
  0xe2   :  { %v551_v32 = vmul.f32 %v4553_v5, %v534_v9  ;;  %v552_v35 = vmul.f32 %v4553_v5, %v535_v12  ;;  %v848_v22 = vmul.f32 %v832_v13, %v4553_v5  ;;  %v849_v20 = vmul.f32 %v833_v15, %v4553_v5  ;;  %v3019_v15 = vld [vmem:[%s6345_s3 + $0x58] sm:$0xff] }
  0xe3   :  { %v818_v36 = vcvt.s32.f32 %v802_v18  ;;  %v819_v37 = vcvt.s32.f32 %v803_v19  ;;  %v820_v38 = vcvt.s32.f32 %v804_v21  ;;  %v809_v39 = vunpack.c.1.s8 %v4768_v16  ;;  %4036 = vmatpush3.bf16.msra.mxu0 %v4035_v31 }
  0xe4   :  { %v4784_v40 = vadd.f32 %v4555_v7, %v547_v3  ;;  %v4787_v41 = vadd.f32 %v4555_v7, %v548_v24  ;;  %v821_v42 = vcvt.s32.f32 %v805_v26  ;;  %v822_v43 = vcvt.s32.f32 %v806_v27  ;;  %4061 = vmatprep.subr.bf16.mxu0 %v6349_v6  ;;  %v3024_v27 = vld [vmem:[%s6345_s3 + $0x80] sm:$0xff] }
  0xe5   :  { %v4791_v44 = vadd.f32 %v4555_v7, %v549_v25  ;;  %v4794_v45 = vadd.f32 %v4555_v7, %v550_v28  ;;  %v823_v46 = vcvt.s32.f32 %v807_v29  ;;  %v824_v47 = vcvt.s32.f32 %v808_v30 }
  0xe6   :  { %v4797_v48 = vadd.f32 %v4555_v7, %v551_v32  ;;  %v4800_v50 = vadd.f32 %v4555_v7, %v552_v35  ;;  %v4803_v51 = vadd.f32 %v848_v22, %v4555_v7  ;;  %v4806_v53 = vadd.f32 %v849_v20, %v4555_v7 }
  0xe7   :  { %v834_v54 = vadd.f32 128.0, %v818_v36  ;;  %v835_v60 = vadd.f32 128.0, %v819_v37  ;;  %v836_v63 = vadd.f32 128.0, %v820_v38  ;;  %v825_v0 = vcvt.s32.f32 %v809_v39 }
  0xe8   :  { %v837_v3 = vadd.f32 128.0, %v821_v42  ;;  %v838_v4 = vadd.f32 128.0, %v822_v43  ;;  %v839_v11 = vadd.f32 128.0, %v823_v46  ;;  %v840_v12 = vadd.f32 128.0, %v824_v47 }
  0xe9   :  { %v810_v13 = vunpack.c.2.s8 %v4768_v16  ;;  %v811_v21 = vunpack.c.3.s8 %v4768_v16  ;;  %v850_v23 = vmul.f32 %v834_v54, %v4553_v5  ;;  %v851_v24 = vmul.f32 %v835_v60, %v4553_v5 }
  0xea   :  { %v852_v25 = vmul.f32 %v836_v63, %v4553_v5  ;;  %v841_v26 = vadd.f32 128.0, %v825_v0  ;;  %v853_v28 = vmul.f32 %v837_v3, %v4553_v5  ;;  %v854_v29 = vmul.f32 %v838_v4, %v4553_v5  ;;  %v3028_v0 = vld [vmem:[%s6345_s3 + $0xa0] sm:$0xff] }
  0xeb   :  { %v812_v30 = vunpack.c.0.s8 %v3019_v15  ;;  %v813_v31 = vunpack.c.1.s8 %v3019_v15  ;;  %v855_v32 = vmul.f32 %v839_v11, %v4553_v5  ;;  %v856_v16 = vmul.f32 %v840_v12, %v4553_v5 }
  0xec   :  { %v826_v35 = vcvt.s32.f32 %v810_v13  ;;  %v814_v22 = vunpack.c.2.s8 %v3019_v15  ;;  %v827_v20 = vcvt.s32.f32 %v811_v21  ;;  %v815_v36 = vunpack.c.3.s8 %v3019_v15 }
  0xed   :  { %v1112_v37 = vunpack.c.0.s8 %v3024_v27  ;;  %v1113_v38 = vunpack.c.1.s8 %v3024_v27  ;;  %v4836_v39 = vadd.f32 %v850_v23, %v4555_v7  ;;  %v4839_v42 = vadd.f32 %v851_v24, %v4555_v7 }
  0xee   :  { %v4842_v43 = vadd.f32 %v852_v25, %v4555_v7  ;;  %v857_v46 = vmul.f32 %v841_v26, %v4553_v5  ;;  %v4846_v47 = vadd.f32 %v853_v28, %v4555_v7  ;;  %v4849_v54 = vadd.f32 %v854_v29, %v4555_v7 }
  0xef   :  { %6383 = vst [vmem:[#allocation9_spill] sm:$0xff] %v4836_v39  ;;  %v828_v60 = vcvt.s32.f32 %v812_v30  ;;  %v829_v63 = vcvt.s32.f32 %v813_v31  ;;  %v4855_v3 = vadd.f32 %v855_v32, %v4555_v7  ;;  %v4858_v4 = vadd.f32 %v856_v16, %v4555_v7 }
  0xf0   :  { %6384 = vst [vmem:[#allocation10_spill] sm:$0xff] %v4842_v43  ;;  %6385 = vst [vmem:[#allocation11_spill] sm:$0xff] %v4846_v47  ;;  %v842_v11 = vadd.f32 128.0, %v826_v35  ;;  %v830_v12 = vcvt.s32.f32 %v814_v22  ;;  %v843_v13 = vadd.f32 128.0, %v827_v20  ;;  %v831_v15 = vcvt.s32.f32 %v815_v36 }
  0xf1   :  { %6386 = vst [vmem:[#allocation12_spill] sm:$0xff] %v4849_v54  ;;  %6387 = vst [vmem:[#allocation13_spill] sm:$0xff] %v4855_v3  ;;  %v1128_v21 = vcvt.s32.f32 %v1112_v37  ;;  %v1129_v23 = vcvt.s32.f32 %v1113_v38  ;;  %v4861_v24 = vadd.f32 %v857_v46, %v4555_v7  ;;  %v1268_v25 = vunpack.c.0.s8 %v3028_v0 }
  0xf2   :  { %6388 = vst [vmem:[#allocation14_spill] sm:$0xff] %v4858_v4  ;;  %v1269_v26 = vunpack.c.1.s8 %v3028_v0  ;;  %v1114_v28 = vunpack.c.2.s8 %v3024_v27  ;;  %v844_v30 = vadd.f32 128.0, %v828_v60  ;;  %v845_v31 = vadd.f32 128.0, %v829_v63  ;;  %v4874_v60 = vld [vmem:[%s6345_s3 + $0x88] sm:$0xff] }
  0xf3   :  { %6389 = vst [vmem:[#allocation15_spill] sm:$0xff] %v4861_v24  ;;  %v1115_v32 = vunpack.c.3.s8 %v3024_v27  ;;  %v858_v22 = vmul.f32 %v842_v11, %v4553_v5  ;;  %v846_v20 = vadd.f32 128.0, %v830_v12  ;;  %v859_v36 = vmul.f32 %v843_v13, %v4553_v5 }
  0xf4   :  { %v847_v37 = vadd.f32 128.0, %v831_v15  ;;  %v1144_v38 = vadd.f32 128.0, %v1128_v21  ;;  %v1145_v46 = vadd.f32 128.0, %v1129_v23  ;;  %v1284_v63 = vcvt.s32.f32 %v1268_v25 }
  0xf5   :  { %v1285_v16 = vcvt.s32.f32 %v1269_v26  ;;  %v1130_v29 = vcvt.s32.f32 %v1114_v28  ;;  %v860_v35 = vmul.f32 %v844_v30, %v4553_v5  ;;  %v861_v11 = vmul.f32 %v845_v31, %v4553_v5  ;;  %v3029_v30 = vld [vmem:[%s6345_s3 + $0xa8] sm:$0xff] }
  0xf6   :  { %v1131_v12 = vcvt.s32.f32 %v1115_v32  ;;  %v1270_v13 = vunpack.c.2.s8 %v3028_v0  ;;  %v4881_v15 = vadd.f32 %v858_v22, %v4555_v7  ;;  %v862_v21 = vmul.f32 %v846_v20, %v4553_v5 }
  0xf7   :  { %v1271_v23 = vunpack.c.3.s8 %v3028_v0  ;;  %v1116_v19 = vunpack.c.0.s8 %v4874_v60  ;;  %v4886_v18 = vadd.f32 %v859_v36, %v4555_v7  ;;  %v863_v25 = vmul.f32 %v847_v37, %v4553_v5 }
  0xf8   :  { %6390 = vst [vmem:[#allocation16_spill] sm:$0xff] %v4881_v15  ;;  %v1160_v26 = vmul.f32 %v1144_v38, %v4553_v5  ;;  %v1161_v28 = vmul.f32 %v1145_v46, %v4553_v5  ;;  %v1300_v31 = vadd.f32 128.0, %v1284_v63  ;;  %v1301_v32 = vadd.f32 128.0, %v1285_v16 }
  0xf9   :  { %6391 = vst [vmem:[#allocation17_spill] sm:$0xff] %v4886_v18  ;;  %v1146_v22 = vadd.f32 128.0, %v1130_v29  ;;  %v1117_v0 = vunpack.c.1.s8 %v4874_v60  ;;  %v4896_v20 = vadd.f32 %v860_v35, %v4555_v7  ;;  %v4899_v36 = vadd.f32 %v861_v11, %v4555_v7 }
  0xfa   :  { %v1147_v37 = vadd.f32 128.0, %v1131_v12  ;;  %v1286_v27 = vcvt.s32.f32 %v1270_v13  ;;  %v4902_v38 = vadd.f32 %v862_v21, %v4555_v7  ;;  %v1287_v46 = vcvt.s32.f32 %v1271_v23 }
  0xfb   :  { %6392 = vst [vmem:[#allocation18_spill] sm:$0xff] %v4896_v20  ;;  %6393 = vst [vmem:[#allocation19_spill] sm:$0xff] %v4899_v36  ;;  %v1132_v17 = vcvt.s32.f32 %v1116_v19  ;;  %v1272_v9 = vunpack.c.0.s8 %v3029_v30  ;;  %v4905_v63 = vadd.f32 %v863_v25, %v4555_v7  ;;  %v4908_v29 = vadd.f32 %v1160_v26, %v4555_v7 }
  0xfc   :  { %6394 = vst [vmem:[#allocation20_spill] sm:$0xff] %v4902_v38  ;;  %v4911_v16 = vadd.f32 %v1161_v28, %v4555_v7  ;;  %v1273_v35 = vunpack.c.1.s8 %v3029_v30  ;;  %v1316_v11 = vmul.f32 %v1300_v31, %v4553_v5  ;;  %v1317_v12 = vmul.f32 %v1301_v32, %v4553_v5 }
  0xfd   :  { %6395 = vst [vmem:[#allocation21_spill] sm:$0xff] %v4905_v63  ;;  %6396 = vst [vmem:[#allocation22_spill] sm:$0xff] %v4908_v29  ;;  %v1162_v13 = vmul.f32 %v1146_v22, %v4553_v5  ;;  %v1133_v21 = vcvt.s32.f32 %v1117_v0  ;;  %v1163_v23 = vmul.f32 %v1147_v37, %v4553_v5  ;;  %v1302_v25 = vadd.f32 128.0, %v1286_v27 }
  0xfe   :  { %6397 = vst [vmem:[#allocation23_spill] sm:$0xff] %v4911_v16  ;;  %v1118_v26 = vunpack.c.2.s8 %v4874_v60  ;;  %v1303_v2 = vadd.f32 128.0, %v1287_v46  ;;  %v1148_v1 = vadd.f32 128.0, %v1132_v17  ;;  %v1288_v14 = vcvt.s32.f32 %v1272_v9  ;;  %v3026_v9 = vld [vmem:[%s6345_s3 + $0x90] sm:$0xff] }
  0xff   :  { %v1289_v22 = vcvt.s32.f32 %v1273_v35  ;;  %v1119_v0 = vunpack.c.3.s8 %v4874_v60  ;;  %v4928_v37 = vadd.f32 %v1316_v11, %v4555_v7  ;;  %v4931_v27 = vadd.f32 %v1317_v12, %v4555_v7  ;;  %v3030_v11 = vld [vmem:[%s6345_s3 + $0xb0] sm:$0xff] }
 0x100   :  { %v4934_v28 = vadd.f32 %v1162_v13, %v4555_v7  ;;  %v1149_v17 = vadd.f32 128.0, %v1133_v21  ;;  %v4940_v46 = vadd.f32 %v1163_v23, %v4555_v7  ;;  %v1318_v35 = vmul.f32 %v1302_v25, %v4553_v5 }
 0x101   :  { %v1134_v60 = vcvt.s32.f32 %v1118_v26  ;;  %v1274_v32 = vunpack.c.2.s8 %v3029_v30  ;;  %v1319_v12 = vmul.f32 %v1303_v2, %v4553_v5  ;;  %v1164_v13 = vmul.f32 %v1148_v1, %v4553_v5 }
 0x102   :  { %6398 = vst [vmem:[#allocation24_spill] sm:$0xff] %v4934_v28  ;;  %6399 = vst [vmem:[#allocation25_spill] sm:$0xff] %v4940_v46  ;;  %v1304_v21 = vadd.f32 128.0, %v1288_v14  ;;  %v1275_v31 = vunpack.c.3.s8 %v3029_v30  ;;  %v1305_v19 = vadd.f32 128.0, %v1289_v22  ;;  %v1135_v8 = vcvt.s32.f32 %v1119_v0 }
 0x103   :  { %v1120_v6 = vunpack.c.0.s8 %v3026_v9  ;;  %v1121_v10 = vunpack.c.1.s8 %v3026_v9  ;;  %v1165_v25 = vmul.f32 %v1149_v17, %v4553_v5  ;;  %v1276_v26 = vunpack.c.0.s8 %v3030_v11 }
 0x104   :  { %v1277_v61 = vunpack.c.1.s8 %v3030_v11  ;;  %v4954_v2 = vadd.f32 %v1318_v35, %v4555_v7  ;;  %v1150_v1 = vadd.f32 128.0, %v1134_v60  ;;  %v1290_v14 = vcvt.s32.f32 %v1274_v32 }
 0x105   :  { %v4957_v30 = vadd.f32 %v1319_v12, %v4555_v7  ;;  %v4960_v22 = vadd.f32 %v1164_v13, %v4555_v7  ;;  %v1320_v0 = vmul.f32 %v1304_v21, %v4553_v5  ;;  %v1291_v23 = vcvt.s32.f32 %v1275_v31 }
 0x106   :  { %v1321_v17 = vmul.f32 %v1305_v19, %v4553_v5  ;;  %v1151_v16 = vadd.f32 128.0, %v1135_v8  ;;  %v1136_v38 = vcvt.s32.f32 %v1120_v6  ;;  %v1137_v63 = vcvt.s32.f32 %v1121_v10 }
 0x107   :  { %6400 = vst [vmem:[#allocation26_spill] sm:$0xff] %v4960_v22  ;;  %v4965_v29 = vadd.f32 %v1165_v25, %v4555_v7  ;;  %v1292_v35 = vcvt.s32.f32 %v1276_v26  ;;  %v1293_v60 = vcvt.s32.f32 %v1277_v61  ;;  %v1122_v32 = vunpack.c.2.s8 %v3026_v9 }
 0x108   :  { %v1166_v12 = vmul.f32 %v1150_v1, %v4553_v5  ;;  %v1306_v28 = vadd.f32 128.0, %v1290_v14  ;;  %v1123_v46 = vunpack.c.3.s8 %v3026_v9  ;;  %v1278_v13 = vunpack.c.2.s8 %v3030_v11  ;;  %v3027_v9 = vld [vmem:[%s6345_s3 + $0x98] sm:$0xff] }
 0x109   :  { %6401 = vst [vmem:[#allocation27_spill] sm:$0xff] %v4965_v29  ;;  %v4971_v31 = vadd.f32 %v1320_v0, %v4555_v7  ;;  %v1307_v8 = vadd.f32 128.0, %v1291_v23  ;;  %v1279_v6 = vunpack.c.3.s8 %v3030_v11  ;;  %v4974_v10 = vadd.f32 %v1321_v17, %v4555_v7 }
 0x10a   :  { %v1167_v19 = vmul.f32 %v1151_v16, %v4553_v5  ;;  %v1152_v61 = vadd.f32 128.0, %v1136_v38  ;;  %v1153_v25 = vadd.f32 128.0, %v1137_v63  ;;  %v1308_v1 = vadd.f32 128.0, %v1292_v35  ;;  %v3031_v38 = vld [vmem:[%s6345_s3 + $0xb8] sm:$0xff] }
 0x10b   :  { %v1309_v14 = vadd.f32 128.0, %v1293_v60  ;;  %v1138_v0 = vcvt.s32.f32 %v1122_v32  ;;  %v4983_v23 = vadd.f32 %v1166_v12, %v4555_v7  ;;  %v1322_v11 = vmul.f32 %v1306_v28, %v4553_v5 }
 0x10c   :  { %v1139_v17 = vcvt.s32.f32 %v1123_v46  ;;  %v1294_v21 = vcvt.s32.f32 %v1278_v13  ;;  %v1323_v63 = vmul.f32 %v1307_v8, %v4553_v5  ;;  %v1295_v16 = vcvt.s32.f32 %v1279_v6 }
 0x10d   :  { %6402 = vst [vmem:[#allocation28_spill] sm:$0xff] %v4983_v23  ;;  %v1124_v20 = vunpack.c.0.s8 %v3027_v9  ;;  %v1125_v36 = vunpack.c.1.s8 %v3027_v9  ;;  %v4993_v60 = vadd.f32 %v1167_v19, %v4555_v7  ;;  %v1168_v32 = vmul.f32 %v1152_v61, %v4553_v5 }
 0x10e   :  { %v1169_v28 = vmul.f32 %v1153_v25, %v4553_v5  ;;  %v1324_v46 = vmul.f32 %v1308_v1, %v4553_v5  ;;  %v1325_v12 = vmul.f32 %v1309_v14, %v4553_v5  ;;  %v1154_v13 = vadd.f32 128.0, %v1138_v0 }
 0x10f   :  { %6403 = vst [vmem:[#allocation29_spill] sm:$0xff] %v4993_v60  ;;  %v1280_v26 = vunpack.c.0.s8 %v3031_v38  ;;  %v5000_v8 = vadd.f32 %v1322_v11, %v4555_v7  ;;  %v1155_v6 = vadd.f32 128.0, %v1139_v17  ;;  %v1310_v22 = vadd.f32 128.0, %v1294_v21 }
 0x110   :  { %v1281_v29 = vunpack.c.1.s8 %v3031_v38  ;;  %v5003_v35 = vadd.f32 %v1323_v63, %v4555_v7  ;;  %v1311_v19 = vadd.f32 128.0, %v1295_v16  ;;  %v1140_v15 = vcvt.s32.f32 %v1124_v20 }
 0x111   :  { %v1141_v61 = vcvt.s32.f32 %v1125_v36  ;;  %v5006_v25 = vadd.f32 %v1168_v32, %v4555_v7  ;;  %v5009_v1 = vadd.f32 %v1169_v28, %v4555_v7  ;;  %v1126_v14 = vunpack.c.2.s8 %v3027_v9 }
 0x112   :  { %v1127_v0 = vunpack.c.3.s8 %v3027_v9  ;;  %v5012_v11 = vadd.f32 %v1324_v46, %v4555_v7  ;;  %v5015_v21 = vadd.f32 %v1325_v12, %v4555_v7  ;;  %v1170_v17 = vmul.f32 %v1154_v13, %v4553_v5 }
 0x113   :  { %6404 = vst [vmem:[#allocation30_spill] sm:$0xff] %v5006_v25  ;;  %6405 = vst [vmem:[#allocation31_spill] sm:$0xff] %v5009_v1  ;;  %v1296_v63 = vcvt.s32.f32 %v1280_v26  ;;  %v1171_v20 = vmul.f32 %v1155_v6, %v4553_v5  ;;  %v1326_v36 = vmul.f32 %v1310_v22, %v4553_v5  ;;  %v1297_v32 = vcvt.s32.f32 %v1281_v29 }
 0x114   :  { %v1282_v28 = vunpack.c.2.s8 %v3031_v38  ;;  %v1327_v46 = vmul.f32 %v1311_v19, %v4553_v5  ;;  %v1156_v4 = vadd.f32 128.0, %v1140_v15  ;;  %v1157_v12 = vadd.f32 128.0, %v1141_v61  ;;  %v3032_v15 = vld [vmem:[%s6345_s3 + $0xc0] sm:$0xff] }
 0x115   :  { %v1142_v26 = vcvt.s32.f32 %v1126_v14  ;;  %v1143_v24 = vcvt.s32.f32 %v1127_v0  ;;  %v1283_v54 = vunpack.c.3.s8 %v3031_v38  ;;  %v1312_v22 = vadd.f32 128.0, %v1296_v63  ;;  %v5040_v19 = vld [vmem:[%s6344_s2] ss:$0 sm:$0xff] }
 0x116   :  { %v5043_v61 = vadd.f32 %v1171_v20, %v4555_v7  ;;  %v5046_v14 = vadd.f32 %v1326_v36, %v4555_v7  ;;  %v1313_v0 = vadd.f32 128.0, %v1297_v32  ;;  %v5051_v63 = vld [vmem:[%s6345_s3 + $0xe0] sm:$0xff]  ;;  %v5055_v29 = vadd.f32 %v1327_v46, %v4555_v7 }
 0x117   :  { %v1172_v13 = vmul.f32 %v1156_v4, %v4553_v5  ;;  %v1173_v20 = vmul.f32 %v1157_v12, %v4553_v5  ;;  %v1158_v25 = vadd.f32 128.0, %v1142_v26  ;;  %v1159_v36 = vadd.f32 128.0, %v1143_v24 }
 0x118   :  { %6407 = vst [vmem:[#allocation33_spill] sm:$0xff] %v5043_v61  ;;  %v1299_v1 = vcvt.s32.f32 %v1283_v54  ;;  %v1424_v32 = vunpack.c.0.s8 %v3032_v15  ;;  %v1328_v23 = vmul.f32 %v1312_v22, %v4553_v5  ;;  %v1425_v60 = vunpack.c.1.s8 %v3032_v15 }
 0x119   :  { %v1580_v3 = vunpack.c.0.s8 %v5051_v63  ;;  %v1426_v4 = vunpack.c.2.s8 %v3032_v15  ;;  %v5070_v26 = vadd.f32 %v1172_v13, %v4555_v7  ;;  %v6408_v22 = vpack.c.bf16 %v4686_v34, %v4683_v33 }
 0x11a   :  { %v1440_v54 = vcvt.s32.f32 %v1424_v32  ;;  %v5081_v24 = vadd.f32 %v1173_v20, %v4555_v7  ;;  %v5084_v13 = vadd.f32 %v1328_v23, %v4555_v7  ;;  %v1582_v20 = vunpack.c.2.s8 %v5051_v63 }
 0x11b   :  { %v1596_v33 = vcvt.s32.f32 %v1580_v3  ;;  %v1583_v39 = vunpack.c.3.s8 %v5051_v63  ;;  %v5096_v3 = vld [vmem:[%s6345_s3 + $0xc8] sm:$0xff]  ;;  %v6411_v23 = vpack.c.bf16 %v4703_v52, %v4700_v49  ;;  %v6415_v49 = vpack.c.bf16 %v4750_v58, %v4747_v55 }
 0x170   :  { %v5018_v16 = vpop.f32.mrb[0].mxu0 }
 0x171   :  { %v389_v18 = vpop.f32.mrb[1].mxu0 }
 0x172   :  { %v5032_v18 = vadd.f32 %v1170_v17, %v4555_v7  ;;  %v1298_v17 = vcvt.s32.f32 %v1282_v28 }
 0x174   :  { %6406 = vst [vmem:[#allocation32_spill] sm:$0xff] %v5032_v18  ;;  %v392_v38 = vpop.f32.mrb[2].mxu0  ;;  %v1314_v46 = vadd.f32 128.0, %v1298_v17  ;;  %v1174_v17 = vmul.f32 %v1158_v25, %v4553_v5  ;;  %v6410_v18 = vmov 0.0|0.0  }
 0x175   :  { %v393_v6 = vadd.f32 %v5040_v19, %v392_v38  ;;  %v394_v9 = vpop.f32.mrb[3].mxu0  ;;  %v1581_v38 = vunpack.c.1.s8 %v5051_v63 }
 0x176   :  { %v1329_v9 = vmul.f32 %v1313_v0, %v4553_v5  ;;  %v6409_v0 = vmov 0.0   ;;  %v1330_v25 = vmul.f32 %v1314_v46, %v4553_v5 }
 0x177   :  { %v467_v28 = vmax.f32 %v393_v6, 0.0  ;;  %v1427_v6 = vunpack.c.3.s8 %v3032_v15  ;;  %v1441_v15 = vcvt.s32.f32 %v1425_v60  ;;  %v1597_v61 = vcvt.s32.f32 %v1581_v38 }
 0x178   :  { %v5061_v43 = vpop.f32.mrb[4].mxu0  ;;  %v5102_v60 = vadd.f32 %v1174_v17, %v4555_v7  ;;  %v1456_v38 = vadd.f32 128.0, %v1440_v54  ;;  %v3037_v54 = vld [vmem:[%s6345_s3 + $0xe8] sm:$0xff] }
 0x179   :  { %3378 = vmatmul.mubr.f32.vlgmr.msra.gmra.mrb[0].mxu1 %v467_v28  ;;  %v399_v12 = vpop.f32.mrb[5].mxu0  ;;  %v1175_v28 = vmul.f32 %v1159_v36, %v4553_v5  ;;  %v1442_v36 = vcvt.s32.f32 %v1426_v4  ;;  %v1443_v47 = vcvt.s32.f32 %v1427_v6  ;;  %v1457_v6 = vadd.f32 128.0, %v1441_v15 }
 0x17a   :  { %3967 = vmatpush3.bf16.msra.mxu1 %v6408_v22  ;;  %3412 = vmatprep.mubr.msk.f32.mxu1 %vm4380_vm2, %v6409_v0  ;;  %v1315_v12 = vadd.f32 128.0, %v1299_v1  ;;  %v5087_v22 = vadd.f32 %v1329_v9, %v4555_v7  ;;  %6412 = vst [vmem:[#allocation34_spill] sm:$0xff] %v5102_v60  ;;  %v1613_v52 = vadd.f32 128.0, %v1597_v61  ;;  %v6413_v4 = vpack.c.bf16 %v4709_v57, %v4706_v56 }
 0x17b   :  { %3968 = vmatprep.subr.bf16.mxu1 %v6410_v18  ;;  %v5105_v9 = vadd.f32 %v1175_v28, %v4555_v7  ;;  %v1458_v17 = vadd.f32 128.0, %v1442_v36  ;;  %v1428_v28 = vunpack.c.0.s8 %v5096_v3  ;;  %v1459_v15 = vadd.f32 128.0, %v1443_v47 }
 0x17c   :  { %v402_v34 = vpop.f32.mrb[6].mxu0  ;;  %v1331_v46 = vmul.f32 %v1315_v12, %v4553_v5  ;;  %v6414_v61 = vpack.c.bf16 %v4931_v27, %v4928_v37  ;;  %v1429_v47 = vunpack.c.1.s8 %v5096_v3  ;;  %v1473_v56 = vmul.f32 %v1457_v6, %v4553_v5 }
 0x17d   :  { %v403_v1 = vadd.f32 %v5040_v19, %v402_v34  ;;  %v404_v32 = vpop.f32.mrb[7].mxu0  ;;  %v1612_v34 = vadd.f32 128.0, %v1596_v33  ;;  %v1598_v33 = vcvt.s32.f32 %v1582_v20  ;;  %v1585_v37 = vunpack.c.1.s8 %v3037_v54 }
 0x17e   :  { %3970 = vmatpush3.bf16.msra.mxu1 %v6411_v23  ;;  %v1599_v23 = vcvt.s32.f32 %v1583_v39  ;;  %v1584_v39 = vunpack.c.0.s8 %v3037_v54  ;;  %v1629_v20 = vmul.f32 %v1613_v52, %v4553_v5  ;;  %v6416_v60 = vpack.c.bf16 %v4957_v30, %v4954_v2  ;;  %v5168_v2 = vld [vmem:[%s6345_s3 + $0xd0] sm:$0xff] }
 0x17f   :  { %3971 = vmatprep.subr.bf16.mxu1 %v6410_v18  ;;  %v469_v63 = vmax.f32 %v403_v1, 0.0  ;;  %v5120_v1 = vadd.f32 %v1330_v25, %v4555_v7  ;;  %v1472_v25 = vmul.f32 %v1456_v38, %v4553_v5  ;;  %v1628_v57 = vmul.f32 %v1612_v34, %v4553_v5 }
 0x180   :  { %v5111_v32 = vpop.f32.mrb[8].mxu0  ;;  %v1444_v38 = vcvt.s32.f32 %v1428_v28  ;;  %v1614_v6 = vadd.f32 128.0, %v1598_v33  ;;  %v1615_v36 = vadd.f32 128.0, %v1599_v23  ;;  %v1431_v34 = vunpack.c.3.s8 %v5096_v3 }
 0x181   :  { %3483 = vmatmul.mubr.f32.vlgmr.msra.gmra.mrb[32].mxu0 %v469_v63  ;;  %v409_v12 = vpop.f32.mrb[9].mxu0  ;;  %v5131_v63 = vadd.f32 %v1331_v46, %v4555_v7  ;;  %v1474_v46 = vmul.f32 %v1458_v17, %v4553_v5  ;;  %v5155_v52 = vadd.f32 %v1472_v25, %v4555_v7  ;;  %v1445_v17 = vcvt.s32.f32 %v1429_v47 }
 0x182   :  { %3973 = vmatpush3.bf16.msra.mxu1 %v6413_v4  ;;  %4063 = vmatpush3.bf16.msra.mxu0 %v6414_v61  ;;  %v1430_v4 = vunpack.c.2.s8 %v5096_v3  ;;  %v1475_v61 = vmul.f32 %v1459_v15, %v4553_v5  ;;  %v1586_v28 = vunpack.c.2.s8 %v3037_v54  ;;  %v5160_v3 = vadd.f32 %v1473_v56, %v4555_v7 }
 0x183   :  { %3974 = vmatprep.subr.bf16.mxu1 %v6410_v18  ;;  %4064 = vmatprep.subr.bf16.mxu0 %v6410_v18  ;;  %v5163_v55 = vadd.f32 %v1628_v57, %v4555_v7  ;;  %v1600_v58 = vcvt.s32.f32 %v1584_v39  ;;  %v5171_v30 = vadd.f32 %v1629_v20, %v4555_v7  ;;  %v1630_v25 = vmul.f32 %v1614_v6, %v4553_v5 }
 0x184   :  { %v5139_v27 = vpop.f32.mrb[10].mxu0  ;;  %3552 = vmatprep.mubr.msk.f32.mxu0 %vm4380_vm2, %v6409_v0  ;;  %v1446_v15 = vcvt.s32.f32 %v1430_v4  ;;  %v5179_v23 = vadd.f32 %v1475_v61, %v4555_v7  ;;  %v1631_v47 = vmul.f32 %v1615_v36, %v4553_v5  ;;  %v1447_v56 = vcvt.s32.f32 %v1431_v34 }
 0x185   :  { %v414_v12 = vpop.f32.mrb[11].mxu0  ;;  %v6417_v39 = vpack.c.bf16 %v4756_v62, %v4753_v59  ;;  %v1461_v20 = vadd.f32 128.0, %v1445_v17  ;;  %v1432_v4 = vunpack.c.0.s8 %v5168_v2  ;;  %v4083_v36 = vpack.c.bf16 %v5131_v63, %v5120_v1  ;;  %v5357_v1 = vld [vmem:[%s6345_s3 + $0x100] sm:$0xff] }
 0x186   :  { %3976 = vmatpush3.bf16.msra.mxu1 %v6415_v49  ;;  %4066 = vmatpush3.bf16.msra.mxu0 %v6416_v60  ;;  %v1587_v12 = vunpack.c.3.s8 %v3037_v54  ;;  %v1601_v49 = vcvt.s32.f32 %v1585_v37  ;;  %v5174_v60 = vadd.f32 %v1474_v46, %v4555_v7  ;;  %v1460_v54 = vadd.f32 128.0, %v1444_v38  ;;  %v5373_v63 = vld [vmem:[%s6345_s3 + $0x120] sm:$0xff] }
 0x187   :  { %3977 = vmatprep.subr.bf16.mxu1 %v6410_v18  ;;  %4067 = vmatprep.subr.bf16.mxu0 %v6410_v18  ;;  %v6418_v37 = vpack.c.bf16 %v4974_v10, %v4971_v31  ;;  %v1602_v46 = vcvt.s32.f32 %v1586_v28  ;;  %v1616_v61 = vadd.f32 128.0, %v1600_v58  ;;  %v1433_v59 = vunpack.c.1.s8 %v5168_v2 }
 0x188   :  { %v5176_v33 = vpop.f32.mrb[12].mxu0  ;;  %v1603_v38 = vcvt.s32.f32 %v1587_v12  ;;  %v1617_v6 = vadd.f32 128.0, %v1601_v49  ;;  %v4110_v31 = vpack.c.bf16 %v5171_v30, %v5163_v55  ;;  %v1476_v10 = vmul.f32 %v1460_v54, %v4553_v5 }
 0x189   :  { %v419_v57 = vpop.f32.mrb[13].mxu0  ;;  %v1462_v34 = vadd.f32 128.0, %v1446_v15  ;;  %v5205_v12 = vadd.f32 %v1630_v25, %v4555_v7  ;;  %v5208_v58 = vadd.f32 %v1631_v47, %v4555_v7  ;;  %v1463_v49 = vadd.f32 128.0, %v1447_v56 }
 0x18a   :  { %3979 = vmatpush3.bf16.msra.mxu1 %v6417_v39  ;;  %4069 = vmatpush3.bf16.msra.mxu0 %v6418_v37  ;;  %v3038_v57 = vld [vmem:[%s6345_s3 + $0xf0] sm:$0xff]  ;;  %v6419_v54 = vpack.c.bf16 %v4787_v41, %v4784_v40  ;;  %v6420_v15 = vpack.c.bf16 %v5003_v35, %v5000_v8  ;;  %v1477_v25 = vmul.f32 %v1461_v20, %v4553_v5  ;;  %v1618_v37 = vadd.f32 128.0, %v1602_v46 }
 0x18b   :  { %3980 = vmatprep.subr.bf16.mxu1 %v6410_v18  ;;  %4070 = vmatprep.subr.bf16.mxu0 %v6410_v18  ;;  %v1619_v28 = vadd.f32 128.0, %v1603_v38  ;;  %v1448_v47 = vcvt.s32.f32 %v1432_v4  ;;  %v388_v56 = vadd.f32 %v5040_v19, %v5018_v16  ;;  %v1633_v40 = vmul.f32 %v1617_v6, %v4553_v5 }
 0x18c   :  { %v5200_v17 = vpop.f32.mrb[14].mxu0  ;;  %v1449_v41 = vcvt.s32.f32 %v1433_v59  ;;  %v5227_v35 = vadd.f32 %v1476_v10, %v4555_v7  ;;  %v1478_v8 = vmul.f32 %v1462_v34, %v4553_v5  ;;  %v1588_v20 = vunpack.c.0.s8 %v3038_v57 }
 0x18d   :  { %v424_v39 = vpop.f32.mrb[15].mxu0  ;;  %v1589_v46 = vunpack.c.1.s8 %v3038_v57  ;;  %v4113_v16 = vpack.c.bf16 %v5208_v58, %v5205_v12  ;;  %v1479_v4 = vmul.f32 %v1463_v49, %v4553_v5  ;;  %v6421_v59 = vpack.c.bf16 %v4794_v45, %v4791_v44 }
 0x18e   :  { %3982 = vmatpush3.bf16.msra.mxu1 %v6419_v54  ;;  %4072 = vmatpush3.bf16.msra.mxu0 %v6420_v15  ;;  %v1632_v39 = vmul.f32 %v1616_v61, %v4553_v5  ;;  %v1434_v54 = vunpack.c.2.s8 %v5168_v2  ;;  %v1435_v61 = vunpack.c.3.s8 %v5168_v2  ;;  %v6422_v10 = vpack.c.bf16 %v5015_v21, %v5012_v11 }
 0x18f   :  { %3983 = vmatprep.subr.bf16.mxu1 %v6410_v18  ;;  %4073 = vmatprep.subr.bf16.mxu0 %v6410_v18  ;;  %v5244_v34 = vadd.f32 %v1477_v25, %v4555_v7  ;;  %v1634_v15 = vmul.f32 %v1618_v37, %v4553_v5  ;;  %v1635_v49 = vmul.f32 %v1619_v28, %v4553_v5  ;;  %v1464_v62 = vadd.f32 128.0, %v1448_v47  ;;  %v5262_v28 = vld [vmem:[%s6345_s3 + $0xd8] sm:$0xff] }
 0x190   :  { %v5230_v38 = vpop.f32.mrb[16].mxu0  ;;  %v5251_v2 = vadd.f32 %v1632_v39, %v4555_v7  ;;  %v5254_v44 = vadd.f32 %v1633_v40, %v4555_v7  ;;  %v1465_v45 = vadd.f32 128.0, %v1449_v41  ;;  %v1590_v11 = vunpack.c.2.s8 %v3038_v57 }
 0x191   :  { %v429_v6 = vpop.f32.mrb[17].mxu0  ;;  %v5257_v21 = vadd.f32 %v1478_v8, %v4555_v7  ;;  %v1604_v25 = vcvt.s32.f32 %v1588_v20  ;;  %v1605_v37 = vcvt.s32.f32 %v1589_v46  ;;  %v5268_v39 = vadd.f32 %v5040_v19, %v5061_v43 }
 0x192   :  { %3985 = vmatpush3.bf16.msra.mxu1 %v6421_v59  ;;  %4075 = vmatpush3.bf16.msra.mxu0 %v6422_v10  ;;  %v1591_v6 = vunpack.c.3.s8 %v3038_v57  ;;  %v5271_v40 = vadd.f32 %v1479_v4, %v4555_v7  ;;  %v1450_v41 = vcvt.s32.f32 %v1434_v54  ;;  %v1451_v8 = vcvt.s32.f32 %v1435_v61 }
 0x193   :  { %3986 = vmatprep.subr.bf16.mxu1 %v6410_v18  ;;  %4076 = vmatprep.subr.bf16.mxu0 %v6410_v18  ;;  %v466_v20 = vmax.f32 %v388_v56, 0.0  ;;  %v6423_v57 = vpack.c.bf16 %v4800_v50, %v4797_v48  ;;  %v6424_v46 = vpack.c.bf16 %v5055_v29, %v5046_v14  ;;  %v5280_v10 = vadd.f32 %v1634_v15, %v4555_v7 }
 0x194   :  { %v5264_v47 = vpop.f32.mrb[18].mxu0  ;;  %v5283_v43 = vadd.f32 %v1635_v49, %v4555_v7  ;;  %v1480_v4 = vmul.f32 %v1464_v62, %v4553_v5  ;;  %v1481_v56 = vmul.f32 %v1465_v45, %v4553_v5  ;;  %v1606_v48 = vcvt.s32.f32 %v1590_v11  ;;  %v5300_v11 = vld [vmem:[%s6345_s3 + $0xf8] sm:$0xff] }
 0x195   :  { %v434_v59 = vpop.f32.mrb[19].mxu0  ;;  %v1436_v50 = vunpack.c.0.s8 %v5262_v28  ;;  %v1437_v29 = vunpack.c.1.s8 %v5262_v28  ;;  %v1620_v54 = vadd.f32 128.0, %v1604_v25  ;;  %v1621_v61 = vadd.f32 128.0, %v1605_v37 }
 0x196   :  { %3988 = vmatpush3.bf16.msra.mxu1 %v6423_v57  ;;  %4078 = vmatpush3.bf16.msra.mxu0 %v6424_v46  ;;  %v1607_v15 = vcvt.s32.f32 %v1591_v6  ;;  %v4116_v62 = vpack.c.bf16 %v5254_v44, %v5251_v2  ;;  %v1466_v59 = vadd.f32 128.0, %v1450_v41  ;;  %v1467_v45 = vadd.f32 128.0, %v1451_v8  ;;  %v5448_v2 = vld [vmem:[%s6345_s3 + $0x108] sm:$0xff] }
 0x197   :  { %3989 = vmatprep.subr.bf16.mxu1 %v6410_v18  ;;  %4079 = vmatprep.subr.bf16.mxu0 %v6410_v18  ;;  %v6425_v57 = vpack.c.bf16 %v4806_v53, %v4803_v51  ;;  %v413_v37 = vadd.f32 %v5040_v19, %v5139_v27  ;;  %v4119_v6 = vpack.c.bf16 %v5283_v43, %v5280_v10  ;;  %v1622_v8 = vadd.f32 128.0, %v1606_v48  ;;  %v6427_v48 = vld [vmem:[#allocation9_spill] sm:$0xff] }
 0x198   :  { %v5313_v41 = vadd.f32 %v1480_v4, %v4555_v7  ;;  %v6426_v51 = vpack.c.bf16 %v5087_v22, %v5084_v13  ;;  %v5320_v53 = vadd.f32 %v1481_v56, %v4555_v7  ;;  %v1453_v46 = vcvt.s32.f32 %v1437_v29 }
 0x199   :  { %3413 = vmatmul.mubr.f32.vlgmr.msra.gmra.mrb[2].mxu1 %v466_v20  ;;  %v1452_v20 = vcvt.s32.f32 %v1436_v50  ;;  %v1636_v27 = vmul.f32 %v1620_v54, %v4553_v5  ;;  %v1623_v4 = vadd.f32 128.0, %v1607_v15  ;;  %v1592_v49 = vunpack.c.0.s8 %v5300_v11 }
 0x19a   :  { %3991 = vmatpush3.bf16.msra.mxu1 %v6425_v57  ;;  %3447 = vmatprep.mubr.msk.f32.mxu1 %vm4380_vm2, %v6409_v0  ;;  %v1637_v57 = vmul.f32 %v1621_v61, %v4553_v5  ;;  %v5328_v14 = vadd.f32 %v5040_v19, %v5111_v32  ;;  %v1482_v13 = vmul.f32 %v1466_v59, %v4553_v5  ;;  %v1593_v56 = vunpack.c.1.s8 %v5300_v11 }
 0x19b   :  { %3992 = vmatprep.subr.bf16.mxu1 %v6410_v18  ;;  %4081 = vmatpush3.bf16.msra.mxu0 %v6426_v51  ;;  %v1483_v22 = vmul.f32 %v1467_v45, %v4553_v5  ;;  %v6428_v50 = vpack.c.bf16 %v4839_v42, %v6427_v48  ;;  %v471_v29 = vmax.f32 %v413_v37, 0.0  ;;  %v1438_v54 = vunpack.c.2.s8 %v5262_v28 }
 0x19c   :  { %4082 = vmatprep.subr.bf16.mxu0 %v6410_v18  ;;  %v1439_v61 = vunpack.c.3.s8 %v5262_v28  ;;  %v1594_v15 = vunpack.c.2.s8 %v5300_v11  ;;  %v1638_v59 = vmul.f32 %v1622_v8, %v4553_v5  ;;  %v1468_v42 = vadd.f32 128.0, %v1452_v20 }
 0x19d   :  { %v1469_v45 = vadd.f32 128.0, %v1453_v46  ;;  %v5348_v37 = vadd.f32 %v1636_v27, %v4555_v7  ;;  %v5351_v28 = vadd.f32 %v1637_v57, %v4555_v7  ;;  %v1639_v51 = vmul.f32 %v1623_v4, %v4553_v5  ;;  %v6429_v46 = vld [vmem:[#allocation11_spill] sm:$0xff]  ;;  %v6430_v27 = vld [vmem:[#allocation10_spill] sm:$0xff] }
 0x19e   :  { %3994 = vmatpush3.bf16.msra.mxu1 %v6428_v50  ;;  %v1608_v48 = vcvt.s32.f32 %v1592_v49  ;;  %v1609_v8 = vcvt.s32.f32 %v1593_v56  ;;  %v1595_v20 = vunpack.c.3.s8 %v5300_v11  ;;  %v6431_v57 = vpack.c.bf16 %v6429_v46, %v6430_v27 }
 0x19f   :  { %3995 = vmatprep.subr.bf16.mxu1 %v6410_v18  ;;  %4084 = vmatpush3.bf16.msra.mxu0 %v4083_v36  ;;  %v5361_v36 = vadd.f32 %v1482_v13, %v4555_v7  ;;  %v5368_v49 = vadd.f32 %v1483_v22, %v4555_v7  ;;  %v1454_v4 = vcvt.s32.f32 %v1438_v54  ;;  %v1455_v50 = vcvt.s32.f32 %v1439_v61 }
 0x1a0   :  { %4109 = vmatprep.subr.bf16.mxu0 %v6410_v18  ;;  %v1610_v32 = vcvt.s32.f32 %v1594_v15  ;;  %v5380_v11 = vadd.f32 %v1638_v59, %v4555_v7  ;;  %v1484_v13 = vmul.f32 %v1468_v42, %v4553_v5  ;;  %v1485_v22 = vmul.f32 %v1469_v45, %v4553_v5  ;;  %v6432_v42 = vld [vmem:[#allocation13_spill] sm:$0xff]  ;;  %v6433_v45 = vld [vmem:[#allocation12_spill] sm:$0xff] }
 0x1a1   :  { %v1736_v56 = vunpack.c.0.s8 %v5357_v1  ;;  %v5391_v54 = vadd.f32 %v5040_v19, %v5176_v33  ;;  %v1624_v55 = vadd.f32 128.0, %v1608_v48  ;;  %v1737_v30 = vunpack.c.1.s8 %v5357_v1 }
 0x1a2   :  { %3997 = vmatpush3.bf16.msra.mxu1 %v6431_v57  ;;  %3553 = vmatmul.mubr.f32.vlgmr.msra.gmra.mrb[34].mxu0 %v471_v29  ;;  %v5387_v29 = vadd.f32 %v1639_v51, %v4555_v7  ;;  %v1625_v61 = vadd.f32 128.0, %v1609_v8  ;;  %v1611_v15 = vcvt.s32.f32 %v1595_v20  ;;  %v1892_v59 = vunpack.c.0.s8 %v5373_v63 }
 0x1a3   :  { %3998 = vmatprep.subr.bf16.mxu1 %v6410_v18  ;;  %4111 = vmatpush3.bf16.msra.mxu0 %v4110_v31  ;;  %v4122_v31 = vpack.c.bf16 %v5351_v28, %v5348_v37  ;;  %v6434_v51 = vpack.c.bf16 %v6432_v42, %v6433_v45  ;;  %v1470_v48 = vadd.f32 128.0, %v1454_v4  ;;  %v1471_v46 = vadd.f32 128.0, %v1455_v50  ;;  %v6436_v45 = vld [vmem:[#allocation14_spill] sm:$0xff] }
 0x1a4   :  { %4112 = vmatprep.subr.bf16.mxu0 %v6410_v18  ;;  %3622 = vmatprep.mubr.msk.f32.mxu0 %vm4380_vm2, %v6409_v0  ;;  %v1626_v27 = vadd.f32 128.0, %v1610_v32  ;;  %v5409_v8 = vadd.f32 %v1484_v13, %v4555_v7  ;;  %v5412_v20 = vadd.f32 %v1485_v22, %v4555_v7  ;;  %v1752_v57 = vcvt.s32.f32 %v1736_v56  ;;  %v6435_v56 = vld [vmem:[#allocation15_spill] sm:$0xff] }
 0x1a5   :  { %v1893_v42 = vunpack.c.1.s8 %v5373_v63  ;;  %v1640_v50 = vmul.f32 %v1624_v55, %v4553_v5  ;;  %v1753_v12 = vcvt.s32.f32 %v1737_v30  ;;  %v1641_v58 = vmul.f32 %v1625_v61, %v4553_v5 }
 0x1a6   :  { %4000 = vmatpush3.bf16.msra.mxu1 %v6434_v51  ;;  %v1627_v13 = vadd.f32 128.0, %v1611_v15  ;;  %v1908_v22 = vcvt.s32.f32 %v1892_v59  ;;  %v6437_v51 = vpack.c.bf16 %v6435_v56, %v6436_v45  ;;  %v1486_v33 = vmul.f32 %v1470_v48, %v4553_v5  ;;  %v5470_v45 = vld [vmem:[%s6345_s3 + $0x128] sm:$0xff] }
 0x1a7   :  { %4001 = vmatprep.subr.bf16.mxu1 %v6410_v18  ;;  %4114 = vmatpush3.bf16.msra.mxu0 %v4113_v16  ;;  %v5423_v16 = vadd.f32 %v5040_v19, %v5200_v17  ;;  %v1487_v25 = vmul.f32 %v1471_v46, %v4553_v5  ;;  %v1642_v4 = vmul.f32 %v1626_v27, %v4553_v5  ;;  %v1738_v55 = vunpack.c.2.s8 %v5357_v1 }
 0x1a8   :  { %4115 = vmatprep.subr.bf16.mxu0 %v6410_v18  ;;  %v1768_v17 = vadd.f32 128.0, %v1752_v57  ;;  %v1909_v30 = vcvt.s32.f32 %v1893_v42  ;;  %v1739_v61 = vunpack.c.3.s8 %v5357_v1  ;;  %v5441_v15 = vadd.f32 %v1640_v50, %v4555_v7  ;;  %v6438_v57 = vld [vmem:[#allocation17_spill] sm:$0xff]  ;;  %v6439_v42 = vld [vmem:[#allocation16_spill] sm:$0xff] }
 0x1a9   :  { %v1769_v59 = vadd.f32 128.0, %v1753_v12  ;;  %v1894_v48 = vunpack.c.2.s8 %v5373_v63  ;;  %v1895_v46 = vunpack.c.3.s8 %v5373_v63  ;;  %v5451_v44 = vadd.f32 %v1641_v58, %v4555_v7 }
 0x1aa   :  { %4003 = vmatpush3.bf16.msra.mxu1 %v6437_v51  ;;  %v1643_v1 = vmul.f32 %v1627_v13, %v4553_v5  ;;  %v1924_v27 = vadd.f32 128.0, %v1908_v22  ;;  %v6440_v50 = vpack.c.bf16 %v6438_v57, %v6439_v42  ;;  %v5459_v12 = vadd.f32 %v1486_v33, %v4555_v7 }
 0x1ab   :  { %4004 = vmatprep.subr.bf16.mxu1 %v6410_v18  ;;  %4117 = vmatpush3.bf16.msra.mxu0 %v4116_v62  ;;  %v5462_v63 = vadd.f32 %v1487_v25, %v4555_v7  ;;  %v5465_v56 = vadd.f32 %v1642_v4, %v4555_v7  ;;  %v1754_v58 = vcvt.s32.f32 %v1738_v55  ;;  %v1784_v33 = vmul.f32 %v1768_v17, %v4553_v5  ;;  %v5478_v4 = vpop.f32.mrb[20].mxu0 }
 0x1ac   :  { %4118 = vmatprep.subr.bf16.mxu0 %v6410_v18  ;;  %v1925_v13 = vadd.f32 128.0, %v1909_v30  ;;  %v1755_v25 = vcvt.s32.f32 %v1739_v61  ;;  %v1740_v22 = vunpack.c.0.s8 %v5448_v2  ;;  %6441 = vst [vmem:[#allocation9_spill] sm:$0xff] %v5478_v4  ;;  %v1785_v51 = vmul.f32 %v1769_v59, %v4553_v5  ;;  %v6442_v30 = vld [vmem:[#allocation19_spill] sm:$0xff]  ;;  %v6443_v61 = vld [vmem:[#allocation18_spill] sm:$0xff] }
 0x1ad   :  { %v1910_v55 = vcvt.s32.f32 %v1894_v48  ;;  %v1911_v57 = vcvt.s32.f32 %v1895_v46  ;;  %v1741_v42 = vunpack.c.1.s8 %v5448_v2  ;;  %v5484_v10 = vadd.f32 %v1643_v1, %v4555_v7 }
 0x1ae   :  { %4006 = vmatpush3.bf16.msra.mxu1 %v6440_v50  ;;  %v439_v50 = vpop.f32.mrb[21].mxu0  ;;  %v1940_v43 = vmul.f32 %v1924_v27, %v4553_v5  ;;  %v1897_v17 = vunpack.c.1.s8 %v5470_v45  ;;  %v6444_v19 = vpack.c.bf16 %v6442_v30, %v6443_v61  ;;  %v4128_v59 = vpack.c.bf16 %v5451_v44, %v5441_v15 }
 0x1af   :  { %4007 = vmatprep.subr.bf16.mxu1 %v6410_v18  ;;  %4120 = vmatpush3.bf16.msra.mxu0 %v4119_v6  ;;  %v1896_v6 = vunpack.c.0.s8 %v5470_v45  ;;  %v1770_v46 = vadd.f32 128.0, %v1754_v58  ;;  %v1742_v1 = vunpack.c.2.s8 %v5448_v2  ;;  %v5502_v27 = vadd.f32 %v1784_v33, %v4555_v7  ;;  %v5505_v15 = vpop.f32.mrb[22].mxu0 }
 0x1b0   :  { %4121 = vmatprep.subr.bf16.mxu0 %v6410_v18  ;;  %v1771_v50 = vadd.f32 128.0, %v1755_v25  ;;  %v1756_v30 = vcvt.s32.f32 %v1740_v22  ;;  %v5509_v44 = vadd.f32 %v1785_v51, %v4555_v7  ;;  %v1926_v58 = vadd.f32 128.0, %v1910_v55  ;;  %v444_v62 = vpop.f32.mrb[23].mxu0  ;;  %v6446_v25 = vld [vmem:[#allocation20_spill] sm:$0xff] }
 0x1b1   :  { %v1927_v61 = vadd.f32 128.0, %v1911_v57  ;;  %v1757_v48 = vcvt.s32.f32 %v1741_v42  ;;  %v4131_v37 = vpack.c.bf16 %v5484_v10, %v5465_v56  ;;  %v5514_v28 = vadd.f32 %v1940_v43, %v4555_v7  ;;  %v5525_v62 = vld [vmem:[%s6345_s3 + $0x130] sm:$0xff] }
 0x1b2   :  { %4009 = vmatpush3.bf16.msra.mxu1 %v6444_v19  ;;  %v1941_v19 = vmul.f32 %v1925_v13, %v4553_v5  ;;  %v1913_v33 = vcvt.s32.f32 %v1897_v17  ;;  %v6445_v13 = vld [vmem:[#allocation21_spill] sm:$0xff]  ;;  %v1786_v32 = vmul.f32 %v1770_v46, %v4553_v5  ;;  %v1743_v51 = vunpack.c.3.s8 %v5448_v2 }
 0x1b3   :  { %4010 = vmatprep.subr.bf16.mxu1 %v6410_v18  ;;  %4123 = vmatpush3.bf16.msra.mxu0 %v4122_v31  ;;  %v1912_v31 = vcvt.s32.f32 %v1896_v6  ;;  %v6447_v22 = vpack.c.bf16 %v6445_v13, %v6446_v25  ;;  %v1758_v55 = vcvt.s32.f32 %v1742_v1  ;;  %v1898_v57 = vunpack.c.2.s8 %v5470_v45  ;;  %v6450_v13 = vld [vmem:[#allocation23_spill] sm:$0xff]  ;;  %v6451_v25 = vld [vmem:[#allocation22_spill] sm:$0xff] }
 0x1b4   :  { %4124 = vmatprep.subr.bf16.mxu0 %v6410_v18  ;;  %v6448_v56 = vpack.c.bf16 %v5387_v29, %v5380_v11  ;;  %v5532_v42 = vadd.f32 %v1941_v19, %v4555_v7  ;;  %v1787_v10 = vmul.f32 %v1771_v50, %v4553_v5  ;;  %v1772_v2 = vadd.f32 128.0, %v1756_v30  ;;  %v5546_v50 = vld [vmem:[%s6345_s3 + $0x110] sm:$0xff] }
 0x1b5   :  { %v1899_v43 = vunpack.c.3.s8 %v5470_v45  ;;  %v1942_v17 = vmul.f32 %v1926_v58, %v4553_v5  ;;  %v1943_v46 = vmul.f32 %v1927_v61, %v4553_v5  ;;  %v1773_v1 = vadd.f32 128.0, %v1757_v48 }
 0x1b6   :  { %4012 = vmatpush3.bf16.msra.mxu1 %v6447_v22  ;;  %v6449_v11 = vmax.f32 %v5268_v39, 0.0  ;;  %v1928_v29 = vadd.f32 128.0, %v1912_v31  ;;  %v1929_v19 = vadd.f32 128.0, %v1913_v33  ;;  %v1900_v45 = vunpack.c.0.s8 %v5525_v62 }
 0x1b7   :  { %4037 = vmatprep.subr.bf16.mxu1 %v6410_v18  ;;  %4126 = vmatpush3.bf16.msra.mxu0 %v6448_v56  ;;  %v1901_v30 = vunpack.c.1.s8 %v5525_v62  ;;  %v6452_v58 = vpack.c.bf16 %v6450_v13, %v6451_v25  ;;  %v5556_v39 = vadd.f32 %v1786_v32, %v4555_v7  ;;  %v1759_v48 = vcvt.s32.f32 %v1743_v51  ;;  %v6454_v13 = vld [vmem:[#allocation25_spill] sm:$0xff]  ;;  %v6455_v25 = vld [vmem:[#allocation24_spill] sm:$0xff] }
 0x1b8   :  { %4127 = vmatprep.subr.bf16.mxu0 %v6410_v18  ;;  %v1774_v61 = vadd.f32 128.0, %v1758_v55  ;;  %v1914_v31 = vcvt.s32.f32 %v1898_v57  ;;  %v4158_v33 = vpack.c.bf16 %v5532_v42, %v5514_v28  ;;  %v5562_v22 = vadd.f32 %v1787_v10, %v4555_v7 }
 0x1b9   :  { %3448 = vmatmul.mubr.f32.vlgmr.msra.gmra.mrb[4].mxu1 %v6449_v11  ;;  %6453 = vst [vmem:[#allocation11_spill] sm:$0xff] %v5556_v39  ;;  %v1788_v56 = vmul.f32 %v1772_v2, %v4553_v5  ;;  %v1915_v11 = vcvt.s32.f32 %v1899_v43  ;;  %v1958_v32 = vadd.f32 %v1942_v17, %v4555_v7  ;;  %v1959_v51 = vadd.f32 %v1943_v46, %v4555_v7 }
 0x1ba   :  { %4039 = vmatpush3.bf16.msra.mxu1 %v6452_v58  ;;  %3517 = vmatprep.mubr.msk.f32.mxu1 %vm4380_vm2, %v6409_v0  ;;  %v1789_v55 = vmul.f32 %v1773_v1, %v4553_v5  ;;  %v1744_v57 = vunpack.c.0.s8 %v5546_v50  ;;  %v1945_v28 = vmul.f32 %v1929_v19, %v4553_v5  ;;  %v1916_v42 = vcvt.s32.f32 %v1900_v45 }
 0x1bb   :  { %4040 = vmatprep.subr.bf16.mxu1 %v6410_v18  ;;  %4129 = vmatpush3.bf16.msra.mxu0 %v4128_v59  ;;  %v1944_v59 = vmul.f32 %v1928_v29, %v4553_v5  ;;  %v1917_v10 = vcvt.s32.f32 %v1901_v30  ;;  %v6456_v2 = vpack.c.bf16 %v6454_v13, %v6455_v25  ;;  %v1775_v43 = vadd.f32 128.0, %v1759_v48 }
 0x1bc   :  { %4130 = vmatprep.subr.bf16.mxu0 %v6410_v18  ;;  %v1790_v58 = vmul.f32 %v1774_v61, %v4553_v5  ;;  %v1930_v17 = vadd.f32 128.0, %v1914_v31  ;;  %v1902_v46 = vunpack.c.2.s8 %v5525_v62  ;;  %v5581_v29 = vadd.f32 %v1788_v56, %v4555_v7 }
 0x1bd   :  { %v1931_v19 = vadd.f32 128.0, %v1915_v11  ;;  %v1903_v45 = vunpack.c.3.s8 %v5525_v62  ;;  %v4161_v30 = vpack.c.bf16 %v1959_v51, %v1958_v32  ;;  %v5586_v48 = vadd.f32 %v1789_v55, %v4555_v7  ;;  %v6458_v62 = vld [vmem:[#allocation27_spill] sm:$0xff] }
 0x1be   :  { %4042 = vmatpush3.bf16.msra.mxu1 %v6456_v2  ;;  %6457 = vst [vmem:[#allocation10_spill] sm:$0xff] %v5581_v29  ;;  %v1745_v61 = vunpack.c.1.s8 %v5546_v50  ;;  %v1760_v31 = vcvt.s32.f32 %v1744_v57  ;;  %v1960_v13 = vadd.f32 %v1944_v59, %v4555_v7  ;;  %v1961_v56 = vadd.f32 %v1945_v28, %v4555_v7  ;;  %v6459_v2 = vld [vmem:[#allocation26_spill] sm:$0xff] }
 0x1bf   :  { %4043 = vmatprep.subr.bf16.mxu1 %v6410_v18  ;;  %4132 = vmatpush3.bf16.msra.mxu0 %v4131_v37  ;;  %v3047_v37 = vld [vmem:[%s6345_s3 + $0x138] sm:$0xff]  ;;  %v1932_v11 = vadd.f32 128.0, %v1916_v42  ;;  %v1933_v25 = vadd.f32 128.0, %v1917_v10  ;;  %v6460_v1 = vpack.c.bf16 %v6458_v62, %v6459_v2  ;;  %v6461_v32 = vmax.f32 %v5423_v16, 0.0 }
 0x1c0   :  { %4157 = vmatprep.subr.bf16.mxu0 %v6410_v18  ;;  %v1791_v51 = vmul.f32 %v1775_v43, %v4553_v5  ;;  %v5601_v55 = vadd.f32 %v1790_v58, %v4555_v7  ;;  %v1946_v57 = vmul.f32 %v1930_v17, %v4553_v5  ;;  %v1918_v6 = vcvt.s32.f32 %v1902_v46  ;;  %v6464_v62 = vld [vmem:[#allocation28_spill] sm:$0xff] }
 0x1c1   :  { %v1947_v59 = vmul.f32 %v1931_v19, %v4553_v5  ;;  %v1919_v28 = vcvt.s32.f32 %v1903_v45  ;;  %v1904_v42 = vunpack.c.0.s8 %v3047_v37  ;;  %v1905_v10 = vunpack.c.1.s8 %v3047_v37  ;;  %v6463_v45 = vld [vmem:[#allocation29_spill] sm:$0xff] }
 0x1c2   :  { %4045 = vmatpush3.bf16.msra.mxu1 %v6460_v1  ;;  %3623 = vmatmul.mubr.f32.vlgmr.msra.gmra.mrb[36].mxu0 %v6461_v32  ;;  %6462 = vst [vmem:[#allocation13_spill] sm:$0xff] %v5601_v55  ;;  %v1761_v16 = vcvt.s32.f32 %v1745_v61  ;;  %v1776_v1 = vadd.f32 128.0, %v1760_v31  ;;  %v1746_v43 = vunpack.c.2.s8 %v5546_v50  ;;  %v1747_v58 = vunpack.c.3.s8 %v5546_v50 }
 0x1c3   :  { %4046 = vmatprep.subr.bf16.mxu1 %v6410_v18  ;;  %4159 = vmatpush3.bf16.msra.mxu0 %v4158_v33  ;;  %v1948_v17 = vmul.f32 %v1932_v11, %v4553_v5  ;;  %v1949_v33 = vmul.f32 %v1933_v25, %v4553_v5  ;;  %v1906_v46 = vunpack.c.2.s8 %v3047_v37  ;;  %v1907_v19 = vunpack.c.3.s8 %v3047_v37  ;;  %v5625_v37 = vld [vmem:[%s6345_s3 + $0x160] sm:$0xff] }
 0x1c4   :  { %4160 = vmatprep.subr.bf16.mxu0 %v6410_v18  ;;  %3692 = vmatprep.mubr.msk.f32.mxu0 %vm4380_vm2, %v6409_v0  ;;  %v6465_v2 = vpack.c.bf16 %v6463_v45, %v6464_v62  ;;  %v4164_v32 = vpack.c.bf16 %v1961_v56, %v1960_v13  ;;  %v5617_v61 = vadd.f32 %v1791_v51, %v4555_v7  ;;  %v1934_v50 = vadd.f32 128.0, %v1918_v6  ;;  %v5683_v62 = vpop.f32.mrb[24].mxu0 }
 0x1c5   :  { %v1962_v31 = vadd.f32 %v1946_v57, %v4555_v7  ;;  %v1963_v11 = vadd.f32 %v1947_v59, %v4555_v7  ;;  %v1935_v4 = vadd.f32 128.0, %v1919_v28  ;;  %v1920_v25 = vcvt.s32.f32 %v1904_v42  ;;  %v6467_v42 = vld [vmem:[#allocation31_spill] sm:$0xff]  ;;  %v449_v29 = vpop.f32.mrb[25].mxu0 }
 0x1c6   :  { %4048 = vmatpush3.bf16.msra.mxu1 %v6465_v2  ;;  %6466 = vst [vmem:[#allocation12_spill] sm:$0xff] %v5617_v61  ;;  %v1921_v39 = vcvt.s32.f32 %v1905_v10  ;;  %v1777_v13 = vadd.f32 128.0, %v1761_v16  ;;  %v1792_v56 = vmul.f32 %v1776_v1, %v4553_v5  ;;  %v1762_v51 = vcvt.s32.f32 %v1746_v43  ;;  %v6468_v10 = vld [vmem:[#allocation30_spill] sm:$0xff] }
 0x1c7   :  { %4049 = vmatprep.subr.bf16.mxu1 %v6410_v18  ;;  %4162 = vmatpush3.bf16.msra.mxu0 %v4161_v30  ;;  %v1763_v6 = vcvt.s32.f32 %v1747_v58  ;;  %v1964_v57 = vadd.f32 %v1948_v17, %v4555_v7  ;;  %v1965_v30 = vadd.f32 %v1949_v33, %v4555_v7  ;;  %v1922_v59 = vcvt.s32.f32 %v1906_v46 }
 0x1c8   :  { %4163 = vmatprep.subr.bf16.mxu0 %v6410_v18  ;;  %v1923_v28 = vcvt.s32.f32 %v1907_v19  ;;  %v6469_v45 = vpack.c.bf16 %v6467_v42, %v6468_v10  ;;  %v1950_v2 = vmul.f32 %v1934_v50, %v4553_v5  ;;  %v2204_v16 = vunpack.c.0.s8 %v5625_v37 }
 0x1c9   :  { %v2205_v1 = vunpack.c.1.s8 %v5625_v37  ;;  %v4167_v43 = vpack.c.bf16 %v1963_v11, %v1962_v31  ;;  %v1951_v58 = vmul.f32 %v1935_v4, %v4553_v5  ;;  %v1936_v17 = vadd.f32 128.0, %v1920_v25  ;;  %v6470_v31 = vld [vmem:[#allocation33_spill] sm:$0xff]  ;;  %v6471_v11 = vld [vmem:[#allocation32_spill] sm:$0xff] }
 0x1ca   :  { %4051 = vmatpush3.bf16.msra.mxu1 %v6469_v45  ;;  %v1937_v33 = vadd.f32 128.0, %v1921_v39  ;;  %v1793_v19 = vmul.f32 %v1777_v13, %v4553_v5  ;;  %v1778_v50 = vadd.f32 128.0, %v1762_v51  ;;  %v1779_v42 = vadd.f32 128.0, %v1763_v6 }
 0x1cb   :  { %4052 = vmatprep.subr.bf16.mxu1 %v6410_v18  ;;  %4165 = vmatpush3.bf16.msra.mxu0 %v4164_v32  ;;  %v5646_v10 = vadd.f32 %v1792_v56, %v4555_v7  ;;  %v4170_v45 = vpack.c.bf16 %v1965_v30, %v1964_v57  ;;  %v5651_v32 = vld [vmem:[%s6345_s3 + $0x118] sm:$0xff]  ;;  %v1938_v4 = vadd.f32 128.0, %v1922_v59  ;;  %v1939_v39 = vadd.f32 128.0, %v1923_v28  ;;  %v5661_v56 = vld [vmem:[%s6345_s3 + $0x168] sm:$0xff] }
 0x1cc   :  { %4166 = vmatprep.subr.bf16.mxu0 %v6410_v18  ;;  %v6472_v25 = vpack.c.bf16 %v6470_v31, %v6471_v11  ;;  %v1966_v46 = vadd.f32 %v1950_v2, %v4555_v7  ;;  %v2220_v13 = vcvt.s32.f32 %v2204_v16  ;;  %v2221_v51 = vcvt.s32.f32 %v2205_v1 }
 0x1cd   :  { %v2206_v6 = vunpack.c.2.s8 %v5625_v37  ;;  %v1967_v57 = vadd.f32 %v1951_v58, %v4555_v7  ;;  %v1952_v30 = vmul.f32 %v1936_v17, %v4553_v5  ;;  %v1953_v59 = vmul.f32 %v1937_v33, %v4553_v5 }
 0x1ce   :  { %4054 = vmatpush3.bf16.msra.mxu1 %v6472_v25  ;;  %v2207_v28 = vunpack.c.3.s8 %v5625_v37  ;;  %v1794_v2 = vmul.f32 %v1778_v50, %v4553_v5  ;;  %v1795_v16 = vmul.f32 %v1779_v42, %v4553_v5  ;;  %v1748_v1 = vunpack.c.0.s8 %v5651_v32 }
 0x1cf   :  { %4055 = vmatprep.subr.bf16.mxu1 %v6410_v18  ;;  %4168 = vmatpush3.bf16.msra.mxu0 %v4167_v43  ;;  %v1749_v31 = vunpack.c.1.s8 %v5651_v32  ;;  %v1954_v43 = vmul.f32 %v1938_v4, %v4553_v5  ;;  %v1955_v58 = vmul.f32 %v1939_v39, %v4553_v5  ;;  %v2208_v17 = vunpack.c.0.s8 %v5661_v56 }
 0x1d0   :  { %4169 = vmatprep.subr.bf16.mxu0 %v6410_v18  ;;  %v2209_v33 = vunpack.c.1.s8 %v5661_v56  ;;  %v6473_v37 = vpack.c.bf16 %v5081_v24, %v5070_v26  ;;  %v5681_v50 = vadd.f32 %v1793_v19, %v4555_v7  ;;  %v2236_v42 = vadd.f32 128.0, %v2220_v13 }
 0x1d1   :  { %v2237_v11 = vadd.f32 128.0, %v2221_v51  ;;  %v2222_v25 = vcvt.s32.f32 %v2206_v6  ;;  %v4173_v4 = vpack.c.bf16 %v1967_v57, %v1966_v46  ;;  %v1968_v39 = vadd.f32 %v1952_v30, %v4555_v7  ;;  %v6474_v57 = vld [vmem:[#allocation34_spill] sm:$0xff] }
 0x1d2   :  { %4057 = vmatpush3.bf16.msra.mxu1 %v6473_v37  ;;  %v1969_v55 = vadd.f32 %v1953_v59, %v4555_v7  ;;  %v2223_v61 = vcvt.s32.f32 %v2207_v28  ;;  %v5689_v24 = vadd.f32 %v1794_v2, %v4555_v7  ;;  %v5692_v26 = vadd.f32 %v1795_v16, %v4555_v7  ;;  %v5703_v16 = vpop.f32.mrb[26].mxu0 }
 0x1d3   :  { %4058 = vmatprep.subr.bf16.mxu1 %v6410_v18  ;;  %4171 = vmatpush3.bf16.msra.mxu0 %v4170_v45  ;;  %v1764_v19 = vcvt.s32.f32 %v1748_v1  ;;  %v1765_v13 = vcvt.s32.f32 %v1749_v31  ;;  %v1970_v51 = vadd.f32 %v1954_v43, %v4555_v7  ;;  %v1971_v46 = vadd.f32 %v1955_v58, %v4555_v7  ;;  %v454_v58 = vpop.f32.mrb[27].mxu0 }
 0x1d4   :  { %4172 = vmatprep.subr.bf16.mxu0 %v6410_v18  ;;  %v2224_v45 = vcvt.s32.f32 %v2208_v17  ;;  %v2225_v6 = vcvt.s32.f32 %v2209_v33  ;;  %v6475_v30 = vpack.c.bf16 %v5105_v9, %v6474_v57  ;;  %v2252_v29 = vmul.f32 %v2236_v42, %v4553_v5  ;;  %v5714_v33 = vld [vmem:[%s6344_s2] ss:$0 sm:$0xff] }
 0x1d5   :  { %v2253_v59 = vmul.f32 %v2237_v11, %v4553_v5  ;;  %v2238_v28 = vadd.f32 128.0, %v2222_v25  ;;  %v2210_v2 = vunpack.c.2.s8 %v5661_v56  ;;  %v4146_v1 = vpack.c.bf16 %v5681_v50, %v5646_v10 }
 0x1d6   :  { %4060 = vmatpush3.bf16.msra.mxu1 %v6475_v30  ;;  %v4176_v31 = vpack.c.bf16 %v1969_v55, %v1968_v39  ;;  %v2239_v43 = vadd.f32 128.0, %v2223_v61  ;;  %v2211_v9 = vunpack.c.3.s8 %v5661_v56  ;;  %v4149_v17 = vpack.c.bf16 %v5692_v26, %v5689_v24  ;;  %v3054_v61 = vld [vmem:[%s6345_s3 + $0x170] sm:$0xff] }
 0x1d7   :  { %4085 = vmatprep.subr.bf16.mxu1 %v6410_v18  ;;  %4174 = vmatpush3.bf16.msra.mxu0 %v4173_v4  ;;  %v5718_v37 = vadd.f32 %v5714_v33, %v5230_v38  ;;  %v1780_v42 = vadd.f32 128.0, %v1764_v19  ;;  %v433_v55 = vadd.f32 %v5714_v33, %v5264_v47  ;;  %v6476_v56 = vmax.f32 %v5328_v14, 0.0 }
 0x1d8   :  { %4175 = vmatprep.subr.bf16.mxu0 %v6410_v18  ;;  %v1781_v11 = vadd.f32 128.0, %v1765_v13  ;;  %v4179_v25 = vpack.c.bf16 %v1971_v46, %v1970_v51  ;;  %v2240_v4 = vadd.f32 128.0, %v2224_v45  ;;  %v2241_v39 = vadd.f32 128.0, %v2225_v6 }
 0x1d9   :  { %3518 = vmatmul.mubr.f32.vlgmr.msra.gmra.mrb[6].mxu1 %v6476_v56  ;;  %v6477_v38 = vpack.c.bf16 %v5160_v3, %v5155_v52  ;;  %v2268_v47 = vadd.f32 %v2252_v29, %v4555_v7  ;;  %v2269_v19 = vadd.f32 %v2253_v59, %v4555_v7  ;;  %v2254_v57 = vmul.f32 %v2238_v28, %v4553_v5  ;;  %v5745_v29 = vld [vmem:[%s6345_s3 + $0x140] sm:$0xff] }
 0x1da   :  { %3587 = vmatprep.mubr.msk.f32.mxu1 %vm4380_vm2, %v6409_v0  ;;  %v2226_v30 = vcvt.s32.f32 %v2210_v2  ;;  %v2255_v14 = vmul.f32 %v2239_v43, %v4553_v5  ;;  %v2227_v13 = vcvt.s32.f32 %v2211_v9  ;;  %v2212_v51 = vunpack.c.0.s8 %v3054_v61 }
 0x1db   :  { %4087 = vmatpush3.bf16.msra.mxu1 %v6477_v38  ;;  %4177 = vmatpush3.bf16.msra.mxu0 %v4176_v31  ;;  %v2213_v46 = vunpack.c.1.s8 %v3054_v61  ;;  %v1796_v52 = vmul.f32 %v1780_v42, %v4553_v5  ;;  %v475_v3 = vmax.f32 %v433_v55, 0.0  ;;  %v1750_v45 = vunpack.c.2.s8 %v5651_v32 }
 0x1dc   :  { %4088 = vmatprep.subr.bf16.mxu1 %v6410_v18  ;;  %v1751_v6 = vunpack.c.3.s8 %v5651_v32  ;;  %4178 = vmatprep.subr.bf16.mxu0 %v6410_v18  ;;  %v2256_v59 = vmul.f32 %v2240_v4, %v4553_v5  ;;  %v2257_v28 = vmul.f32 %v2241_v39, %v4553_v5  ;;  %v2214_v2 = vunpack.c.2.s8 %v3054_v61 }
 0x1dd   :  { %v2215_v31 = vunpack.c.3.s8 %v3054_v61  ;;  %v6478_v43 = vpack.c.bf16 %v5179_v23, %v5174_v60  ;;  %v1797_v9 = vmul.f32 %v1781_v11, %v4553_v5  ;;  %v4206_v32 = vpack.c.bf16 %v2269_v19, %v2268_v47  ;;  %v3055_v61 = vld [vmem:[%s6345_s3 + $0x178] sm:$0xff] }
 0x1de   :  { %v2270_v58 = vadd.f32 %v2254_v57, %v4555_v7  ;;  %v2242_v42 = vadd.f32 128.0, %v2226_v30  ;;  %v2271_v55 = vadd.f32 %v2255_v14, %v4555_v7  ;;  %v2243_v56 = vadd.f32 128.0, %v2227_v13 }
 0x1df   :  { %4090 = vmatpush3.bf16.msra.mxu1 %v6478_v43  ;;  %4180 = vmatpush3.bf16.msra.mxu0 %v4179_v25  ;;  %v2228_v4 = vcvt.s32.f32 %v2212_v51  ;;  %v2229_v39 = vcvt.s32.f32 %v2213_v46  ;;  %v1766_v60 = vcvt.s32.f32 %v1750_v45  ;;  %v1767_v23 = vcvt.s32.f32 %v1751_v6 }
 0x1e0   :  { %4091 = vmatprep.subr.bf16.mxu1 %v6410_v18  ;;  %v2048_v11 = vunpack.c.0.s8 %v5745_v29  ;;  %v2049_v38 = vunpack.c.1.s8 %v5745_v29  ;;  %4205 = vmatprep.subr.bf16.mxu0 %v6410_v18  ;;  %v2272_v47 = vadd.f32 %v2256_v59, %v4555_v7  ;;  %v2273_v25 = vadd.f32 %v2257_v28, %v4555_v7 }
 0x1e1   :  { %v2230_v19 = vcvt.s32.f32 %v2214_v2  ;;  %v2231_v57 = vcvt.s32.f32 %v2215_v31  ;;  %v6479_v30 = vpack.c.bf16 %v5244_v34, %v5227_v35  ;;  %v5768_v14 = vadd.f32 %v1796_v52, %v4555_v7 }
 0x1e2   :  { %3693 = vmatmul.mubr.f32.vlgmr.msra.gmra.mrb[38].mxu0 %v475_v3  ;;  %v2258_v13 = vmul.f32 %v2242_v42, %v4553_v5  ;;  %v2216_v51 = vunpack.c.0.s8 %v3055_v61  ;;  %v2217_v46 = vunpack.c.1.s8 %v3055_v61  ;;  %v4209_v45 = vpack.c.bf16 %v2271_v55, %v2270_v58 }
 0x1e3   :  { %4093 = vmatpush3.bf16.msra.mxu1 %v6479_v30  ;;  %4207 = vmatpush3.bf16.msra.mxu0 %v4206_v32  ;;  %v2259_v6 = vmul.f32 %v2243_v56, %v4553_v5  ;;  %v2244_v59 = vadd.f32 128.0, %v2228_v4  ;;  %v2245_v28 = vadd.f32 128.0, %v2229_v39  ;;  %v5774_v2 = vadd.f32 %v1797_v9, %v4555_v7 }
 0x1e4   :  { %4094 = vmatprep.subr.bf16.mxu1 %v6410_v18  ;;  %v1782_v35 = vadd.f32 128.0, %v1766_v60  ;;  %v2064_v34 = vcvt.s32.f32 %v2048_v11  ;;  %v2065_v52 = vcvt.s32.f32 %v2049_v38  ;;  %4208 = vmatprep.subr.bf16.mxu0 %v6410_v18  ;;  %v1783_v3 = vadd.f32 128.0, %v1767_v23 }
 0x1e5   :  { %3762 = vmatprep.mubr.msk.f32.mxu0 %vm4380_vm2, %v6409_v0  ;;  %v4212_v31 = vpack.c.bf16 %v2273_v25, %v2272_v47  ;;  %v2246_v43 = vadd.f32 128.0, %v2230_v19  ;;  %v2247_v32 = vadd.f32 128.0, %v2231_v57  ;;  %v6480_v58 = vpack.c.bf16 %v5271_v40, %v5257_v21  ;;  %v5794_v47 = vld [vmem:[%s6345_s3 + $0x1a0] sm:$0xff] }
 0x1e6   :  { %v2274_v42 = vadd.f32 %v2258_v13, %v4555_v7  ;;  %v2232_v9 = vcvt.s32.f32 %v2216_v51  ;;  %v2233_v55 = vcvt.s32.f32 %v2217_v46  ;;  %v2218_v56 = vunpack.c.2.s8 %v3055_v61 }
 0x1e7   :  { %4096 = vmatpush3.bf16.msra.mxu1 %v6480_v58  ;;  %v474_v4 = vmax.f32 %v5718_v37, 0.0  ;;  %4210 = vmatpush3.bf16.msra.mxu0 %v4209_v45  ;;  %v2275_v39 = vadd.f32 %v2259_v6, %v4555_v7  ;;  %v2260_v60 = vmul.f32 %v2244_v59, %v4553_v5  ;;  %v2261_v23 = vmul.f32 %v2245_v28, %v4553_v5 }
 0x1e8   :  { %4097 = vmatprep.subr.bf16.mxu1 %v6410_v18  ;;  %v4152_v21 = vpack.c.bf16 %v5774_v2, %v5768_v14  ;;  %v2080_v40 = vadd.f32 128.0, %v2064_v34  ;;  %v2081_v11 = vadd.f32 128.0, %v2065_v52  ;;  %4211 = vmatprep.subr.bf16.mxu0 %v6410_v18  ;;  %v2219_v38 = vunpack.c.3.s8 %v3055_v61 }
 0x1e9   :  { %v1798_v25 = vmul.f32 %v1782_v35, %v4553_v5  ;;  %v1799_v19 = vmul.f32 %v1783_v3, %v4553_v5  ;;  %v2262_v57 = vmul.f32 %v2246_v43, %v4553_v5  ;;  %v2263_v30 = vmul.f32 %v2247_v32, %v4553_v5 }
 0x1ea   :  { %v6481_v13 = vpack.c.bf16 %v5320_v53, %v5313_v41  ;;  %v2248_v51 = vadd.f32 128.0, %v2232_v9  ;;  %v2249_v46 = vadd.f32 128.0, %v2233_v55  ;;  %v2234_v61 = vcvt.s32.f32 %v2218_v56 }
 0x1eb   :  { %v2235_v45 = vcvt.s32.f32 %v2219_v38  ;;  %4213 = vmatpush3.bf16.msra.mxu0 %v4212_v31  ;;  %v4215_v6 = vpack.c.bf16 %v2275_v39, %v2274_v42  ;;  %v2276_v59 = vadd.f32 %v2260_v60, %v4555_v7  ;;  %v2277_v28 = vadd.f32 %v2261_v23, %v4555_v7  ;;  %v5824_v42 = vld [vmem:[%s6345_s3 + $0x148] sm:$0xff]  ;;  %v5832_v23 = vpop.f32.mrb[28].mxu0 }
 0x1ec   :  { %4099 = vmatpush3.bf16.msra.mxu1 %v6481_v13  ;;  %v2516_v35 = vunpack.c.0.s8 %v5794_v47  ;;  %v2096_v34 = vmul.f32 %v2080_v40, %v4553_v5  ;;  %v2097_v52 = vmul.f32 %v2081_v11, %v4553_v5  ;;  %v2050_v41 = vunpack.c.2.s8 %v5745_v29  ;;  %4214 = vmatprep.subr.bf16.mxu0 %v6410_v18 }
 0x1ed   :  { %4100 = vmatprep.subr.bf16.mxu1 %v6410_v18  ;;  %v2051_v53 = vunpack.c.3.s8 %v5745_v29  ;;  %v5813_v3 = vadd.f32 %v1798_v25, %v4555_v7  ;;  %v2278_v31 = vadd.f32 %v2262_v57, %v4555_v7  ;;  %v2279_v43 = vadd.f32 %v2263_v30, %v4555_v7  ;;  %v459_v57 = vpop.f32.mrb[29].mxu0 }
 0x1ee   :  { %v2517_v32 = vunpack.c.1.s8 %v5794_v47  ;;  %v6482_v58 = vpack.c.bf16 %v5368_v49, %v5361_v36  ;;  %v2264_v29 = vmul.f32 %v2248_v51, %v4553_v5  ;;  %v2265_v9 = vmul.f32 %v2249_v46, %v4553_v5 }
 0x1ef   :  { %v2250_v55 = vadd.f32 128.0, %v2234_v61  ;;  %v2251_v56 = vadd.f32 128.0, %v2235_v45  ;;  %v5830_v39 = vadd.f32 %v1799_v19, %v4555_v7  ;;  %4216 = vmatpush3.bf16.msra.mxu0 %v4215_v6  ;;  %v4218_v60 = vpack.c.bf16 %v2277_v28, %v2276_v59 }
 0x1f0   :  { %4102 = vmatpush3.bf16.msra.mxu1 %v6482_v58  ;;  %v2532_v36 = vcvt.s32.f32 %v2516_v35  ;;  %v2533_v49 = vcvt.s32.f32 %v2517_v32  ;;  %v5835_v40 = vadd.f32 %v2096_v34, %v4555_v7  ;;  %v5838_v11 = vadd.f32 %v2097_v52, %v4555_v7  ;;  %4217 = vmatprep.subr.bf16.mxu0 %v6410_v18 }
 0x1f1   :  { %4103 = vmatprep.subr.bf16.mxu1 %v6410_v18  ;;  %v2066_v38 = vcvt.s32.f32 %v2050_v41  ;;  %v2067_v25 = vcvt.s32.f32 %v2051_v53  ;;  %v2052_v19 = vunpack.c.0.s8 %v5824_v42  ;;  %v2053_v30 = vunpack.c.1.s8 %v5824_v42 }
 0x1f2   :  { %v4221_v13 = vpack.c.bf16 %v2279_v43, %v2278_v31  ;;  %v2518_v51 = vunpack.c.2.s8 %v5794_v47  ;;  %v6483_v46 = vpack.c.bf16 %v5412_v20, %v5409_v8  ;;  %v2280_v61 = vadd.f32 %v2264_v29, %v4555_v7  ;;  %v5856_v8 = vld [vmem:[%s6345_s3 + $0x1a8] sm:$0xff]  ;;  %v5858_v20 = vpop.f32.mrb[30].mxu0 }
 0x1f3   :  { %v2281_v45 = vadd.f32 %v2265_v9, %v4555_v7  ;;  %v2266_v6 = vmul.f32 %v2250_v55, %v4553_v5  ;;  %v2267_v59 = vmul.f32 %v2251_v56, %v4553_v5  ;;  %4219 = vmatpush3.bf16.msra.mxu0 %v4218_v60  ;;  %v2548_v28 = vadd.f32 128.0, %v2532_v36  ;;  %v464_v32 = vpop.f32.mrb[31].mxu0 }
 0x1f4   :  { %4105 = vmatpush3.bf16.msra.mxu1 %v6483_v46  ;;  %v2549_v35 = vadd.f32 128.0, %v2533_v49  ;;  %v2519_v34 = vunpack.c.3.s8 %v5794_v47  ;;  %v2534_v52 = vcvt.s32.f32 %v2518_v51  ;;  %v4155_v41 = vpack.c.bf16 %v5830_v39, %v5813_v3  ;;  %4220 = vmatprep.subr.bf16.mxu0 %v6410_v18 }
 0x1f5   :  { %4106 = vmatprep.subr.bf16.mxu1 %v6410_v18  ;;  %v4182_v53 = vpack.c.bf16 %v5838_v11, %v5835_v40  ;;  %v2082_v31 = vadd.f32 128.0, %v2066_v38  ;;  %v2083_v43 = vadd.f32 128.0, %v2067_v25  ;;  %v2068_v47 = vcvt.s32.f32 %v2052_v19 }
 0x1f6   :  { %v2069_v58 = vcvt.s32.f32 %v2053_v30  ;;  %v2054_v29 = vunpack.c.2.s8 %v5824_v42  ;;  %v2535_v9 = vcvt.s32.f32 %v2519_v34  ;;  %v6484_v55 = vpack.c.bf16 %v5462_v63, %v5459_v12 }
 0x1f7   :  { %v4224_v56 = vpack.c.bf16 %v2281_v45, %v2280_v61  ;;  %v2282_v60 = vadd.f32 %v2266_v6, %v4555_v7  ;;  %v2550_v36 = vadd.f32 128.0, %v2534_v52  ;;  %v2520_v49 = vunpack.c.0.s8 %v5856_v8  ;;  %4222 = vmatpush3.bf16.msra.mxu0 %v4221_v13 }
 0x1f8   :  { %4108 = vmatpush3.bf16.msra.mxu1 %v6484_v55  ;;  %v2283_v38 = vadd.f32 %v2267_v59, %v4555_v7  ;;  %v2564_v25 = vmul.f32 %v2548_v28, %v4553_v5  ;;  %v2565_v57 = vmul.f32 %v2549_v35, %v4553_v5  ;;  %v2551_v19 = vadd.f32 128.0, %v2535_v9  ;;  %4223 = vmatprep.subr.bf16.mxu0 %v6410_v18 }
 0x1f9   :  { %4133 = vmatprep.subr.bf16.mxu1 %v6410_v18  ;;  %v2098_v30 = vmul.f32 %v2082_v31, %v4553_v5  ;;  %v2055_v12 = vunpack.c.3.s8 %v5824_v42  ;;  %v2521_v63 = vunpack.c.1.s8 %v5856_v8  ;;  %v2536_v51 = vcvt.s32.f32 %v2520_v49 }
 0x1fa   :  { %v6485_v46 = vmax.f32 %v5391_v54, 0.0  ;;  %v2099_v13 = vmul.f32 %v2083_v43, %v4553_v5  ;;  %v2084_v61 = vadd.f32 128.0, %v2068_v47  ;;  %v2085_v45 = vadd.f32 128.0, %v2069_v58  ;;  %v5892_v54 = vld [vmem:[%s6345_s3 + $0x150] sm:$0xff] }
 0x1fb   :  { %v443_v6 = vadd.f32 %v5714_v33, %v5505_v15  ;;  %v6486_v59 = vpack.c.bf16 %v5509_v44, %v5502_v27  ;;  %v2070_v42 = vcvt.s32.f32 %v2054_v29  ;;  %v2566_v28 = vmul.f32 %v2550_v36, %v4553_v5  ;;  %4225 = vmatpush3.bf16.msra.mxu0 %v4224_v56  ;;  %v6487_v56 = vld [vmem:[#allocation11_spill] sm:$0xff] }
 0x1fc   :  { %3588 = vmatmul.mubr.f32.vlgmr.msra.gmra.mrb[8].mxu1 %v6485_v46  ;;  %v2567_v35 = vmul.f32 %v2551_v19, %v4553_v5  ;;  %v2537_v34 = vcvt.s32.f32 %v2521_v63  ;;  %v4227_v15 = vpack.c.bf16 %v2283_v38, %v2282_v60  ;;  %v2580_v27 = vadd.f32 %v2564_v25, %v4555_v7  ;;  %4226 = vmatprep.subr.bf16.mxu0 %v6410_v18 }
 0x1fd   :  { %4135 = vmatpush3.bf16.msra.mxu1 %v6486_v59  ;;  %3657 = vmatprep.mubr.msk.f32.mxu1 %vm4380_vm2, %v6409_v0  ;;  %v2581_v44 = vadd.f32 %v2565_v57, %v4555_v7  ;;  %v2552_v52 = vadd.f32 128.0, %v2536_v51  ;;  %v5900_v31 = vadd.f32 %v2098_v30, %v4555_v7  ;;  %v2071_v43 = vcvt.s32.f32 %v2055_v12  ;;  %v5916_v57 = vld [vmem:[%s6345_s3 + $0x1b0] sm:$0xff] }
 0x1fe   :  { %4136 = vmatprep.subr.bf16.mxu1 %v6410_v18  ;;  %v2553_v32 = vadd.f32 128.0, %v2537_v34  ;;  %v2522_v47 = vunpack.c.2.s8 %v5856_v8  ;;  %v2100_v58 = vmul.f32 %v2084_v61, %v4553_v5  ;;  %v2101_v29 = vmul.f32 %v2085_v45, %v4553_v5 }
 0x1ff   :  { %v2056_v9 = vunpack.c.0.s8 %v5892_v54  ;;  %v477_v55 = vmax.f32 %v443_v6, 0.0  ;;  %v6488_v60 = vpack.c.bf16 %v5562_v22, %v6487_v56  ;;  %v2582_v36 = vadd.f32 %v2566_v28, %v4555_v7  ;;  %4228 = vmatpush3.bf16.msra.mxu0 %v4227_v15 }
 0x200   :  { %v2583_v49 = vadd.f32 %v2567_v35, %v4555_v7  ;;  %v2523_v38 = vunpack.c.3.s8 %v5856_v8  ;;  %v2538_v25 = vcvt.s32.f32 %v2522_v47  ;;  %v2086_v19 = vadd.f32 128.0, %v2070_v42  ;;  %4253 = vmatprep.subr.bf16.mxu0 %v6410_v18  ;;  %v6489_v42 = vld [vmem:[#allocation10_spill] sm:$0xff] }
 0x201   :  { %4138 = vmatpush3.bf16.msra.mxu1 %v6488_v60  ;;  %v4254_v30 = vpack.c.bf16 %v2581_v44, %v2580_v27  ;;  %v2568_v22 = vmul.f32 %v2552_v52, %v4553_v5  ;;  %v2569_v12 = vmul.f32 %v2553_v32, %v4553_v5  ;;  %v2087_v63 = vadd.f32 128.0, %v2071_v43  ;;  %v6491_v60 = vld [vmem:[#allocation12_spill] sm:$0xff] }
 0x202   :  { %4139 = vmatprep.subr.bf16.mxu1 %v6410_v18  ;;  %v2057_v51 = vunpack.c.1.s8 %v5892_v54  ;;  %v2539_v8 = vcvt.s32.f32 %v2523_v38  ;;  %v2554_v46 = vadd.f32 128.0, %v2538_v25  ;;  %v5924_v61 = vadd.f32 %v2099_v13, %v4555_v7  ;;  %3763 = vmatmul.mubr.f32.vlgmr.msra.gmra.mrb[40].mxu0 %v477_v55 }
 0x203   :  { %v5927_v45 = vadd.f32 %v2100_v58, %v4555_v7  ;;  %v5930_v6 = vadd.f32 %v2101_v29, %v4555_v7  ;;  %v2524_v59 = vunpack.c.0.s8 %v5916_v57  ;;  %v6490_v28 = vpack.c.bf16 %v5586_v48, %v6489_v42  ;;  %4255 = vmatpush3.bf16.msra.mxu0 %v4254_v30  ;;  %3832 = vmatprep.mubr.msk.f32.mxu0 %vm4380_vm2, %v6409_v0 }
 0x204   :  { %v2072_v35 = vcvt.s32.f32 %v2056_v9  ;;  %v4257_v34 = vpack.c.bf16 %v2583_v49, %v2582_v36  ;;  %v2555_v15 = vadd.f32 128.0, %v2539_v8  ;;  %v2570_v27 = vmul.f32 %v2554_v46, %v4553_v5  ;;  %4256 = vmatprep.subr.bf16.mxu0 %v6410_v18  ;;  %v6492_v36 = vld [vmem:[#allocation13_spill] sm:$0xff] }
 0x205   :  { %4141 = vmatpush3.bf16.msra.mxu1 %v6490_v28  ;;  %v2584_v13 = vadd.f32 %v2568_v22, %v4555_v7  ;;  %v2585_v44 = vadd.f32 %v2569_v12, %v4555_v7  ;;  %v2525_v52 = vunpack.c.1.s8 %v5916_v57  ;;  %v2540_v43 = vcvt.s32.f32 %v2524_v59  ;;  %v3051_v22 = vld [vmem:[%s6345_s3 + $0x158] sm:$0xff] }
 0x206   :  { %4142 = vmatprep.subr.bf16.mxu1 %v6410_v18  ;;  %v2102_v32 = vmul.f32 %v2086_v19, %v4553_v5  ;;  %v2103_v48 = vmul.f32 %v2087_v63, %v4553_v5  ;;  %v2073_v47 = vcvt.s32.f32 %v2057_v51  ;;  %v2571_v58 = vmul.f32 %v2555_v15, %v4553_v5 }
 0x207   :  { %v4185_v29 = vpack.c.bf16 %v5924_v61, %v5900_v31  ;;  %v2058_v9 = vunpack.c.2.s8 %v5892_v54  ;;  %v2541_v55 = vcvt.s32.f32 %v2525_v52  ;;  %v2556_v56 = vadd.f32 128.0, %v2540_v43  ;;  %4258 = vmatpush3.bf16.msra.mxu0 %v4257_v34 }
 0x208   :  { %v6493_v49 = vpack.c.bf16 %v6491_v60, %v6492_v36  ;;  %v2088_v38 = vadd.f32 128.0, %v2072_v35  ;;  %v2059_v25 = vunpack.c.3.s8 %v5892_v54  ;;  %v2586_v19 = vadd.f32 %v2570_v27, %v4555_v7  ;;  %4259 = vmatprep.subr.bf16.mxu0 %v6410_v18 }
 0x209   :  { %v2587_v30 = vadd.f32 %v2571_v58, %v4555_v7  ;;  %v4260_v12 = vpack.c.bf16 %v2585_v44, %v2584_v13  ;;  %v2557_v63 = vadd.f32 128.0, %v2541_v55  ;;  %v2572_v51 = vmul.f32 %v2556_v56, %v4553_v5 }
 0x20a   :  { %4144 = vmatpush3.bf16.msra.mxu1 %v6493_v49  ;;  %v2526_v8 = vunpack.c.2.s8 %v5916_v57  ;;  %v4188_v54 = vpack.c.bf16 %v5930_v6, %v5927_v45  ;;  %v5965_v46 = vadd.f32 %v2102_v32, %v4555_v7  ;;  %v5968_v59 = vadd.f32 %v2103_v48, %v4555_v7 }
 0x20b   :  { %4145 = vmatprep.subr.bf16.mxu1 %v6410_v18  ;;  %v2089_v42 = vadd.f32 128.0, %v2073_v47  ;;  %v2074_v28 = vcvt.s32.f32 %v2058_v9  ;;  %v2573_v35 = vmul.f32 %v2557_v63, %v4553_v5  ;;  %v2527_v34 = vunpack.c.3.s8 %v5916_v57  ;;  %4261 = vmatpush3.bf16.msra.mxu0 %v4260_v12  ;;  %v3063_v57 = vld [vmem:[%s6345_s3 + $0x1b8] sm:$0xff] }
 0x20c   :  { %v2542_v15 = vcvt.s32.f32 %v2526_v8  ;;  %v2104_v27 = vmul.f32 %v2088_v38, %v4553_v5  ;;  %v2075_v13 = vcvt.s32.f32 %v2059_v25  ;;  %v2060_v44 = vunpack.c.0.s8 %v3051_v22  ;;  %4262 = vmatprep.subr.bf16.mxu0 %v6410_v18 }
 0x20d   :  { %v4263_v52 = vpack.c.bf16 %v2587_v30, %v2586_v19  ;;  %v2588_v43 = vadd.f32 %v2572_v51, %v4555_v7  ;;  %v2589_v32 = vadd.f32 %v2573_v35, %v4555_v7  ;;  %v2543_v48 = vcvt.s32.f32 %v2527_v34  ;;  %v5998_v30 = vld [vmem:[%s6345_s3 + $0x180] sm:$0xff] }
 0x20e   :  { %4147 = vmatpush3.bf16.msra.mxu1 %v4146_v1  ;;  %v2558_v47 = vadd.f32 128.0, %v2542_v15  ;;  %v4191_v10 = vpack.c.bf16 %v5968_v59, %v5965_v46  ;;  %v2105_v50 = vmul.f32 %v2089_v42, %v4553_v5  ;;  %v2061_v1 = vunpack.c.1.s8 %v3051_v22  ;;  %v6494_v34 = vld [vmem:[#allocation9_spill] sm:$0xff] }
 0x20f   :  { %4148 = vmatprep.subr.bf16.mxu1 %v6410_v18  ;;  %v2062_v58 = vunpack.c.2.s8 %v3051_v22  ;;  %v2090_v9 = vadd.f32 128.0, %v2074_v28  ;;  %v2063_v55 = vunpack.c.3.s8 %v3051_v22  ;;  %v2559_v56 = vadd.f32 128.0, %v2543_v48  ;;  %4264 = vmatpush3.bf16.msra.mxu0 %v4263_v52 }
 0x210   :  { %v2574_v60 = vmul.f32 %v2558_v47, %v4553_v5  ;;  %v5992_v36 = vadd.f32 %v2104_v27, %v4555_v7  ;;  %v2091_v49 = vadd.f32 128.0, %v2075_v13  ;;  %v2528_v38 = vunpack.c.0.s8 %v3063_v57  ;;  %4265 = vmatprep.subr.bf16.mxu0 %v6410_v18 }
 0x211   :  { %v2529_v25 = vunpack.c.1.s8 %v3063_v57  ;;  %v2076_v19 = vcvt.s32.f32 %v2060_v44  ;;  %v4266_v22 = vpack.c.bf16 %v2589_v32, %v2588_v43  ;;  %v2575_v12 = vmul.f32 %v2559_v56, %v4553_v5 }
 0x212   :  { %4150 = vmatpush3.bf16.msra.mxu1 %v4149_v17  ;;  %v2590_v24 = vadd.f32 %v2574_v60, %v4555_v7  ;;  %v2077_v26 = vcvt.s32.f32 %v2061_v1  ;;  %v2078_v17 = vcvt.s32.f32 %v2062_v58  ;;  %v2544_v63 = vcvt.s32.f32 %v2528_v38 }
 0x213   :  { %4151 = vmatprep.subr.bf16.mxu1 %v6410_v18  ;;  %v2545_v51 = vcvt.s32.f32 %v2529_v25  ;;  %v6004_v8 = vadd.f32 %v2105_v50, %v4555_v7  ;;  %v2106_v42 = vmul.f32 %v2090_v9, %v4553_v5  ;;  %v2079_v28 = vcvt.s32.f32 %v2063_v55  ;;  %4267 = vmatpush3.bf16.msra.mxu0 %v4266_v22  ;;  %v6025_v55 = vld [vmem:[%s6345_s3 + $0x1e0] sm:$0xff] }
 0x214   :  { %v2591_v35 = vadd.f32 %v2575_v12, %v4555_v7  ;;  %v6013_v15 = vadd.f32 %v5714_v33, %v6494_v34  ;;  %v2360_v27 = vunpack.c.0.s8 %v5998_v30  ;;  %v2560_v13 = vadd.f32 128.0, %v2544_v63  ;;  %4268 = vmatprep.subr.bf16.mxu0 %v6410_v18 }
 0x215   :  { %v2561_v44 = vadd.f32 128.0, %v2545_v51  ;;  %v2107_v52 = vmul.f32 %v2091_v49, %v4553_v5  ;;  %v2092_v43 = vadd.f32 128.0, %v2076_v19  ;;  %v2530_v48 = vunpack.c.2.s8 %v3063_v57 }
 0x216   :  { %4153 = vmatpush3.bf16.msra.mxu1 %v4152_v21  ;;  %v4269_v32 = vpack.c.bf16 %v2591_v35, %v2590_v24  ;;  %v2093_v47 = vadd.f32 128.0, %v2077_v26  ;;  %v2094_v50 = vadd.f32 128.0, %v2078_v17  ;;  %v2576_v14 = vmul.f32 %v2560_v13, %v4553_v5 }
 0x217   :  { %4154 = vmatprep.subr.bf16.mxu1 %v6410_v18  ;;  %v2577_v2 = vmul.f32 %v2561_v44, %v4553_v5  ;;  %v2095_v21 = vadd.f32 128.0, %v2079_v28  ;;  %v2361_v1 = vunpack.c.1.s8 %v5998_v30  ;;  %v2531_v58 = vunpack.c.3.s8 %v3063_v57 }
 0x218   :  { %v2546_v9 = vcvt.s32.f32 %v2530_v48  ;;  %v6031_v56 = vadd.f32 %v2106_v42, %v4555_v7  ;;  %v2376_v60 = vcvt.s32.f32 %v2360_v27  ;;  %v2592_v49 = vadd.f32 %v2576_v14, %v4555_v7  ;;  %4270 = vmatpush3.bf16.msra.mxu0 %v4269_v32 }
 0x219   :  { %v2593_v38 = vadd.f32 %v2577_v2, %v4555_v7  ;;  %v6037_v57 = vadd.f32 %v2107_v52, %v4555_v7  ;;  %v2108_v25 = vmul.f32 %v2092_v43, %v4553_v5  ;;  %v2547_v19 = vcvt.s32.f32 %v2531_v58  ;;  %4271 = vmatprep.subr.bf16.mxu0 %v6410_v18 }
 0x21a   :  { %4156 = vmatpush3.bf16.msra.mxu1 %v4155_v41  ;;  %v2562_v22 = vadd.f32 128.0, %v2546_v9  ;;  %v2109_v3 = vmul.f32 %v2093_v47, %v4553_v5  ;;  %v2110_v39 = vmul.f32 %v2094_v50, %v4553_v5  ;;  %v2828_v12 = vunpack.c.0.s8 %v6025_v55 }
 0x21b   :  { %4181 = vmatprep.subr.bf16.mxu1 %v6410_v18  ;;  %v4272_v41 = vpack.c.bf16 %v2593_v38, %v2592_v49  ;;  %v2111_v24 = vmul.f32 %v2095_v21, %v4553_v5  ;;  %v2377_v26 = vcvt.s32.f32 %v2361_v1  ;;  %v2563_v17 = vadd.f32 128.0, %v2547_v19 }
 0x21c   :  { %v2578_v63 = vmul.f32 %v2562_v22, %v4553_v5  ;;  %v2392_v51 = vadd.f32 128.0, %v2376_v60  ;;  %v2362_v42 = vunpack.c.2.s8 %v5998_v30  ;;  %v2829_v28 = vunpack.c.1.s8 %v6025_v55 }
 0x21d   :  { %3658 = vmatmul.mubr.f32.vlgmr.msra.gmra.mrb[10].mxu1 %v474_v4  ;;  %v2844_v37 = vcvt.s32.f32 %v2828_v12  ;;  %v2363_v4 = vunpack.c.3.s8 %v5998_v30  ;;  %4273 = vmatpush3.bf16.msra.mxu0 %v4272_v41  ;;  %v453_v35 = vadd.f32 %v5714_v33, %v5703_v16  ;;  %v2579_v40 = vmul.f32 %v2563_v17, %v4553_v5 }
 0x21e   :  { %4183 = vmatpush3.bf16.msra.mxu1 %v4182_v53  ;;  %3727 = vmatprep.mubr.msk.f32.mxu1 %vm4380_vm2, %v6409_v0  ;;  %v2594_v11 = vadd.f32 %v2578_v63, %v4555_v7  ;;  %v6062_v53 = vadd.f32 %v2108_v25, %v4555_v7  ;;  %v6065_v34 = vadd.f32 %v2109_v3, %v4555_v7  ;;  %v2845_v27 = vcvt.s32.f32 %v2829_v28 }
 0x21f   :  { %4184 = vmatprep.subr.bf16.mxu1 %v6410_v18  ;;  %4274 = vmatprep.subr.bf16.mxu0 %v6410_v18  ;;  %v2860_v13 = vadd.f32 128.0, %v2844_v37  ;;  %v6069_v30 = vadd.f32 %v2110_v39, %v4555_v7  ;;  %v6072_v44 = vadd.f32 %v2111_v24, %v4555_v7  ;;  %v2393_v16 = vadd.f32 128.0, %v2377_v26  ;;  %v6117_v26 = vld [vmem:[%s6345_s3 + $0x190] sm:$0xff] }
 0x220   :  { %v2595_v33 = vadd.f32 %v2579_v40, %v4555_v7  ;;  %v2408_v52 = vmul.f32 %v2392_v51, %v4553_v5  ;;  %v2861_v43 = vadd.f32 128.0, %v2845_v27  ;;  %v2830_v48 = vunpack.c.2.s8 %v6025_v55 }
 0x221   :  { %v2876_v32 = vmul.f32 %v2860_v13, %v4553_v5  ;;  %v2378_v47 = vcvt.s32.f32 %v2362_v42  ;;  %v2379_v50 = vcvt.s32.f32 %v2363_v4  ;;  %v479_v14 = vmax.f32 %v453_v35, 0.0 }
 0x222   :  { %4186 = vmatpush3.bf16.msra.mxu1 %v4185_v29  ;;  %v4275_v2 = vpack.c.bf16 %v2595_v33, %v2594_v11  ;;  %v2877_v21 = vmul.f32 %v2861_v43, %v4553_v5  ;;  %v2831_v31 = vunpack.c.3.s8 %v6025_v55  ;;  %v2846_v61 = vcvt.s32.f32 %v2830_v48  ;;  %v6088_v29 = vld [vmem:[%s6345_s3 + $0x1e8] sm:$0xff] }
 0x223   :  { %4187 = vmatprep.subr.bf16.mxu1 %v6410_v18  ;;  %v2892_v1 = vadd.f32 %v2876_v32, %v4555_v7  ;;  %v4194_v58 = vpack.c.bf16 %v6004_v8, %v5992_v36  ;;  %v4197_v9 = vpack.c.bf16 %v6037_v57, %v6031_v56  ;;  %v476_v60 = vmax.f32 %v6013_v15, 0.0  ;;  %v3057_v36 = vld [vmem:[%s6345_s3 + $0x188] sm:$0xff] }
 0x224   :  { %v4200_v49 = vpack.c.bf16 %v6065_v34, %v6062_v53  ;;  %4276 = vmatpush3.bf16.msra.mxu0 %v4275_v2  ;;  %v4203_v55 = vpack.c.bf16 %v6072_v44, %v6069_v30  ;;  %v2893_v8 = vadd.f32 %v2877_v21, %v4555_v7  ;;  %v2847_v38 = vcvt.s32.f32 %v2831_v31 }
 0x225   :  { %4301 = vmatprep.subr.bf16.mxu0 %v6410_v18  ;;  %v2862_v25 = vadd.f32 128.0, %v2846_v61  ;;  %v2409_v19 = vmul.f32 %v2393_v16, %v4553_v5  ;;  %v6110_v45 = vadd.f32 %v2408_v52, %v4555_v7  ;;  %v2394_v6 = vadd.f32 128.0, %v2378_v47 }
 0x226   :  { %4189 = vmatpush3.bf16.msra.mxu1 %v4188_v54  ;;  %v2832_v54 = vunpack.c.0.s8 %v6088_v29  ;;  %v2395_v22 = vadd.f32 128.0, %v2379_v50  ;;  %v4302_v3 = vpack.c.bf16 %v2893_v8, %v2892_v1  ;;  %v2863_v39 = vadd.f32 128.0, %v2847_v38  ;;  %v6146_v1 = vld [vmem:[%s6345_s3 + $0x1f0] sm:$0xff] }
 0x227   :  { %4190 = vmatprep.subr.bf16.mxu1 %v6410_v18  ;;  %3833 = vmatmul.mubr.f32.vlgmr.msra.gmra.mrb[42].mxu0 %v479_v14  ;;  %v2878_v41 = vmul.f32 %v2862_v25, %v4553_v5  ;;  %v2364_v12 = vunpack.c.0.s8 %v3057_v36  ;;  %v2365_v24 = vunpack.c.1.s8 %v3057_v36  ;;  %v2833_v17 = vunpack.c.1.s8 %v6088_v29 }
 0x228   :  { %v2848_v63 = vcvt.s32.f32 %v2832_v54  ;;  %3902 = vmatprep.mubr.msk.f32.mxu0 %vm4380_vm2, %v6409_v0  ;;  %v2366_v51 = vunpack.c.2.s8 %v3057_v36  ;;  %v2367_v42 = vunpack.c.3.s8 %v3057_v36  ;;  %4303 = vmatpush3.bf16.msra.mxu0 %v4302_v3  ;;  %v2879_v28 = vmul.f32 %v2863_v39, %v4553_v5 }
 0x229   :  { %v2894_v37 = vadd.f32 %v2878_v41, %v4555_v7  ;;  %v6129_v4 = vadd.f32 %v2409_v19, %v4555_v7  ;;  %v2410_v35 = vmul.f32 %v2394_v6, %v4553_v5  ;;  %4304 = vmatprep.subr.bf16.mxu0 %v6410_v18  ;;  %v2849_v40 = vcvt.s32.f32 %v2833_v17 }
 0x22a   :  { %4192 = vmatpush3.bf16.msra.mxu1 %v4191_v10  ;;  %v2864_v11 = vadd.f32 128.0, %v2848_v63  ;;  %v2411_v46 = vmul.f32 %v2395_v22, %v4553_v5  ;;  %v2368_v59 = vunpack.c.0.s8 %v6117_v26  ;;  %v2369_v10 = vunpack.c.1.s8 %v6117_v26 }
 0x22b   :  { %4193 = vmatprep.subr.bf16.mxu1 %v6410_v18  ;;  %v2895_v27 = vadd.f32 %v2879_v28, %v4555_v7  ;;  %v2380_v13 = vcvt.s32.f32 %v2364_v12  ;;  %v2865_v16 = vadd.f32 128.0, %v2849_v40  ;;  %v2834_v52 = vunpack.c.2.s8 %v6088_v29 }
 0x22c   :  { %v2880_v33 = vmul.f32 %v2864_v11, %v4553_v5  ;;  %v2381_v43 = vcvt.s32.f32 %v2365_v24  ;;  %v2382_v32 = vcvt.s32.f32 %v2366_v51  ;;  %v2383_v48 = vcvt.s32.f32 %v2367_v42 }
 0x22d   :  { %v4305_v47 = vpack.c.bf16 %v2895_v27, %v2894_v37  ;;  %v2881_v50 = vmul.f32 %v2865_v16, %v4553_v5  ;;  %v2835_v2 = vunpack.c.3.s8 %v6088_v29  ;;  %v2850_v21 = vcvt.s32.f32 %v2834_v52 }
 0x22e   :  { %4195 = vmatpush3.bf16.msra.mxu1 %v4194_v58  ;;  %v2896_v14 = vadd.f32 %v2880_v33, %v4555_v7  ;;  %v4230_v31 = vpack.c.bf16 %v6129_v4, %v6110_v45  ;;  %v6151_v61 = vadd.f32 %v2410_v35, %v4555_v7  ;;  %v2384_v58 = vcvt.s32.f32 %v2368_v59 }
 0x22f   :  { %4196 = vmatprep.subr.bf16.mxu1 %v6410_v18  ;;  %v2385_v36 = vcvt.s32.f32 %v2369_v10  ;;  %4306 = vmatpush3.bf16.msra.mxu0 %v4305_v47  ;;  %v6154_v8 = vadd.f32 %v2411_v46, %v4555_v7  ;;  %v2897_v29 = vadd.f32 %v2881_v50, %v4555_v7  ;;  %v2851_v38 = vcvt.s32.f32 %v2835_v2 }
 0x230   :  { %4307 = vmatprep.subr.bf16.mxu0 %v6410_v18  ;;  %v2866_v25 = vadd.f32 128.0, %v2850_v21  ;;  %v2396_v19 = vadd.f32 128.0, %v2380_v13  ;;  %v2397_v6 = vadd.f32 128.0, %v2381_v43  ;;  %v2398_v54 = vadd.f32 128.0, %v2382_v32 }
 0x231   :  { %v2836_v22 = vunpack.c.0.s8 %v6146_v1  ;;  %v2399_v3 = vadd.f32 128.0, %v2383_v48  ;;  %v4308_v39 = vpack.c.bf16 %v2897_v29, %v2896_v14  ;;  %v2867_v41 = vadd.f32 128.0, %v2851_v38 }
 0x232   :  { %4198 = vmatpush3.bf16.msra.mxu1 %v4197_v9  ;;  %v2882_v12 = vmul.f32 %v2866_v25, %v4553_v5  ;;  %v2400_v24 = vadd.f32 128.0, %v2384_v58  ;;  %v2401_v17 = vadd.f32 128.0, %v2385_v36  ;;  %v2837_v63 = vunpack.c.1.s8 %v6146_v1 }
 0x233   :  { %4199 = vmatprep.subr.bf16.mxu1 %v6410_v18  ;;  %v2852_v51 = vcvt.s32.f32 %v2836_v22  ;;  %v2370_v56 = vunpack.c.2.s8 %v6117_v26  ;;  %v2371_v57 = vunpack.c.3.s8 %v6117_v26  ;;  %4309 = vmatpush3.bf16.msra.mxu0 %v4308_v39  ;;  %v2883_v9 = vmul.f32 %v2867_v41, %v4553_v5 }
 0x234   :  { %v2898_v42 = vadd.f32 %v2882_v12, %v4555_v7  ;;  %v4233_v28 = vpack.c.bf16 %v6154_v8, %v6151_v61  ;;  %v2412_v37 = vmul.f32 %v2396_v19, %v4553_v5  ;;  %4310 = vmatprep.subr.bf16.mxu0 %v6410_v18  ;;  %v2853_v35 = vcvt.s32.f32 %v2837_v63  ;;  %v3071_v61 = vld [vmem:[%s6345_s3 + $0x1f8] sm:$0xff] }
 0x235   :  { %v2868_v40 = vadd.f32 128.0, %v2852_v51  ;;  %v2413_v26 = vmul.f32 %v2397_v6, %v4553_v5  ;;  %v2414_v11 = vmul.f32 %v2398_v54, %v4553_v5  ;;  %v2415_v46 = vmul.f32 %v2399_v3, %v4553_v5 }
 0x236   :  { %4201 = vmatpush3.bf16.msra.mxu1 %v4200_v49  ;;  %v2899_v53 = vadd.f32 %v2883_v9, %v4555_v7  ;;  %v2416_v34 = vmul.f32 %v2400_v24, %v4553_v5  ;;  %v6185_v49 = vld [vmem:[%s6345_s3 + $0x198] sm:$0xff]  ;;  %v2869_v59 = vadd.f32 128.0, %v2853_v35  ;;  %v2838_v27 = vunpack.c.2.s8 %v6146_v1 }
 0x237   :  { %4202 = vmatprep.subr.bf16.mxu1 %v6410_v18  ;;  %v2884_v10 = vmul.f32 %v2868_v40, %v4553_v5  ;;  %v2417_v13 = vmul.f32 %v2401_v17, %v4553_v5  ;;  %v2386_v16 = vcvt.s32.f32 %v2370_v56  ;;  %v2387_v33 = vcvt.s32.f32 %v2371_v57  ;;  %v3064_v56 = vld [vmem:[%s6345_s3 + $0x1c0] sm:$0xff] }
 0x238   :  { %v4311_v52 = vpack.c.bf16 %v2899_v53, %v2898_v42  ;;  %v2885_v43 = vmul.f32 %v2869_v59, %v4553_v5  ;;  %v2839_v48 = vunpack.c.3.s8 %v6146_v1  ;;  %v2854_v47 = vcvt.s32.f32 %v2838_v27 }
 0x239   :  { %v2900_v32 = vadd.f32 %v2884_v10, %v4555_v7  ;;  %v2428_v50 = vadd.f32 %v2412_v37, %v4555_v7  ;;  %v2429_v14 = vadd.f32 %v2413_v26, %v4555_v7  ;;  %v2372_v2 = vunpack.c.0.s8 %v6185_v49 }
 0x23a   :  { %4204 = vmatpush3.bf16.msra.mxu1 %v4203_v55  ;;  %v2373_v21 = vunpack.c.1.s8 %v6185_v49  ;;  %4312 = vmatpush3.bf16.msra.mxu0 %v4311_v52  ;;  %v6202_v30 = vadd.f32 %v2414_v11, %v4555_v7  ;;  %v2901_v44 = vadd.f32 %v2885_v43, %v4555_v7  ;;  %v2855_v55 = vcvt.s32.f32 %v2839_v48  ;;  %v3065_v48 = vld [vmem:[%s6345_s3 + $0x1c8] sm:$0xff] }
 0x23b   :  { %4229 = vmatprep.subr.bf16.mxu1 %v6410_v18  ;;  %4313 = vmatprep.subr.bf16.mxu0 %v6410_v18  ;;  %v2870_v1 = vadd.f32 128.0, %v2854_v47  ;;  %v6212_v58 = vadd.f32 %v2415_v46, %v4555_v7  ;;  %v6215_v36 = vadd.f32 %v2416_v34, %v4555_v7  ;;  %v6218_v8 = vadd.f32 %v2417_v13, %v4555_v7 }
 0x23c   :  { %v2402_v29 = vadd.f32 128.0, %v2386_v16  ;;  %v2403_v38 = vadd.f32 128.0, %v2387_v33  ;;  %v4314_v15 = vpack.c.bf16 %v2901_v44, %v2900_v32  ;;  %v2388_v19 = vcvt.s32.f32 %v2372_v2 }
 0x23d   :  { %3728 = vmatmul.mubr.f32.vlgmr.msra.gmra.mrb[12].mxu1 %v476_v60  ;;  %v2871_v60 = vadd.f32 128.0, %v2855_v55  ;;  %v2886_v25 = vmul.f32 %v2870_v1, %v4553_v5  ;;  %v2389_v6 = vcvt.s32.f32 %v2373_v21  ;;  %v2840_v54 = vunpack.c.0.s8 %v3071_v61 }
 0x23e   :  { %4231 = vmatpush3.bf16.msra.mxu1 %v4230_v31  ;;  %3797 = vmatprep.mubr.msk.f32.mxu1 %vm4380_vm2, %v6409_v0  ;;  %v2841_v22 = vunpack.c.1.s8 %v3071_v61  ;;  %v2374_v3 = vunpack.c.2.s8 %v6185_v49  ;;  %v2375_v39 = vunpack.c.3.s8 %v6185_v49  ;;  %v4236_v31 = vpack.c.bf16 %v2429_v14, %v2428_v50 }
 0x23f   :  { %4232 = vmatprep.subr.bf16.mxu1 %v6410_v18  ;;  %4315 = vmatpush3.bf16.msra.mxu0 %v4314_v15  ;;  %v2887_v45 = vmul.f32 %v2871_v60, %v4553_v5  ;;  %v2902_v4 = vadd.f32 %v2886_v25, %v4555_v7  ;;  %v4239_v41 = vpack.c.bf16 %v6212_v58, %v6202_v30  ;;  %v2856_v12 = vcvt.s32.f32 %v2840_v54  ;;  %v6268_v54 = vld [vmem:[%s6344_s2] ss:$0 sm:$0xff] }
 0x240   :  { %4316 = vmatprep.subr.bf16.mxu0 %v6410_v18  ;;  %v2857_v24 = vcvt.s32.f32 %v2841_v22  ;;  %v4242_v17 = vpack.c.bf16 %v6218_v8, %v6215_v36  ;;  %v2418_v63 = vmul.f32 %v2402_v29, %v4553_v5  ;;  %v2419_v51 = vmul.f32 %v2403_v38, %v4553_v5 }
 0x241   :  { %v2903_v57 = vadd.f32 %v2887_v45, %v4555_v7  ;;  %v2404_v9 = vadd.f32 128.0, %v2388_v19  ;;  %v2405_v42 = vadd.f32 128.0, %v2389_v6  ;;  %v2872_v37 = vadd.f32 128.0, %v2856_v12 }
 0x242   :  { %4234 = vmatpush3.bf16.msra.mxu1 %v4233_v28  ;;  %v2873_v35 = vadd.f32 128.0, %v2857_v24  ;;  %v2390_v28 = vcvt.s32.f32 %v2374_v3  ;;  %v2391_v40 = vcvt.s32.f32 %v2375_v39  ;;  %v2842_v11 = vunpack.c.2.s8 %v3071_v61 }
 0x243   :  { %4235 = vmatprep.subr.bf16.mxu1 %v6410_v18  ;;  %v4317_v26 = vpack.c.bf16 %v2903_v57, %v2902_v4  ;;  %v2672_v46 = vunpack.c.0.s8 %v3064_v56  ;;  %v2673_v53 = vunpack.c.1.s8 %v3064_v56  ;;  %v2888_v34 = vmul.f32 %v2872_v37, %v4553_v5 }
 0x244   :  { %v2889_v49 = vmul.f32 %v2873_v35, %v4553_v5  ;;  %v2434_v59 = vadd.f32 %v2418_v63, %v4555_v7  ;;  %v2435_v10 = vadd.f32 %v2419_v51, %v4555_v7  ;;  %v2843_v27 = vunpack.c.3.s8 %v3071_v61 }
 0x245   :  { %4318 = vmatpush3.bf16.msra.mxu0 %v4317_v26  ;;  %v2858_v13 = vcvt.s32.f32 %v2842_v11  ;;  %v2420_v16 = vmul.f32 %v2404_v9, %v4553_v5  ;;  %v2904_v33 = vadd.f32 %v2888_v34, %v4555_v7  ;;  %v2421_v43 = vmul.f32 %v2405_v42, %v4553_v5 }
 0x246   :  { %4237 = vmatpush3.bf16.msra.mxu1 %v4236_v31  ;;  %4319 = vmatprep.subr.bf16.mxu0 %v6410_v18  ;;  %v2905_v52 = vadd.f32 %v2889_v49, %v4555_v7  ;;  %v2406_v32 = vadd.f32 128.0, %v2390_v28  ;;  %v2859_v47 = vcvt.s32.f32 %v2843_v27  ;;  %v2407_v14 = vadd.f32 128.0, %v2391_v40  ;;  %v3066_v40 = vld [vmem:[%s6345_s3 + $0x1d0] sm:$0xff] }
 0x247   :  { %4238 = vmatprep.subr.bf16.mxu1 %v6410_v18  ;;  %v2874_v50 = vadd.f32 128.0, %v2858_v13  ;;  %v2688_v2 = vcvt.s32.f32 %v2672_v46  ;;  %v2689_v21 = vcvt.s32.f32 %v2673_v53  ;;  %v2674_v44 = vunpack.c.2.s8 %v3064_v56 }
 0x248   :  { %v4320_v30 = vpack.c.bf16 %v2905_v52, %v2904_v33  ;;  %v2675_v55 = vunpack.c.3.s8 %v3064_v56  ;;  %v2875_v1 = vadd.f32 128.0, %v2859_v47  ;;  %v4245_v58 = vpack.c.bf16 %v2435_v10, %v2434_v59 }
 0x249   :  { %v2890_v61 = vmul.f32 %v2874_v50, %v4553_v5  ;;  %v2436_v36 = vadd.f32 %v2420_v16, %v4555_v7  ;;  %v2676_v8 = vunpack.c.0.s8 %v3065_v48  ;;  %v2437_v29 = vadd.f32 %v2421_v43, %v4555_v7 }
 0x24a   :  { %4240 = vmatpush3.bf16.msra.mxu1 %v4239_v41  ;;  %4321 = vmatpush3.bf16.msra.mxu0 %v4320_v30  ;;  %v2677_v38 = vunpack.c.1.s8 %v3065_v48  ;;  %v2891_v15 = vmul.f32 %v2875_v1, %v4553_v5  ;;  %v2422_v25 = vmul.f32 %v2406_v32, %v4553_v5  ;;  %v2423_v19 = vmul.f32 %v2407_v14, %v4553_v5 }
 0x24b   :  { %4241 = vmatprep.subr.bf16.mxu1 %v6410_v18  ;;  %4322 = vmatprep.subr.bf16.mxu0 %v6410_v18  ;;  %v2906_v60 = vadd.f32 %v2890_v61, %v4555_v7  ;;  %v2704_v6 = vadd.f32 128.0, %v2688_v2  ;;  %v463_v22 = vadd.f32 %v6268_v54, %v5858_v20  ;;  %v2705_v3 = vadd.f32 128.0, %v2689_v21  ;;  %v3067_v61 = vld [vmem:[%s6345_s3 + $0x1d8] sm:$0xff] }
 0x24c   :  { %v2690_v39 = vcvt.s32.f32 %v2674_v44  ;;  %v2691_v45 = vcvt.s32.f32 %v2675_v55  ;;  %v2907_v4 = vadd.f32 %v2891_v15, %v4555_v7  ;;  %v2692_v31 = vcvt.s32.f32 %v2676_v8  ;;  %v6274_v41 = vpop.f32.mrb[0].mxu1 }
 0x24d   :  { %v2693_v12 = vcvt.s32.f32 %v2677_v38  ;;  %v2678_v24 = vunpack.c.2.s8 %v3065_v48  ;;  %v2679_v63 = vunpack.c.3.s8 %v3065_v48  ;;  %v3379_v56 = vpop.f32.mrb[1].mxu1  ;;  %v4248_v57 = vpack.c.bf16 %v2437_v29, %v2436_v36 }
 0x24e   :  { %4243 = vmatpush3.bf16.msra.mxu1 %v4242_v17  ;;  %v4323_v51 = vpack.c.bf16 %v2907_v4, %v2906_v60  ;;  %v2438_v9 = vadd.f32 %v2422_v25, %v4555_v7  ;;  %v2439_v20 = vadd.f32 %v2423_v19, %v4555_v7  ;;  %v481_v17 = vmax.f32 %v463_v22, 0.0 }
 0x24f   :  { %4244 = vmatprep.subr.bf16.mxu1 %v6410_v18  ;;  %v2720_v42 = vmul.f32 %v2704_v6, %v4553_v5  ;;  %v2721_v37 = vmul.f32 %v2705_v3, %v4553_v5  ;;  %v2706_v35 = vadd.f32 128.0, %v2690_v39  ;;  %v2707_v28 = vadd.f32 128.0, %v2691_v45 }
 0x250   :  { %4324 = vmatpush3.bf16.msra.mxu0 %v4323_v51  ;;  %v448_v26 = vadd.f32 %v6268_v54, %v5683_v62  ;;  %v2708_v11 = vadd.f32 128.0, %v2692_v31  ;;  %v2709_v46 = vadd.f32 128.0, %v2693_v12  ;;  %v2694_v53 = vcvt.s32.f32 %v2678_v24 }
 0x251   :  { %v2695_v34 = vcvt.s32.f32 %v2679_v63  ;;  %v4251_v49 = vpack.c.bf16 %v2439_v20, %v2438_v9  ;;  %v2680_v59 = vunpack.c.0.s8 %v3066_v40  ;;  %v2681_v10 = vunpack.c.1.s8 %v3066_v40 }
 0x252   :  { %4246 = vmatpush3.bf16.msra.mxu1 %v4245_v58  ;;  %v2736_v27 = vadd.f32 %v2720_v42, %v4555_v7  ;;  %v2737_v13 = vadd.f32 %v2721_v37, %v4555_v7  ;;  %v2722_v16 = vmul.f32 %v2706_v35, %v4553_v5  ;;  %v2723_v33 = vmul.f32 %v2707_v28, %v4553_v5 }
 0x253   :  { %4247 = vmatprep.subr.bf16.mxu1 %v6410_v18  ;;  %3903 = vmatmul.mubr.f32.vlgmr.msra.gmra.mrb[44].mxu0 %v481_v17  ;;  %v478_v52 = vmax.f32 %v448_v26, 0.0  ;;  %v2724_v62 = vmul.f32 %v2708_v11, %v4553_v5  ;;  %v2725_v43 = vmul.f32 %v2709_v46, %v4553_v5  ;;  %v2710_v32 = vadd.f32 128.0, %v2694_v53 }
 0x254   :  { %v2711_v48 = vadd.f32 128.0, %v2695_v34  ;;  %v6293_v47 = vpop.f32.mrb[32].mxu0  ;;  %v2696_v50 = vcvt.s32.f32 %v2680_v59  ;;  %v2697_v14 = vcvt.s32.f32 %v2681_v10  ;;  %v2682_v2 = vunpack.c.2.s8 %v3066_v40 }
 0x255   :  { %v2683_v21 = vunpack.c.3.s8 %v3066_v40  ;;  %v3484_v30 = vpop.f32.mrb[33].mxu0  ;;  %v4278_v44 = vpack.c.bf16 %v2737_v13, %v2736_v27  ;;  %v2738_v55 = vadd.f32 %v2722_v16, %v4555_v7  ;;  %v2739_v1 = vadd.f32 %v2723_v33, %v4555_v7 }
 0x256   :  { %4249 = vmatpush3.bf16.msra.mxu1 %v4248_v57  ;;  %v2740_v58 = vadd.f32 %v2724_v62, %v4555_v7  ;;  %v2741_v36 = vadd.f32 %v2725_v43, %v4555_v7  ;;  %v2726_v8 = vmul.f32 %v2710_v32, %v4553_v5  ;;  %v2727_v29 = vmul.f32 %v2711_v48, %v4553_v5 }
 0x257   :  { %4250 = vmatprep.subr.bf16.mxu1 %v6410_v18  ;;  %v2712_v38 = vadd.f32 128.0, %v2696_v50  ;;  %v2713_v15 = vadd.f32 128.0, %v2697_v14  ;;  %v2698_v60 = vcvt.s32.f32 %v2682_v2  ;;  %v2699_v25 = vcvt.s32.f32 %v2683_v21 }
 0x258   :  { %v4281_v19 = vpack.c.bf16 %v2739_v1, %v2738_v55  ;;  %v2684_v6 = vunpack.c.0.s8 %v3067_v61  ;;  %v2685_v22 = vunpack.c.1.s8 %v3067_v61  ;;  %v4284_v3 = vpack.c.bf16 %v2741_v36, %v2740_v58 }
 0x259   :  { %v2742_v39 = vadd.f32 %v2726_v8, %v4555_v7  ;;  %v2743_v45 = vadd.f32 %v2727_v29, %v4555_v7  ;;  %v2728_v4 = vmul.f32 %v2712_v38, %v4553_v5  ;;  %v2729_v31 = vmul.f32 %v2713_v15, %v4553_v5 }
 0x25a   :  { %4252 = vmatpush3.bf16.msra.mxu1 %v4251_v49  ;;  %v2714_v12 = vadd.f32 128.0, %v2698_v60  ;;  %v2715_v24 = vadd.f32 128.0, %v2699_v25  ;;  %v2700_v63 = vcvt.s32.f32 %v2684_v6  ;;  %v2701_v51 = vcvt.s32.f32 %v2685_v22 }
 0x25b   :  { %4277 = vmatprep.subr.bf16.mxu1 %v6410_v18  ;;  %v2686_v56 = vunpack.c.2.s8 %v3067_v61  ;;  %v2687_v57 = vunpack.c.3.s8 %v3067_v61  ;;  %v2744_v9 = vadd.f32 %v2728_v4, %v4555_v7  ;;  %v2745_v20 = vadd.f32 %v2729_v31, %v4555_v7 }
 0x25c   :  { %v2730_v17 = vmul.f32 %v2714_v12, %v4553_v5  ;;  %v2731_v42 = vmul.f32 %v2715_v24, %v4553_v5  ;;  %v2716_v37 = vadd.f32 128.0, %v2700_v63  ;;  %v2717_v35 = vadd.f32 128.0, %v2701_v51 }
 0x25d   :  { %3798 = vmatmul.mubr.f32.vlgmr.msra.gmra.mrb[14].mxu1 %v478_v52  ;;  %v2702_v28 = vcvt.s32.f32 %v2686_v56  ;;  %v2703_v40 = vcvt.s32.f32 %v2687_v57  ;;  %v4290_v26 = vpack.c.bf16 %v2745_v20, %v2744_v9  ;;  %v458_v2 = vadd.f32 %v6268_v54, %v5832_v23 }
 0x25e   :  { %4279 = vmatpush3.bf16.msra.mxu1 %v4278_v44  ;;  %3867 = vmatprep.mubr.msk.f32.mxu1 %vm4380_vm2, %v6409_v0  ;;  %v4287_v0 = vpack.c.bf16 %v2743_v45, %v2742_v39  ;;  %v2746_v11 = vadd.f32 %v2730_v17, %v4555_v7  ;;  %v2747_v46 = vadd.f32 %v2731_v42, %v4555_v7 }
 0x25f   :  { %4280 = vmatprep.subr.bf16.mxu1 %v6410_v18  ;;  %v2732_v53 = vmul.f32 %v2716_v37, %v4553_v5  ;;  %v2733_v34 = vmul.f32 %v2717_v35, %v4553_v5  ;;  %v2718_v49 = vadd.f32 128.0, %v2702_v28  ;;  %v2719_v59 = vadd.f32 128.0, %v2703_v40  ;;  %v3072_v37 = vld [vmem:[%s6347_s5] ss:$0 sm:$0xff] }
 0x260   :  { %v4293_v10 = vpack.c.bf16 %v2747_v46, %v2746_v11 }
 0x261   :  { %v2748_v27 = vadd.f32 %v2732_v53, %v4555_v7  ;;  %v2749_v13 = vadd.f32 %v2733_v34, %v4555_v7  ;;  %v2734_v16 = vmul.f32 %v2718_v49, %v4553_v5  ;;  %v2735_v33 = vmul.f32 %v2719_v59, %v4553_v5 }
 0x262   :  { %4282 = vmatpush3.bf16.msra.mxu1 %v4281_v19 }
 0x263   :  { %4283 = vmatprep.subr.bf16.mxu1 %v6410_v18  ;;  %v4296_v32 = vpack.c.bf16 %v2749_v13, %v2748_v27  ;;  %v2750_v48 = vadd.f32 %v2734_v16, %v4555_v7  ;;  %v2751_v50 = vadd.f32 %v2735_v33, %v4555_v7 }
 0x265   :  { %v4299_v14 = vpack.c.bf16 %v2751_v50, %v2750_v48 }
 0x266   :  { %4285 = vmatpush3.bf16.msra.mxu1 %v4284_v3 }
 0x267   :  { %4286 = vmatprep.subr.bf16.mxu1 %v6410_v18 }
 0x26a   :  { %4288 = vmatpush3.bf16.msra.mxu1 %v4287_v0 }
 0x26b   :  { %4289 = vmatprep.subr.bf16.mxu1 %v6410_v18 }
 0x26c   :  { %v791_v52 = vpop.f32.mrb[2].mxu1 }
 0x26d   :  { %v792_v62 = vadd.f32 %v791_v52, %v6274_v41  ;;  %v3414_v43 = vpop.f32.mrb[3].mxu1  ;;  %v480_v41 = vmax.f32 %v458_v2, 0.0 }
 0x26e   :  { %4291 = vmatpush3.bf16.msra.mxu1 %v4290_v26 }
 0x26f   :  { %4292 = vmatprep.subr.bf16.mxu1 %v6410_v18 }
 0x272   :  { %4294 = vmatpush3.bf16.msra.mxu1 %v4293_v10 }
 0x273   :  { %4295 = vmatprep.subr.bf16.mxu1 %v6410_v18 }
 0x275   :  { %v1414_v5 = vpop.f32.mrb[34].mxu0 }
 0x276   :  { %4297 = vmatpush3.bf16.msra.mxu1 %v4296_v32  ;;  %v3554_v21 = vpop.f32.mrb[35].mxu0 }
 0x277   :  { %4298 = vmatprep.subr.bf16.mxu1 %v6410_v18 }
 0x27a   :  { %4300 = vmatpush3.bf16.msra.mxu1 %v4299_v14 }
 0x27d   :  { %3868 = vmatmul.mubr.f32.vlgmr.msra.gmra.mrb[16].mxu1 %v480_v41 }
 0x28c   :  { %v946_v30 = vpop.f32.mrb[4].mxu1 }
 0x28d   :  { %v950_v44 = vadd.f32 %v946_v30, %v792_v62  ;;  %v3449_v55 = vpop.f32.mrb[5].mxu1 }
 0x28f   :  { %v1106_v1 = vadd.f32 %v6293_v47, %v950_v44 }
 0x295   :  { %v1726_v7 = vpop.f32.mrb[36].mxu0 }
 0x296   :  { %v3624_v61 = vpop.f32.mrb[37].mxu0 }
 0x2ac   :  { %v1258_v58 = vpop.f32.mrb[6].mxu1 }
 0x2ad   :  { %v1262_v36 = vadd.f32 %v1258_v58, %v1106_v1  ;;  %v3519_v8 = vpop.f32.mrb[7].mxu1 }
 0x2af   :  { %v1418_v29 = vadd.f32 %v1414_v5, %v1262_v36 }
 0x2b5   :  { %v2038_v38 = vpop.f32.mrb[38].mxu0 }
 0x2b6   :  { %v3694_v23 = vpop.f32.mrb[39].mxu0 }
 0x2cf   :  { %v1570_v54 = vpop.f32.mrb[8].mxu1 }
 0x2d0   :  { %v1574_v18 = vadd.f32 %v1570_v54, %v1418_v29  ;;  %v3589_v15 = vpop.f32.mrb[9].mxu1 }
 0x2d2   :  { %v1730_v60 = vadd.f32 %v1726_v7, %v1574_v18 }
 0x2d5   :  { %v2350_v25 = vpop.f32.mrb[40].mxu0 }
 0x2d6   :  { %v3764_v19 = vpop.f32.mrb[41].mxu0 }
 0x2f0   :  { %v1882_v6 = vpop.f32.mrb[10].mxu1 }
 0x2f1   :  { %v1886_v22 = vadd.f32 %v1882_v6, %v1730_v60  ;;  %v3659_v3 = vpop.f32.mrb[11].mxu1 }
 0x2f3   :  { %v2042_v39 = vadd.f32 %v2038_v38, %v1886_v22 }
 0x2fa   :  { %v2662_v45 = vpop.f32.mrb[42].mxu0 }
 0x2fb   :  { %v3834_v47 = vpop.f32.mrb[43].mxu0 }
 0x310   :  { %v2194_v4 = vpop.f32.mrb[12].mxu1 }
 0x311   :  { %v2198_v31 = vadd.f32 %v2194_v4, %v2042_v39  ;;  %v3729_v12 = vpop.f32.mrb[13].mxu1 }
 0x313   :  { %v2354_v24 = vadd.f32 %v2350_v25, %v2198_v31 }
 0x326   :  { %v2974_v63 = vpop.f32.mrb[44].mxu0 }
 0x327   :  { %v3904_v51 = vpop.f32.mrb[45].mxu0 }
 0x330   :  { %v2506_v56 = vpop.f32.mrb[14].mxu1 }
 0x331   :  { %v2510_v57 = vadd.f32 %v2506_v56, %v2354_v24  ;;  %v3799_v0 = vpop.f32.mrb[15].mxu1 }
 0x333   :  { %v2666_v9 = vadd.f32 %v2662_v45, %v2510_v57 }
 0x350   :  { %v2818_v20 = vpop.f32.mrb[16].mxu1 }
 0x351   :  { %v2822_v17 = vadd.f32 %v2818_v20, %v2666_v9  ;;  %v3869_v42 = vpop.f32.mrb[17].mxu1 }
 0x353   :  { %v2978_v35 = vadd.f32 %v2974_v63, %v2822_v17 }
 0x355   :  { %v2986_v28 = vadd.f32 %v3072_v37, %v2978_v35 }
 0x357   :  { %2987 = vst [vmem:[%s6348_s6] sm:$0xff] %v2986_v28 }
 0x358   :  { %2992 = vsyncpa [#allocation4], 1 }
 0x359   :  { %2993 = vsyncpa [#allocation5], 1 }

</bundles_post_ra>
